<compile_context>
chip_gen: v7x
topology: tpu7x:2x2x1
jax: 0.10.0
libtpu: 0.0.40
codegen_flags: <defaults>
</compile_context>

<pallas_src>
import math

import jax
import jax.numpy as jnp
from jax import lax
from jax.experimental import pallas as pl
from jax.experimental.pallas import tpu as pltpu

# Small synthetic GPT-2 config (real GPT-2: D=768, H=12, 6 blocks in the second half).
B, S, D = 2, 8, 32          # batch, seq, hidden
H = 4                        # attention heads
DH = D // H                  # head dim
FF = 4 * D                   # MLP inner dim
NUM_LAYERS = 6               # "second half" of the 12 GPT-2 blocks
EPS = 1e-5                   # GPT-2 LayerNorm eps


def _ln(z, w, b):
    """LayerNorm over last dim. z: (N, D); w, b: (1, D)."""
    mu = jnp.mean(z, axis=-1, keepdims=True)
    var = jnp.mean((z - mu) ** 2, axis=-1, keepdims=True)
    return (z - mu) * lax.rsqrt(var + EPS) * w + b


def _gelu_new(x):
    """GPT-2 'gelu_new' (tanh approximation)."""
    return 0.5 * x * (1.0 + jnp.tanh(0.7978845608028654 * (x + 0.044715 * x * x * x)))


# ---------------------------------------------------------------------------
# Fused Pallas kernel: 6 transformer blocks + final ln_f, one batch sample per program
# ---------------------------------------------------------------------------
def gpt2_node2_kernel(x_ref, ln1w, ln1b, wqkv, bqkv, wo, bo,
                      ln2w, ln2b, wfc, bfc, wp, bp, lnfw, lnfb, o_ref):
    s_len, d = x_ref.shape               # (S, D) -- one batch sample per grid program
    x = x_ref[...]                        # (S, D) f32, stays in vregs/VMEM all layers

    # Causal mask as an additive bias, computed once (shared across layers and heads).
    row = lax.broadcasted_iota(jnp.int32, (s_len, s_len), 0)
    col = lax.broadcasted_iota(jnp.int32, (s_len, s_len), 1)
    bias = jnp.where(row >= col, 0.0, -1e9).astype(jnp.float32)

    for li in range(NUM_LAYERS):          # static unroll over the 6 resident layers
        # ---- attention branch ----
        h = _ln(x, ln1w[li], ln1b[li])
        # fused QKV projection (1/sqrt(DH) already folded into the Q columns at init)
        qkv = jnp.dot(h, wqkv[li], preferred_element_type=jnp.float32) + bqkv[li]
        wo_l = wo[li]                     # (D, D)

        attn = jnp.zeros((s_len, d), jnp.float32)
        for hi in range(H):               # static head loop; W_o folded per head (no concat)
            q_h = qkv[:, hi * DH:(hi + 1) * DH]
            k_h = qkv[:, d + hi * DH:d + (hi + 1) * DH]
            v_h = qkv[:, 2 * d + hi * DH:2 * d + (hi + 1) * DH]
            sc = jnp.einsum('qd,kd->qk', q_h, k_h,
                            preferred_element_type=jnp.float32) + bias
            sc = sc - jnp.max(sc, axis=-1, keepdims=True)
            p = jnp.exp(sc)
            p = p * pl.reciprocal(jnp.sum(p, axis=-1, keepdims=True), approx=True)
            o_h = jnp.dot(p, v_h, preferred_element_type=jnp.float32)        # (S, DH)
            attn = attn + jnp.dot(o_h, wo_l[hi * DH:(hi + 1) * DH, :],
                                  preferred_element_type=jnp.float32)        # (S, D)
        x = x + attn + bo[li]             # residual 1 (+ output-proj bias, added once)

        # ---- MLP branch ----
        h2 = _ln(x, ln2w[li], ln2b[li])
        f = jnp.dot(h2, wfc[li], preferred_element_type=jnp.float32) + bfc[li]
        x = x + jnp.dot(_gelu_new(f), wp[li],
                        preferred_element_type=jnp.float32) + bp[li]          # residual 2

    # final ln_f fused into the same kernel
    o_ref[...] = _ln(x, lnfw[...], lnfb[...])


def _rep_spec(shape):
    """Full-array block, same block for every grid step (weights resident in VMEM)."""
    zeros = (0,) * len(shape)

    def idx(b):
        return zeros

    return pl.BlockSpec(shape, idx)


@jax.jit
def gpt2_node2_forward(hidden_states, stacked, lnf_w, lnf_b):
    x = hidden_states.reshape(B * S, D).astype(jnp.float32)   # keep activations flat
    args = (x,
            stacked['ln1w'], stacked['ln1b'],
            stacked['wqkv'], stacked['bqkv'],
            stacked['wo'], stacked['bo'],
            stacked['ln2w'], stacked['ln2b'],
            stacked['wfc'], stacked['bfc'],
            stacked['wp'], stacked['bp'],
            lnf_w, lnf_b)
    in_specs = [pl.BlockSpec((S, D), lambda b: (b, 0))] + [
        _rep_spec(a.shape) for a in args[1:]]
    out = pl.pallas_call(
        gpt2_node2_kernel,
        out_shape=jax.ShapeDtypeStruct((B * S, D), jnp.float32),
        grid=(B,),                                   # one sample per program; v7x: 2 TCs
        in_specs=in_specs,
        out_specs=pl.BlockSpec((S, D), lambda b: (b, 0)),
        compiler_params=pltpu.CompilerParams(
            dimension_semantics=("parallel",)),
    )(*args)
    return out.reshape(B, S, D)


# ---------------------------------------------------------------------------
# Deterministic synthetic parameters (GPT-2-style init shapes)
# ---------------------------------------------------------------------------
def init_layer_params(key):
    ks = jax.random.split(key, 16)
    n = lambda k, shp: (0.02 * jax.random.normal(k, shp)).astype(jnp.float32)
    return {
        'ln1w': (jnp.ones((1, D), jnp.float32) + n(ks[0], (1, D))),
        'ln1b': n(ks[1], (1, D)),
        'wq': n(ks[2], (D, D)), 'wk': n(ks[3], (D, D)), 'wv': n(ks[4], (D, D)),
        'bq': n(ks[5], (1, D)), 'bk': n(ks[6], (1, D)), 'bv': n(ks[7], (1, D)),
        'wo': n(ks[8], (D, D)), 'bo': n(ks[9], (1, D)),
        'ln2w': (jnp.ones((1, D), jnp.float32) + n(ks[10], (1, D))),
        'ln2b': n(ks[11], (1, D)),
        'wfc': n(ks[12], (D, FF)), 'bfc': n(ks[13], (1, FF)),
        'wp': n(ks[14], (FF, D)), 'bp': n(ks[15], (1, D)),
    }


def stack_params(layer_params):
    """Stack per-layer params along a leading L axis; fuse QKV and fold attn scale."""
    scale = 1.0 / math.sqrt(DH)
    st = lambda name: jnp.stack([p[name] for p in layer_params])
    wqkv = jnp.stack([jnp.concatenate([p['wq'] * scale, p['wk'], p['wv']], axis=1)
                      for p in layer_params])                       # (L, D, 3D)
    bqkv = jnp.stack([jnp.concatenate([p['bq'] * scale, p['bk'], p['bv']], axis=1)
                      for p in layer_params])                       # (L, 1, 3D)
    return {'ln1w': st('ln1w'), 'ln1b': st('ln1b'),
            'wqkv': wqkv, 'bqkv': bqkv,
            'wo': st('wo'), 'bo': st('bo'),
            'ln2w': st('ln2w'), 'ln2b': st('ln2b'),
            'wfc': st('wfc'), 'bfc': st('bfc'),
            'wp': st('wp'), 'bp': st('bp')}


# ---------------------------------------------------------------------------
# Pure-JAX reference (same math as the PyTorch module, unfused) for correctness
# ---------------------------------------------------------------------------
def ref_forward(x, layer_params, lnf_w, lnf_b):
    row = lax.broadcasted_iota(jnp.int32, (S, S), 0)
    col = lax.broadcasted_iota(jnp.int32, (S, S), 1)
    causal = (row >= col)[None, None]    # (1, 1, S, S)
    for p in layer_params:
        xf = x.reshape(B * S, D)
        h = _ln(xf, p['ln1w'], p['ln1b'])
        q = (h @ p['wq'] + p['bq']).reshape(B, S, H, DH)
        k = (h @ p['wk'] + p['bk']).reshape(B, S, H, DH)
        v = (h @ p['wv'] + p['bv']).reshape(B, S, H, DH)
        s = jnp.einsum('bqhd,bkhd->bhqk', q, k) / math.sqrt(DH)
        s = jnp.where(causal, s, -1e9)
        pr = jax.nn.softmax(s, axis=-1)
        o = jnp.einsum('bhqk,bkhd->bqhd', pr, v).reshape(B * S, D)
        attn = o @ p['wo'] + p['bo']
        x1 = xf + attn
        h2 = _ln(x1, p['ln2w'], p['ln2b'])
        f = h2 @ p['wfc'] + p['bfc']
        x2 = x1 + _gelu_new(f) @ p['wp'] + p['bp']
        x = x2.reshape(B, S, D)
    return _ln(x.reshape(B * S, D), lnf_w, lnf_b).reshape(B, S, D)


if __name__ == "__main__":
    key = jax.random.PRNGKey(0)
    kx, kp, kw, kb = jax.random.split(key, 4)

    hidden_states = jax.random.normal(kx, (B, S, D), jnp.float32)
    layer_params = [init_layer_params(jax.random.fold_in(kp, i))
                    for i in range(NUM_LAYERS)]
    lnf_w = (jnp.ones((1, D), jnp.float32)
             + 0.02 * jax.random.normal(kw, (1, D)).astype(jnp.float32))
    lnf_b = (0.02 * jax.random.normal(kb, (1, D))).astype(jnp.float32)

    stacked = stack_params(layer_params)

    out = gpt2_node2_forward(hidden_states, stacked, lnf_w, lnf_b)
    jax.block_until_ready(out)

    ref = ref_forward(hidden_states, layer_params, lnf_w, lnf_b)
    assert out.shape == (B, S, D) and out.dtype == jnp.float32
    # 1e-3 tolerance: approx EUP reciprocal in softmax + QKV-fusion / scale-folding
    # change rounding slightly vs. the exact reference.
    assert jnp.allclose(out, ref, atol=1e-3, rtol=1e-3), "Pallas output mismatch vs reference"

    print("KERNEL_OK")
</pallas_src>

<mosaic_0001>
module attributes {stable_mosaic.version = 11 : i64} {
  func.func @gpt2_node2_kernel(%arg0: i32, %arg1: memref<8x32xf32, #tpu.memory_space<vmem>>, %arg2: memref<6x1x32xf32, #tpu.memory_space<vmem>>, %arg3: memref<6x1x32xf32, #tpu.memory_space<vmem>>, %arg4: memref<6x32x96xf32, #tpu.memory_space<vmem>>, %arg5: memref<6x1x96xf32, #tpu.memory_space<vmem>>, %arg6: memref<6x32x32xf32, #tpu.memory_space<vmem>>, %arg7: memref<6x1x32xf32, #tpu.memory_space<vmem>>, %arg8: memref<6x1x32xf32, #tpu.memory_space<vmem>>, %arg9: memref<6x1x32xf32, #tpu.memory_space<vmem>>, %arg10: memref<6x32x128xf32, #tpu.memory_space<vmem>>, %arg11: memref<6x1x128xf32, #tpu.memory_space<vmem>>, %arg12: memref<6x128x32xf32, #tpu.memory_space<vmem>>, %arg13: memref<6x1x32xf32, #tpu.memory_space<vmem>>, %arg14: memref<1x32xf32, #tpu.memory_space<vmem>>, %arg15: memref<1x32xf32, #tpu.memory_space<vmem>>, %arg16: memref<8x32xf32, #tpu.memory_space<vmem>>) attributes {dimension_semantics = [#tpu.dimension_semantics<parallel>], iteration_bounds = array<i64: 2>, scalar_prefetch = 0 : i64, scratch_operands = 0 : i64, tpu.core_type = #tpu.core_type<tc>, window_params = [{transform_indices = @transform_0, window_bounds = array<i64: 8, 32>}, {pipeline_mode = #tpu.pipeline_mode<synchronous>, transform_indices = @transform_1, window_bounds = array<i64: 6, 1, 32>}, {pipeline_mode = #tpu.pipeline_mode<synchronous>, transform_indices = @transform_2, window_bounds = array<i64: 6, 1, 32>}, {pipeline_mode = #tpu.pipeline_mode<synchronous>, transform_indices = @transform_3, window_bounds = array<i64: 6, 32, 96>}, {pipeline_mode = #tpu.pipeline_mode<synchronous>, transform_indices = @transform_4, window_bounds = array<i64: 6, 1, 96>}, {pipeline_mode = #tpu.pipeline_mode<synchronous>, transform_indices = @transform_5, window_bounds = array<i64: 6, 32, 32>}, {pipeline_mode = #tpu.pipeline_mode<synchronous>, transform_indices = @transform_6, window_bounds = array<i64: 6, 1, 32>}, {pipeline_mode = #tpu.pipeline_mode<synchronous>, transform_indices = @transform_7, window_bounds = array<i64: 6, 1, 32>}, {pipeline_mode = #tpu.pipeline_mode<synchronous>, transform_indices = @transform_8, window_bounds = array<i64: 6, 1, 32>}, {pipeline_mode = #tpu.pipeline_mode<synchronous>, transform_indices = @transform_9, window_bounds = array<i64: 6, 32, 128>}, {pipeline_mode = #tpu.pipeline_mode<synchronous>, transform_indices = @transform_10, window_bounds = array<i64: 6, 1, 128>}, {pipeline_mode = #tpu.pipeline_mode<synchronous>, transform_indices = @transform_11, window_bounds = array<i64: 6, 128, 32>}, {pipeline_mode = #tpu.pipeline_mode<synchronous>, transform_indices = @transform_12, window_bounds = array<i64: 6, 1, 32>}, {pipeline_mode = #tpu.pipeline_mode<synchronous>, transform_indices = @transform_13, window_bounds = array<i64: 1, 32>}, {pipeline_mode = #tpu.pipeline_mode<synchronous>, transform_indices = @transform_14, window_bounds = array<i64: 1, 32>}, {transform_indices = @transform_15, window_bounds = array<i64: 8, 32>}]} {
    %c0 = arith.constant 0 : index
    %c0_0 = arith.constant 0 : index
    %0 = vector.load %arg1[%c0, %c0_0] : memref<8x32xf32, #tpu.memory_space<vmem>>, vector<8x32xf32>
    %1 = tpu.iota {dimensions = array<i32: 0>} : vector<8x8xi32>
    %2 = tpu.iota {dimensions = array<i32: 1>} : vector<8x8xi32>
    %3 = arith.cmpi sge, %1, %2 : vector<8x8xi32>
    %cst = arith.constant 0.000000e+00 : f32
    %cst_1 = arith.constant -1.000000e+09 : f32
    %4 = vector.broadcast %cst : f32 to vector<8x8xf32>
    %5 = vector.broadcast %cst_1 : f32 to vector<8x8xf32>
    %6 = arith.select %3, %4, %5 : vector<8x8xi1>, vector<8x8xf32>
    %c0_2 = arith.constant 0 : index
    %c0_3 = arith.constant 0 : index
    %c0_4 = arith.constant 0 : index
    %7 = vector.load %arg2[%c0_2, %c0_3, %c0_4] : memref<6x1x32xf32, #tpu.memory_space<vmem>>, vector<1x1x32xf32>
    %8 = vector.shape_cast %7 : vector<1x1x32xf32> to vector<1x32xf32>
    %c0_5 = arith.constant 0 : index
    %c0_6 = arith.constant 0 : index
    %c0_7 = arith.constant 0 : index
    %9 = vector.load %arg3[%c0_5, %c0_6, %c0_7] : memref<6x1x32xf32, #tpu.memory_space<vmem>>, vector<1x1x32xf32>
    %10 = vector.shape_cast %9 : vector<1x1x32xf32> to vector<1x32xf32>
    %cst_8 = arith.constant dense<0.000000e+00> : vector<8xf32>
    %11 = vector.multi_reduction <add>, %0, %cst_8 [1] : vector<8x32xf32> to vector<8xf32>
    %12 = vector.shape_cast %11 : vector<8xf32> to vector<8x1xf32>
    %cst_9 = arith.constant 3.200000e+01 : f32
    %13 = vector.broadcast %cst_9 : f32 to vector<8x1xf32>
    %14 = arith.divf %12, %13 : vector<8x1xf32>
    %15 = vector.broadcast %14 : vector<8x1xf32> to vector<8x32xf32>
    %16 = arith.subf %0, %15 : vector<8x32xf32>
    %17 = arith.mulf %16, %16 : vector<8x32xf32>
    %cst_10 = arith.constant dense<0.000000e+00> : vector<8xf32>
    %18 = vector.multi_reduction <add>, %17, %cst_10 [1] : vector<8x32xf32> to vector<8xf32>
    %19 = vector.shape_cast %18 : vector<8xf32> to vector<8x1xf32>
    %cst_11 = arith.constant 3.200000e+01 : f32
    %20 = vector.broadcast %cst_11 : f32 to vector<8x1xf32>
    %21 = arith.divf %19, %20 : vector<8x1xf32>
    %22 = vector.broadcast %14 : vector<8x1xf32> to vector<8x32xf32>
    %23 = arith.subf %0, %22 : vector<8x32xf32>
    %cst_12 = arith.constant 9.99999974E-6 : f32
    %24 = vector.broadcast %cst_12 : f32 to vector<8x1xf32>
    %25 = arith.addf %21, %24 : vector<8x1xf32>
    %26 = math.rsqrt %25 : vector<8x1xf32>
    %27 = vector.broadcast %26 : vector<8x1xf32> to vector<8x32xf32>
    %28 = arith.mulf %23, %27 : vector<8x32xf32>
    %29 = vector.broadcast %8 : vector<1x32xf32> to vector<8x32xf32>
    %30 = arith.mulf %28, %29 : vector<8x32xf32>
    %31 = vector.broadcast %10 : vector<1x32xf32> to vector<8x32xf32>
    %32 = arith.addf %30, %31 : vector<8x32xf32>
    %c0_13 = arith.constant 0 : index
    %c0_14 = arith.constant 0 : index
    %c0_15 = arith.constant 0 : index
    %33 = vector.load %arg4[%c0_13, %c0_14, %c0_15] : memref<6x32x96xf32, #tpu.memory_space<vmem>>, vector<1x32x96xf32>
    %34 = vector.shape_cast %33 : vector<1x32x96xf32> to vector<32x96xf32>
    %cst_16 = arith.constant dense<0.000000e+00> : vector<8x96xf32>
    %35 = tpu.matmul %32, %34, %cst_16 {dimension_numbers = #tpu.dot_dimension_numbers<[1], [0], [0], [1], [0, 0, 1, 1], [], []>} : vector<8x32xf32>, vector<32x96xf32>, vector<8x96xf32> -> vector<8x96xf32>
    %c0_17 = arith.constant 0 : index
    %c0_18 = arith.constant 0 : index
    %c0_19 = arith.constant 0 : index
    %36 = vector.load %arg5[%c0_17, %c0_18, %c0_19] : memref<6x1x96xf32, #tpu.memory_space<vmem>>, vector<1x1x96xf32>
    %37 = vector.shape_cast %36 : vector<1x1x96xf32> to vector<1x96xf32>
    %38 = vector.broadcast %37 : vector<1x96xf32> to vector<8x96xf32>
    %39 = arith.addf %35, %38 : vector<8x96xf32>
    %c0_20 = arith.constant 0 : index
    %c0_21 = arith.constant 0 : index
    %c0_22 = arith.constant 0 : index
    %40 = vector.load %arg6[%c0_20, %c0_21, %c0_22] : memref<6x32x32xf32, #tpu.memory_space<vmem>>, vector<1x32x32xf32>
    %41 = vector.shape_cast %40 : vector<1x32x32xf32> to vector<32x32xf32>
    %cst_23 = arith.constant 0.000000e+00 : f32
    %42 = vector.broadcast %cst_23 : f32 to vector<8x32xf32>
    %43 = vector.extract_strided_slice %39 {offsets = [0, 0], sizes = [8, 8], strides = [1, 1]} : vector<8x96xf32> to vector<8x8xf32>
    %44 = vector.extract_strided_slice %39 {offsets = [0, 32], sizes = [8, 8], strides = [1, 1]} : vector<8x96xf32> to vector<8x8xf32>
    %45 = vector.extract_strided_slice %39 {offsets = [0, 64], sizes = [8, 8], strides = [1, 1]} : vector<8x96xf32> to vector<8x8xf32>
    "tpu.trace_start"() <{level = 10 : i32, message = "qd,kd->qk"}> : () -> ()
    %cst_24 = arith.constant dense<0.000000e+00> : vector<8x8xf32>
    %46 = tpu.matmul %43, %44, %cst_24 {dimension_numbers = #tpu.dot_dimension_numbers<[1], [1], [0], [0], [0, 0, 1, 0], [], []>} : vector<8x8xf32>, vector<8x8xf32>, vector<8x8xf32> -> vector<8x8xf32>
    "tpu.trace_stop"() : () -> ()
    %47 = arith.addf %46, %6 : vector<8x8xf32>
    %cst_25 = arith.constant dense<0xFF800000> : vector<8xf32>
    %48 = vector.multi_reduction <maximumf>, %47, %cst_25 [1] : vector<8x8xf32> to vector<8xf32>
    %49 = vector.shape_cast %48 : vector<8xf32> to vector<8x1xf32>
    %50 = vector.broadcast %49 : vector<8x1xf32> to vector<8x8xf32>
    %51 = arith.subf %47, %50 : vector<8x8xf32>
    %52 = math.exp %51 : vector<8x8xf32>
    %cst_26 = arith.constant dense<0.000000e+00> : vector<8xf32>
    %53 = vector.multi_reduction <add>, %52, %cst_26 [1] : vector<8x8xf32> to vector<8xf32>
    %54 = vector.shape_cast %53 : vector<8xf32> to vector<8x1xf32>
    %55 = tpu.reciprocal %54 {approx = true} : vector<8x1xf32> -> vector<8x1xf32>
    %56 = vector.broadcast %55 : vector<8x1xf32> to vector<8x8xf32>
    %57 = arith.mulf %52, %56 : vector<8x8xf32>
    %cst_27 = arith.constant dense<0.000000e+00> : vector<8x8xf32>
    %58 = tpu.matmul %57, %45, %cst_27 {dimension_numbers = #tpu.dot_dimension_numbers<[1], [0], [0], [1], [0, 0, 1, 1], [], []>} : vector<8x8xf32>, vector<8x8xf32>, vector<8x8xf32> -> vector<8x8xf32>
    %59 = vector.extract_strided_slice %41 {offsets = [0, 0], sizes = [8, 32], strides = [1, 1]} : vector<32x32xf32> to vector<8x32xf32>
    %cst_28 = arith.constant dense<0.000000e+00> : vector<8x32xf32>
    %60 = tpu.matmul %58, %59, %cst_28 {dimension_numbers = #tpu.dot_dimension_numbers<[1], [0], [0], [1], [0, 0, 1, 1], [], []>} : vector<8x8xf32>, vector<8x32xf32>, vector<8x32xf32> -> vector<8x32xf32>
    %61 = arith.addf %42, %60 : vector<8x32xf32>
    %62 = vector.extract_strided_slice %39 {offsets = [0, 8], sizes = [8, 8], strides = [1, 1]} : vector<8x96xf32> to vector<8x8xf32>
    %63 = vector.extract_strided_slice %39 {offsets = [0, 40], sizes = [8, 8], strides = [1, 1]} : vector<8x96xf32> to vector<8x8xf32>
    %64 = vector.extract_strided_slice %39 {offsets = [0, 72], sizes = [8, 8], strides = [1, 1]} : vector<8x96xf32> to vector<8x8xf32>
    "tpu.trace_start"() <{level = 10 : i32, message = "qd,kd->qk"}> : () -> ()
    %cst_29 = arith.constant dense<0.000000e+00> : vector<8x8xf32>
    %65 = tpu.matmul %62, %63, %cst_29 {dimension_numbers = #tpu.dot_dimension_numbers<[1], [1], [0], [0], [0, 0, 1, 0], [], []>} : vector<8x8xf32>, vector<8x8xf32>, vector<8x8xf32> -> vector<8x8xf32>
    "tpu.trace_stop"() : () -> ()
    %66 = arith.addf %65, %6 : vector<8x8xf32>
    %cst_30 = arith.constant dense<0xFF800000> : vector<8xf32>
    %67 = vector.multi_reduction <maximumf>, %66, %cst_30 [1] : vector<8x8xf32> to vector<8xf32>
    %68 = vector.shape_cast %67 : vector<8xf32> to vector<8x1xf32>
    %69 = vector.broadcast %68 : vector<8x1xf32> to vector<8x8xf32>
    %70 = arith.subf %66, %69 : vector<8x8xf32>
    %71 = math.exp %70 : vector<8x8xf32>
    %cst_31 = arith.constant dense<0.000000e+00> : vector<8xf32>
    %72 = vector.multi_reduction <add>, %71, %cst_31 [1] : vector<8x8xf32> to vector<8xf32>
    %73 = vector.shape_cast %72 : vector<8xf32> to vector<8x1xf32>
    %74 = tpu.reciprocal %73 {approx = true} : vector<8x1xf32> -> vector<8x1xf32>
    %75 = vector.broadcast %74 : vector<8x1xf32> to vector<8x8xf32>
    %76 = arith.mulf %71, %75 : vector<8x8xf32>
    %cst_32 = arith.constant dense<0.000000e+00> : vector<8x8xf32>
    %77 = tpu.matmul %76, %64, %cst_32 {dimension_numbers = #tpu.dot_dimension_numbers<[1], [0], [0], [1], [0, 0, 1, 1], [], []>} : vector<8x8xf32>, vector<8x8xf32>, vector<8x8xf32> -> vector<8x8xf32>
    %78 = vector.extract_strided_slice %41 {offsets = [8, 0], sizes = [8, 32], strides = [1, 1]} : vector<32x32xf32> to vector<8x32xf32>
    %cst_33 = arith.constant dense<0.000000e+00> : vector<8x32xf32>
    %79 = tpu.matmul %77, %78, %cst_33 {dimension_numbers = #tpu.dot_dimension_numbers<[1], [0], [0], [1], [0, 0, 1, 1], [], []>} : vector<8x8xf32>, vector<8x32xf32>, vector<8x32xf32> -> vector<8x32xf32>
    %80 = arith.addf %61, %79 : vector<8x32xf32>
    %81 = vector.extract_strided_slice %39 {offsets = [0, 16], sizes = [8, 8], strides = [1, 1]} : vector<8x96xf32> to vector<8x8xf32>
    %82 = vector.extract_strided_slice %39 {offsets = [0, 48], sizes = [8, 8], strides = [1, 1]} : vector<8x96xf32> to vector<8x8xf32>
    %83 = vector.extract_strided_slice %39 {offsets = [0, 80], sizes = [8, 8], strides = [1, 1]} : vector<8x96xf32> to vector<8x8xf32>
    "tpu.trace_start"() <{level = 10 : i32, message = "qd,kd->qk"}> : () -> ()
    %cst_34 = arith.constant dense<0.000000e+00> : vector<8x8xf32>
    %84 = tpu.matmul %81, %82, %cst_34 {dimension_numbers = #tpu.dot_dimension_numbers<[1], [1], [0], [0], [0, 0, 1, 0], [], []>} : vector<8x8xf32>, vector<8x8xf32>, vector<8x8xf32> -> vector<8x8xf32>
    "tpu.trace_stop"() : () -> ()
    %85 = arith.addf %84, %6 : vector<8x8xf32>
    %cst_35 = arith.constant dense<0xFF800000> : vector<8xf32>
    %86 = vector.multi_reduction <maximumf>, %85, %cst_35 [1] : vector<8x8xf32> to vector<8xf32>
    %87 = vector.shape_cast %86 : vector<8xf32> to vector<8x1xf32>
    %88 = vector.broadcast %87 : vector<8x1xf32> to vector<8x8xf32>
    %89 = arith.subf %85, %88 : vector<8x8xf32>
    %90 = math.exp %89 : vector<8x8xf32>
    %cst_36 = arith.constant dense<0.000000e+00> : vector<8xf32>
    %91 = vector.multi_reduction <add>, %90, %cst_36 [1] : vector<8x8xf32> to vector<8xf32>
    %92 = vector.shape_cast %91 : vector<8xf32> to vector<8x1xf32>
    %93 = tpu.reciprocal %92 {approx = true} : vector<8x1xf32> -> vector<8x1xf32>
    %94 = vector.broadcast %93 : vector<8x1xf32> to vector<8x8xf32>
    %95 = arith.mulf %90, %94 : vector<8x8xf32>
    %cst_37 = arith.constant dense<0.000000e+00> : vector<8x8xf32>
    %96 = tpu.matmul %95, %83, %cst_37 {dimension_numbers = #tpu.dot_dimension_numbers<[1], [0], [0], [1], [0, 0, 1, 1], [], []>} : vector<8x8xf32>, vector<8x8xf32>, vector<8x8xf32> -> vector<8x8xf32>
    %97 = vector.extract_strided_slice %41 {offsets = [16, 0], sizes = [8, 32], strides = [1, 1]} : vector<32x32xf32> to vector<8x32xf32>
    %cst_38 = arith.constant dense<0.000000e+00> : vector<8x32xf32>
    %98 = tpu.matmul %96, %97, %cst_38 {dimension_numbers = #tpu.dot_dimension_numbers<[1], [0], [0], [1], [0, 0, 1, 1], [], []>} : vector<8x8xf32>, vector<8x32xf32>, vector<8x32xf32> -> vector<8x32xf32>
    %99 = arith.addf %80, %98 : vector<8x32xf32>
    %100 = vector.extract_strided_slice %39 {offsets = [0, 24], sizes = [8, 8], strides = [1, 1]} : vector<8x96xf32> to vector<8x8xf32>
    %101 = vector.extract_strided_slice %39 {offsets = [0, 56], sizes = [8, 8], strides = [1, 1]} : vector<8x96xf32> to vector<8x8xf32>
    %102 = vector.extract_strided_slice %39 {offsets = [0, 88], sizes = [8, 8], strides = [1, 1]} : vector<8x96xf32> to vector<8x8xf32>
    "tpu.trace_start"() <{level = 10 : i32, message = "qd,kd->qk"}> : () -> ()
    %cst_39 = arith.constant dense<0.000000e+00> : vector<8x8xf32>
    %103 = tpu.matmul %100, %101, %cst_39 {dimension_numbers = #tpu.dot_dimension_numbers<[1], [1], [0], [0], [0, 0, 1, 0], [], []>} : vector<8x8xf32>, vector<8x8xf32>, vector<8x8xf32> -> vector<8x8xf32>
    "tpu.trace_stop"() : () -> ()
    %104 = arith.addf %103, %6 : vector<8x8xf32>
    %cst_40 = arith.constant dense<0xFF800000> : vector<8xf32>
    %105 = vector.multi_reduction <maximumf>, %104, %cst_40 [1] : vector<8x8xf32> to vector<8xf32>
    %106 = vector.shape_cast %105 : vector<8xf32> to vector<8x1xf32>
    %107 = vector.broadcast %106 : vector<8x1xf32> to vector<8x8xf32>
    %108 = arith.subf %104, %107 : vector<8x8xf32>
    %109 = math.exp %108 : vector<8x8xf32>
    %cst_41 = arith.constant dense<0.000000e+00> : vector<8xf32>
    %110 = vector.multi_reduction <add>, %109, %cst_41 [1] : vector<8x8xf32> to vector<8xf32>
    %111 = vector.shape_cast %110 : vector<8xf32> to vector<8x1xf32>
    %112 = tpu.reciprocal %111 {approx = true} : vector<8x1xf32> -> vector<8x1xf32>
    %113 = vector.broadcast %112 : vector<8x1xf32> to vector<8x8xf32>
    %114 = arith.mulf %109, %113 : vector<8x8xf32>
    %cst_42 = arith.constant dense<0.000000e+00> : vector<8x8xf32>
    %115 = tpu.matmul %114, %102, %cst_42 {dimension_numbers = #tpu.dot_dimension_numbers<[1], [0], [0], [1], [0, 0, 1, 1], [], []>} : vector<8x8xf32>, vector<8x8xf32>, vector<8x8xf32> -> vector<8x8xf32>
    %116 = vector.extract_strided_slice %41 {offsets = [24, 0], sizes = [8, 32], strides = [1, 1]} : vector<32x32xf32> to vector<8x32xf32>
    %cst_43 = arith.constant dense<0.000000e+00> : vector<8x32xf32>
    %117 = tpu.matmul %115, %116, %cst_43 {dimension_numbers = #tpu.dot_dimension_numbers<[1], [0], [0], [1], [0, 0, 1, 1], [], []>} : vector<8x8xf32>, vector<8x32xf32>, vector<8x32xf32> -> vector<8x32xf32>
    %118 = arith.addf %99, %117 : vector<8x32xf32>
    %119 = arith.addf %0, %118 : vector<8x32xf32>
    %c0_44 = arith.constant 0 : index
    %c0_45 = arith.constant 0 : index
    %c0_46 = arith.constant 0 : index
    %120 = vector.load %arg7[%c0_44, %c0_45, %c0_46] : memref<6x1x32xf32, #tpu.memory_space<vmem>>, vector<1x1x32xf32>
    %121 = vector.shape_cast %120 : vector<1x1x32xf32> to vector<1x32xf32>
    %122 = vector.broadcast %121 : vector<1x32xf32> to vector<8x32xf32>
    %123 = arith.addf %119, %122 : vector<8x32xf32>
    %c0_47 = arith.constant 0 : index
    %c0_48 = arith.constant 0 : index
    %c0_49 = arith.constant 0 : index
    %124 = vector.load %arg8[%c0_47, %c0_48, %c0_49] : memref<6x1x32xf32, #tpu.memory_space<vmem>>, vector<1x1x32xf32>
    %125 = vector.shape_cast %124 : vector<1x1x32xf32> to vector<1x32xf32>
    %c0_50 = arith.constant 0 : index
    %c0_51 = arith.constant 0 : index
    %c0_52 = arith.constant 0 : index
    %126 = vector.load %arg9[%c0_50, %c0_51, %c0_52] : memref<6x1x32xf32, #tpu.memory_space<vmem>>, vector<1x1x32xf32>
    %127 = vector.shape_cast %126 : vector<1x1x32xf32> to vector<1x32xf32>
    %cst_53 = arith.constant dense<0.000000e+00> : vector<8xf32>
    %128 = vector.multi_reduction <add>, %123, %cst_53 [1] : vector<8x32xf32> to vector<8xf32>
    %129 = vector.shape_cast %128 : vector<8xf32> to vector<8x1xf32>
    %cst_54 = arith.constant 3.200000e+01 : f32
    %130 = vector.broadcast %cst_54 : f32 to vector<8x1xf32>
    %131 = arith.divf %129, %130 : vector<8x1xf32>
    %132 = vector.broadcast %131 : vector<8x1xf32> to vector<8x32xf32>
    %133 = arith.subf %123, %132 : vector<8x32xf32>
    %134 = arith.mulf %133, %133 : vector<8x32xf32>
    %cst_55 = arith.constant dense<0.000000e+00> : vector<8xf32>
    %135 = vector.multi_reduction <add>, %134, %cst_55 [1] : vector<8x32xf32> to vector<8xf32>
    %136 = vector.shape_cast %135 : vector<8xf32> to vector<8x1xf32>
    %cst_56 = arith.constant 3.200000e+01 : f32
    %137 = vector.broadcast %cst_56 : f32 to vector<8x1xf32>
    %138 = arith.divf %136, %137 : vector<8x1xf32>
    %139 = vector.broadcast %131 : vector<8x1xf32> to vector<8x32xf32>
    %140 = arith.subf %123, %139 : vector<8x32xf32>
    %cst_57 = arith.constant 9.99999974E-6 : f32
    %141 = vector.broadcast %cst_57 : f32 to vector<8x1xf32>
    %142 = arith.addf %138, %141 : vector<8x1xf32>
    %143 = math.rsqrt %142 : vector<8x1xf32>
    %144 = vector.broadcast %143 : vector<8x1xf32> to vector<8x32xf32>
    %145 = arith.mulf %140, %144 : vector<8x32xf32>
    %146 = vector.broadcast %125 : vector<1x32xf32> to vector<8x32xf32>
    %147 = arith.mulf %145, %146 : vector<8x32xf32>
    %148 = vector.broadcast %127 : vector<1x32xf32> to vector<8x32xf32>
    %149 = arith.addf %147, %148 : vector<8x32xf32>
    %c0_58 = arith.constant 0 : index
    %c0_59 = arith.constant 0 : index
    %c0_60 = arith.constant 0 : index
    %150 = vector.load %arg10[%c0_58, %c0_59, %c0_60] : memref<6x32x128xf32, #tpu.memory_space<vmem>>, vector<1x32x128xf32>
    %151 = vector.shape_cast %150 : vector<1x32x128xf32> to vector<32x128xf32>
    %cst_61 = arith.constant dense<0.000000e+00> : vector<8x128xf32>
    %152 = tpu.matmul %149, %151, %cst_61 {dimension_numbers = #tpu.dot_dimension_numbers<[1], [0], [0], [1], [0, 0, 1, 1], [], []>} : vector<8x32xf32>, vector<32x128xf32>, vector<8x128xf32> -> vector<8x128xf32>
    %c0_62 = arith.constant 0 : index
    %c0_63 = arith.constant 0 : index
    %c0_64 = arith.constant 0 : index
    %153 = vector.load %arg11[%c0_62, %c0_63, %c0_64] : memref<6x1x128xf32, #tpu.memory_space<vmem>>, vector<1x1x128xf32>
    %154 = vector.shape_cast %153 : vector<1x1x128xf32> to vector<1x128xf32>
    %155 = vector.broadcast %154 : vector<1x128xf32> to vector<8x128xf32>
    %156 = arith.addf %152, %155 : vector<8x128xf32>
    %cst_65 = arith.constant 5.000000e-01 : f32
    %157 = vector.broadcast %cst_65 : f32 to vector<8x128xf32>
    %158 = arith.mulf %157, %156 : vector<8x128xf32>
    %cst_66 = arith.constant 4.471500e-02 : f32
    %159 = vector.broadcast %cst_66 : f32 to vector<8x128xf32>
    %160 = arith.mulf %159, %156 : vector<8x128xf32>
    %161 = arith.mulf %160, %156 : vector<8x128xf32>
    %162 = arith.mulf %161, %156 : vector<8x128xf32>
    %163 = arith.addf %156, %162 : vector<8x128xf32>
    %cst_67 = arith.constant 0.797884583 : f32
    %164 = vector.broadcast %cst_67 : f32 to vector<8x128xf32>
    %165 = arith.mulf %164, %163 : vector<8x128xf32>
    %166 = math.tanh %165 : vector<8x128xf32>
    %cst_68 = arith.constant 1.000000e+00 : f32
    %167 = vector.broadcast %cst_68 : f32 to vector<8x128xf32>
    %168 = arith.addf %167, %166 : vector<8x128xf32>
    %169 = arith.mulf %158, %168 : vector<8x128xf32>
    %c0_69 = arith.constant 0 : index
    %c0_70 = arith.constant 0 : index
    %c0_71 = arith.constant 0 : index
    %170 = vector.load %arg12[%c0_69, %c0_70, %c0_71] : memref<6x128x32xf32, #tpu.memory_space<vmem>>, vector<1x128x32xf32>
    %171 = vector.shape_cast %170 : vector<1x128x32xf32> to vector<128x32xf32>
    %cst_72 = arith.constant dense<0.000000e+00> : vector<8x32xf32>
    %172 = tpu.matmul %169, %171, %cst_72 {dimension_numbers = #tpu.dot_dimension_numbers<[1], [0], [0], [1], [0, 0, 1, 1], [], []>} : vector<8x128xf32>, vector<128x32xf32>, vector<8x32xf32> -> vector<8x32xf32>
    %173 = arith.addf %123, %172 : vector<8x32xf32>
    %c0_73 = arith.constant 0 : index
    %c0_74 = arith.constant 0 : index
    %c0_75 = arith.constant 0 : index
    %174 = vector.load %arg13[%c0_73, %c0_74, %c0_75] : memref<6x1x32xf32, #tpu.memory_space<vmem>>, vector<1x1x32xf32>
    %175 = vector.shape_cast %174 : vector<1x1x32xf32> to vector<1x32xf32>
    %176 = vector.broadcast %175 : vector<1x32xf32> to vector<8x32xf32>
    %177 = arith.addf %173, %176 : vector<8x32xf32>
    %c1 = arith.constant 1 : index
    %c0_76 = arith.constant 0 : index
    %c0_77 = arith.constant 0 : index
    %178 = vector.load %arg2[%c1, %c0_76, %c0_77] : memref<6x1x32xf32, #tpu.memory_space<vmem>>, vector<1x1x32xf32>
    %179 = vector.shape_cast %178 : vector<1x1x32xf32> to vector<1x32xf32>
    %c1_78 = arith.constant 1 : index
    %c0_79 = arith.constant 0 : index
    %c0_80 = arith.constant 0 : index
    %180 = vector.load %arg3[%c1_78, %c0_79, %c0_80] : memref<6x1x32xf32, #tpu.memory_space<vmem>>, vector<1x1x32xf32>
    %181 = vector.shape_cast %180 : vector<1x1x32xf32> to vector<1x32xf32>
    %cst_81 = arith.constant dense<0.000000e+00> : vector<8xf32>
    %182 = vector.multi_reduction <add>, %177, %cst_81 [1] : vector<8x32xf32> to vector<8xf32>
    %183 = vector.shape_cast %182 : vector<8xf32> to vector<8x1xf32>
    %cst_82 = arith.constant 3.200000e+01 : f32
    %184 = vector.broadcast %cst_82 : f32 to vector<8x1xf32>
    %185 = arith.divf %183, %184 : vector<8x1xf32>
    %186 = vector.broadcast %185 : vector<8x1xf32> to vector<8x32xf32>
    %187 = arith.subf %177, %186 : vector<8x32xf32>
    %188 = arith.mulf %187, %187 : vector<8x32xf32>
    %cst_83 = arith.constant dense<0.000000e+00> : vector<8xf32>
    %189 = vector.multi_reduction <add>, %188, %cst_83 [1] : vector<8x32xf32> to vector<8xf32>
    %190 = vector.shape_cast %189 : vector<8xf32> to vector<8x1xf32>
    %cst_84 = arith.constant 3.200000e+01 : f32
    %191 = vector.broadcast %cst_84 : f32 to vector<8x1xf32>
    %192 = arith.divf %190, %191 : vector<8x1xf32>
    %193 = vector.broadcast %185 : vector<8x1xf32> to vector<8x32xf32>
    %194 = arith.subf %177, %193 : vector<8x32xf32>
    %cst_85 = arith.constant 9.99999974E-6 : f32
    %195 = vector.broadcast %cst_85 : f32 to vector<8x1xf32>
    %196 = arith.addf %192, %195 : vector<8x1xf32>
    %197 = math.rsqrt %196 : vector<8x1xf32>
    %198 = vector.broadcast %197 : vector<8x1xf32> to vector<8x32xf32>
    %199 = arith.mulf %194, %198 : vector<8x32xf32>
    %200 = vector.broadcast %179 : vector<1x32xf32> to vector<8x32xf32>
    %201 = arith.mulf %199, %200 : vector<8x32xf32>
    %202 = vector.broadcast %181 : vector<1x32xf32> to vector<8x32xf32>
    %203 = arith.addf %201, %202 : vector<8x32xf32>
    %c1_86 = arith.constant 1 : index
    %c0_87 = arith.constant 0 : index
    %c0_88 = arith.constant 0 : index
    %204 = vector.load %arg4[%c1_86, %c0_87, %c0_88] : memref<6x32x96xf32, #tpu.memory_space<vmem>>, vector<1x32x96xf32>
    %205 = vector.shape_cast %204 : vector<1x32x96xf32> to vector<32x96xf32>
    %cst_89 = arith.constant dense<0.000000e+00> : vector<8x96xf32>
    %206 = tpu.matmul %203, %205, %cst_89 {dimension_numbers = #tpu.dot_dimension_numbers<[1], [0], [0], [1], [0, 0, 1, 1], [], []>} : vector<8x32xf32>, vector<32x96xf32>, vector<8x96xf32> -> vector<8x96xf32>
    %c1_90 = arith.constant 1 : index
    %c0_91 = arith.constant 0 : index
    %c0_92 = arith.constant 0 : index
    %207 = vector.load %arg5[%c1_90, %c0_91, %c0_92] : memref<6x1x96xf32, #tpu.memory_space<vmem>>, vector<1x1x96xf32>
    %208 = vector.shape_cast %207 : vector<1x1x96xf32> to vector<1x96xf32>
    %209 = vector.broadcast %208 : vector<1x96xf32> to vector<8x96xf32>
    %210 = arith.addf %206, %209 : vector<8x96xf32>
    %c1_93 = arith.constant 1 : index
    %c0_94 = arith.constant 0 : index
    %c0_95 = arith.constant 0 : index
    %211 = vector.load %arg6[%c1_93, %c0_94, %c0_95] : memref<6x32x32xf32, #tpu.memory_space<vmem>>, vector<1x32x32xf32>
    %212 = vector.shape_cast %211 : vector<1x32x32xf32> to vector<32x32xf32>
    %cst_96 = arith.constant 0.000000e+00 : f32
    %213 = vector.broadcast %cst_96 : f32 to vector<8x32xf32>
    %214 = vector.extract_strided_slice %210 {offsets = [0, 0], sizes = [8, 8], strides = [1, 1]} : vector<8x96xf32> to vector<8x8xf32>
    %215 = vector.extract_strided_slice %210 {offsets = [0, 32], sizes = [8, 8], strides = [1, 1]} : vector<8x96xf32> to vector<8x8xf32>
    %216 = vector.extract_strided_slice %210 {offsets = [0, 64], sizes = [8, 8], strides = [1, 1]} : vector<8x96xf32> to vector<8x8xf32>
    "tpu.trace_start"() <{level = 10 : i32, message = "qd,kd->qk"}> : () -> ()
    %cst_97 = arith.constant dense<0.000000e+00> : vector<8x8xf32>
    %217 = tpu.matmul %214, %215, %cst_97 {dimension_numbers = #tpu.dot_dimension_numbers<[1], [1], [0], [0], [0, 0, 1, 0], [], []>} : vector<8x8xf32>, vector<8x8xf32>, vector<8x8xf32> -> vector<8x8xf32>
    "tpu.trace_stop"() : () -> ()
    %218 = arith.addf %217, %6 : vector<8x8xf32>
    %cst_98 = arith.constant dense<0xFF800000> : vector<8xf32>
    %219 = vector.multi_reduction <maximumf>, %218, %cst_98 [1] : vector<8x8xf32> to vector<8xf32>
    %220 = vector.shape_cast %219 : vector<8xf32> to vector<8x1xf32>
    %221 = vector.broadcast %220 : vector<8x1xf32> to vector<8x8xf32>
    %222 = arith.subf %218, %221 : vector<8x8xf32>
    %223 = math.exp %222 : vector<8x8xf32>
    %cst_99 = arith.constant dense<0.000000e+00> : vector<8xf32>
    %224 = vector.multi_reduction <add>, %223, %cst_99 [1] : vector<8x8xf32> to vector<8xf32>
    %225 = vector.shape_cast %224 : vector<8xf32> to vector<8x1xf32>
    %226 = tpu.reciprocal %225 {approx = true} : vector<8x1xf32> -> vector<8x1xf32>
    %227 = vector.broadcast %226 : vector<8x1xf32> to vector<8x8xf32>
    %228 = arith.mulf %223, %227 : vector<8x8xf32>
    %cst_100 = arith.constant dense<0.000000e+00> : vector<8x8xf32>
    %229 = tpu.matmul %228, %216, %cst_100 {dimension_numbers = #tpu.dot_dimension_numbers<[1], [0], [0], [1], [0, 0, 1, 1], [], []>} : vector<8x8xf32>, vector<8x8xf32>, vector<8x8xf32> -> vector<8x8xf32>
    %230 = vector.extract_strided_slice %212 {offsets = [0, 0], sizes = [8, 32], strides = [1, 1]} : vector<32x32xf32> to vector<8x32xf32>
    %cst_101 = arith.constant dense<0.000000e+00> : vector<8x32xf32>
    %231 = tpu.matmul %229, %230, %cst_101 {dimension_numbers = #tpu.dot_dimension_numbers<[1], [0], [0], [1], [0, 0, 1, 1], [], []>} : vector<8x8xf32>, vector<8x32xf32>, vector<8x32xf32> -> vector<8x32xf32>
    %232 = arith.addf %213, %231 : vector<8x32xf32>
    %233 = vector.extract_strided_slice %210 {offsets = [0, 8], sizes = [8, 8], strides = [1, 1]} : vector<8x96xf32> to vector<8x8xf32>
    %234 = vector.extract_strided_slice %210 {offsets = [0, 40], sizes = [8, 8], strides = [1, 1]} : vector<8x96xf32> to vector<8x8xf32>
    %235 = vector.extract_strided_slice %210 {offsets = [0, 72], sizes = [8, 8], strides = [1, 1]} : vector<8x96xf32> to vector<8x8xf32>
    "tpu.trace_start"() <{level = 10 : i32, message = "qd,kd->qk"}> : () -> ()
    %cst_102 = arith.constant dense<0.000000e+00> : vector<8x8xf32>
    %236 = tpu.matmul %233, %234, %cst_102 {dimension_numbers = #tpu.dot_dimension_numbers<[1], [1], [0], [0], [0, 0, 1, 0], [], []>} : vector<8x8xf32>, vector<8x8xf32>, vector<8x8xf32> -> vector<8x8xf32>
    "tpu.trace_stop"() : () -> ()
    %237 = arith.addf %236, %6 : vector<8x8xf32>
    %cst_103 = arith.constant dense<0xFF800000> : vector<8xf32>
    %238 = vector.multi_reduction <maximumf>, %237, %cst_103 [1] : vector<8x8xf32> to vector<8xf32>
    %239 = vector.shape_cast %238 : vector<8xf32> to vector<8x1xf32>
    %240 = vector.broadcast %239 : vector<8x1xf32> to vector<8x8xf32>
    %241 = arith.subf %237, %240 : vector<8x8xf32>
    %242 = math.exp %241 : vector<8x8xf32>
    %cst_104 = arith.constant dense<0.000000e+00> : vector<8xf32>
    %243 = vector.multi_reduction <add>, %242, %cst_104 [1] : vector<8x8xf32> to vector<8xf32>
    %244 = vector.shape_cast %243 : vector<8xf32> to vector<8x1xf32>
    %245 = tpu.reciprocal %244 {approx = true} : vector<8x1xf32> -> vector<8x1xf32>
    %246 = vector.broadcast %245 : vector<8x1xf32> to vector<8x8xf32>
    %247 = arith.mulf %242, %246 : vector<8x8xf32>
    %cst_105 = arith.constant dense<0.000000e+00> : vector<8x8xf32>
    %248 = tpu.matmul %247, %235, %cst_105 {dimension_numbers = #tpu.dot_dimension_numbers<[1], [0], [0], [1], [0, 0, 1, 1], [], []>} : vector<8x8xf32>, vector<8x8xf32>, vector<8x8xf32> -> vector<8x8xf32>
    %249 = vector.extract_strided_slice %212 {offsets = [8, 0], sizes = [8, 32], strides = [1, 1]} : vector<32x32xf32> to vector<8x32xf32>
    %cst_106 = arith.constant dense<0.000000e+00> : vector<8x32xf32>
    %250 = tpu.matmul %248, %249, %cst_106 {dimension_numbers = #tpu.dot_dimension_numbers<[1], [0], [0], [1], [0, 0, 1, 1], [], []>} : vector<8x8xf32>, vector<8x32xf32>, vector<8x32xf32> -> vector<8x32xf32>
    %251 = arith.addf %232, %250 : vector<8x32xf32>
    %252 = vector.extract_strided_slice %210 {offsets = [0, 16], sizes = [8, 8], strides = [1, 1]} : vector<8x96xf32> to vector<8x8xf32>
    %253 = vector.extract_strided_slice %210 {offsets = [0, 48], sizes = [8, 8], strides = [1, 1]} : vector<8x96xf32> to vector<8x8xf32>
    %254 = vector.extract_strided_slice %210 {offsets = [0, 80], sizes = [8, 8], strides = [1, 1]} : vector<8x96xf32> to vector<8x8xf32>
    "tpu.trace_start"() <{level = 10 : i32, message = "qd,kd->qk"}> : () -> ()
    %cst_107 = arith.constant dense<0.000000e+00> : vector<8x8xf32>
    %255 = tpu.matmul %252, %253, %cst_107 {dimension_numbers = #tpu.dot_dimension_numbers<[1], [1], [0], [0], [0, 0, 1, 0], [], []>} : vector<8x8xf32>, vector<8x8xf32>, vector<8x8xf32> -> vector<8x8xf32>
    "tpu.trace_stop"() : () -> ()
    %256 = arith.addf %255, %6 : vector<8x8xf32>
    %cst_108 = arith.constant dense<0xFF800000> : vector<8xf32>
    %257 = vector.multi_reduction <maximumf>, %256, %cst_108 [1] : vector<8x8xf32> to vector<8xf32>
    %258 = vector.shape_cast %257 : vector<8xf32> to vector<8x1xf32>
    %259 = vector.broadcast %258 : vector<8x1xf32> to vector<8x8xf32>
    %260 = arith.subf %256, %259 : vector<8x8xf32>
    %261 = math.exp %260 : vector<8x8xf32>
    %cst_109 = arith.constant dense<0.000000e+00> : vector<8xf32>
    %262 = vector.multi_reduction <add>, %261, %cst_109 [1] : vector<8x8xf32> to vector<8xf32>
    %263 = vector.shape_cast %262 : vector<8xf32> to vector<8x1xf32>
    %264 = tpu.reciprocal %263 {approx = true} : vector<8x1xf32> -> vector<8x1xf32>
    %265 = vector.broadcast %264 : vector<8x1xf32> to vector<8x8xf32>
    %266 = arith.mulf %261, %265 : vector<8x8xf32>
    %cst_110 = arith.constant dense<0.000000e+00> : vector<8x8xf32>
    %267 = tpu.matmul %266, %254, %cst_110 {dimension_numbers = #tpu.dot_dimension_numbers<[1], [0], [0], [1], [0, 0, 1, 1], [], []>} : vector<8x8xf32>, vector<8x8xf32>, vector<8x8xf32> -> vector<8x8xf32>
    %268 = vector.extract_strided_slice %212 {offsets = [16, 0], sizes = [8, 32], strides = [1, 1]} : vector<32x32xf32> to vector<8x32xf32>
    %cst_111 = arith.constant dense<0.000000e+00> : vector<8x32xf32>
    %269 = tpu.matmul %267, %268, %cst_111 {dimension_numbers = #tpu.dot_dimension_numbers<[1], [0], [0], [1], [0, 0, 1, 1], [], []>} : vector<8x8xf32>, vector<8x32xf32>, vector<8x32xf32> -> vector<8x32xf32>
    %270 = arith.addf %251, %269 : vector<8x32xf32>
    %271 = vector.extract_strided_slice %210 {offsets = [0, 24], sizes = [8, 8], strides = [1, 1]} : vector<8x96xf32> to vector<8x8xf32>
    %272 = vector.extract_strided_slice %210 {offsets = [0, 56], sizes = [8, 8], strides = [1, 1]} : vector<8x96xf32> to vector<8x8xf32>
    %273 = vector.extract_strided_slice %210 {offsets = [0, 88], sizes = [8, 8], strides = [1, 1]} : vector<8x96xf32> to vector<8x8xf32>
    "tpu.trace_start"() <{level = 10 : i32, message = "qd,kd->qk"}> : () -> ()
    %cst_112 = arith.constant dense<0.000000e+00> : vector<8x8xf32>
    %274 = tpu.matmul %271, %272, %cst_112 {dimension_numbers = #tpu.dot_dimension_numbers<[1], [1], [0], [0], [0, 0, 1, 0], [], []>} : vector<8x8xf32>, vector<8x8xf32>, vector<8x8xf32> -> vector<8x8xf32>
    "tpu.trace_stop"() : () -> ()
    %275 = arith.addf %274, %6 : vector<8x8xf32>
    %cst_113 = arith.constant dense<0xFF800000> : vector<8xf32>
    %276 = vector.multi_reduction <maximumf>, %275, %cst_113 [1] : vector<8x8xf32> to vector<8xf32>
    %277 = vector.shape_cast %276 : vector<8xf32> to vector<8x1xf32>
    %278 = vector.broadcast %277 : vector<8x1xf32> to vector<8x8xf32>
    %279 = arith.subf %275, %278 : vector<8x8xf32>
    %280 = math.exp %279 : vector<8x8xf32>
    %cst_114 = arith.constant dense<0.000000e+00> : vector<8xf32>
    %281 = vector.multi_reduction <add>, %280, %cst_114 [1] : vector<8x8xf32> to vector<8xf32>
    %282 = vector.shape_cast %281 : vector<8xf32> to vector<8x1xf32>
    %283 = tpu.reciprocal %282 {approx = true} : vector<8x1xf32> -> vector<8x1xf32>
    %284 = vector.broadcast %283 : vector<8x1xf32> to vector<8x8xf32>
    %285 = arith.mulf %280, %284 : vector<8x8xf32>
    %cst_115 = arith.constant dense<0.000000e+00> : vector<8x8xf32>
    %286 = tpu.matmul %285, %273, %cst_115 {dimension_numbers = #tpu.dot_dimension_numbers<[1], [0], [0], [1], [0, 0, 1, 1], [], []>} : vector<8x8xf32>, vector<8x8xf32>, vector<8x8xf32> -> vector<8x8xf32>
    %287 = vector.extract_strided_slice %212 {offsets = [24, 0], sizes = [8, 32], strides = [1, 1]} : vector<32x32xf32> to vector<8x32xf32>
    %cst_116 = arith.constant dense<0.000000e+00> : vector<8x32xf32>
    %288 = tpu.matmul %286, %287, %cst_116 {dimension_numbers = #tpu.dot_dimension_numbers<[1], [0], [0], [1], [0, 0, 1, 1], [], []>} : vector<8x8xf32>, vector<8x32xf32>, vector<8x32xf32> -> vector<8x32xf32>
    %289 = arith.addf %270, %288 : vector<8x32xf32>
    %290 = arith.addf %177, %289 : vector<8x32xf32>
    %c1_117 = arith.constant 1 : index
    %c0_118 = arith.constant 0 : index
    %c0_119 = arith.constant 0 : index
    %291 = vector.load %arg7[%c1_117, %c0_118, %c0_119] : memref<6x1x32xf32, #tpu.memory_space<vmem>>, vector<1x1x32xf32>
    %292 = vector.shape_cast %291 : vector<1x1x32xf32> to vector<1x32xf32>
    %293 = vector.broadcast %292 : vector<1x32xf32> to vector<8x32xf32>
    %294 = arith.addf %290, %293 : vector<8x32xf32>
    %c1_120 = arith.constant 1 : index
    %c0_121 = arith.constant 0 : index
    %c0_122 = arith.constant 0 : index
    %295 = vector.load %arg8[%c1_120, %c0_121, %c0_122] : memref<6x1x32xf32, #tpu.memory_space<vmem>>, vector<1x1x32xf32>
    %296 = vector.shape_cast %295 : vector<1x1x32xf32> to vector<1x32xf32>
    %c1_123 = arith.constant 1 : index
    %c0_124 = arith.constant 0 : index
    %c0_125 = arith.constant 0 : index
    %297 = vector.load %arg9[%c1_123, %c0_124, %c0_125] : memref<6x1x32xf32, #tpu.memory_space<vmem>>, vector<1x1x32xf32>
    %298 = vector.shape_cast %297 : vector<1x1x32xf32> to vector<1x32xf32>
    %cst_126 = arith.constant dense<0.000000e+00> : vector<8xf32>
    %299 = vector.multi_reduction <add>, %294, %cst_126 [1] : vector<8x32xf32> to vector<8xf32>
    %300 = vector.shape_cast %299 : vector<8xf32> to vector<8x1xf32>
    %cst_127 = arith.constant 3.200000e+01 : f32
    %301 = vector.broadcast %cst_127 : f32 to vector<8x1xf32>
    %302 = arith.divf %300, %301 : vector<8x1xf32>
    %303 = vector.broadcast %302 : vector<8x1xf32> to vector<8x32xf32>
    %304 = arith.subf %294, %303 : vector<8x32xf32>
    %305 = arith.mulf %304, %304 : vector<8x32xf32>
    %cst_128 = arith.constant dense<0.000000e+00> : vector<8xf32>
    %306 = vector.multi_reduction <add>, %305, %cst_128 [1] : vector<8x32xf32> to vector<8xf32>
    %307 = vector.shape_cast %306 : vector<8xf32> to vector<8x1xf32>
    %cst_129 = arith.constant 3.200000e+01 : f32
    %308 = vector.broadcast %cst_129 : f32 to vector<8x1xf32>
    %309 = arith.divf %307, %308 : vector<8x1xf32>
    %310 = vector.broadcast %302 : vector<8x1xf32> to vector<8x32xf32>
    %311 = arith.subf %294, %310 : vector<8x32xf32>
    %cst_130 = arith.constant 9.99999974E-6 : f32
    %312 = vector.broadcast %cst_130 : f32 to vector<8x1xf32>
    %313 = arith.addf %309, %312 : vector<8x1xf32>
    %314 = math.rsqrt %313 : vector<8x1xf32>
    %315 = vector.broadcast %314 : vector<8x1xf32> to vector<8x32xf32>
    %316 = arith.mulf %311, %315 : vector<8x32xf32>
    %317 = vector.broadcast %296 : vector<1x32xf32> to vector<8x32xf32>
    %318 = arith.mulf %316, %317 : vector<8x32xf32>
    %319 = vector.broadcast %298 : vector<1x32xf32> to vector<8x32xf32>
    %320 = arith.addf %318, %319 : vector<8x32xf32>
    %c1_131 = arith.constant 1 : index
    %c0_132 = arith.constant 0 : index
    %c0_133 = arith.constant 0 : index
    %321 = vector.load %arg10[%c1_131, %c0_132, %c0_133] : memref<6x32x128xf32, #tpu.memory_space<vmem>>, vector<1x32x128xf32>
    %322 = vector.shape_cast %321 : vector<1x32x128xf32> to vector<32x128xf32>
    %cst_134 = arith.constant dense<0.000000e+00> : vector<8x128xf32>
    %323 = tpu.matmul %320, %322, %cst_134 {dimension_numbers = #tpu.dot_dimension_numbers<[1], [0], [0], [1], [0, 0, 1, 1], [], []>} : vector<8x32xf32>, vector<32x128xf32>, vector<8x128xf32> -> vector<8x128xf32>
    %c1_135 = arith.constant 1 : index
    %c0_136 = arith.constant 0 : index
    %c0_137 = arith.constant 0 : index
    %324 = vector.load %arg11[%c1_135, %c0_136, %c0_137] : memref<6x1x128xf32, #tpu.memory_space<vmem>>, vector<1x1x128xf32>
    %325 = vector.shape_cast %324 : vector<1x1x128xf32> to vector<1x128xf32>
    %326 = vector.broadcast %325 : vector<1x128xf32> to vector<8x128xf32>
    %327 = arith.addf %323, %326 : vector<8x128xf32>
    %cst_138 = arith.constant 5.000000e-01 : f32
    %328 = vector.broadcast %cst_138 : f32 to vector<8x128xf32>
    %329 = arith.mulf %328, %327 : vector<8x128xf32>
    %cst_139 = arith.constant 4.471500e-02 : f32
    %330 = vector.broadcast %cst_139 : f32 to vector<8x128xf32>
    %331 = arith.mulf %330, %327 : vector<8x128xf32>
    %332 = arith.mulf %331, %327 : vector<8x128xf32>
    %333 = arith.mulf %332, %327 : vector<8x128xf32>
    %334 = arith.addf %327, %333 : vector<8x128xf32>
    %cst_140 = arith.constant 0.797884583 : f32
    %335 = vector.broadcast %cst_140 : f32 to vector<8x128xf32>
    %336 = arith.mulf %335, %334 : vector<8x128xf32>
    %337 = math.tanh %336 : vector<8x128xf32>
    %cst_141 = arith.constant 1.000000e+00 : f32
    %338 = vector.broadcast %cst_141 : f32 to vector<8x128xf32>
    %339 = arith.addf %338, %337 : vector<8x128xf32>
    %340 = arith.mulf %329, %339 : vector<8x128xf32>
    %c1_142 = arith.constant 1 : index
    %c0_143 = arith.constant 0 : index
    %c0_144 = arith.constant 0 : index
    %341 = vector.load %arg12[%c1_142, %c0_143, %c0_144] : memref<6x128x32xf32, #tpu.memory_space<vmem>>, vector<1x128x32xf32>
    %342 = vector.shape_cast %341 : vector<1x128x32xf32> to vector<128x32xf32>
    %cst_145 = arith.constant dense<0.000000e+00> : vector<8x32xf32>
    %343 = tpu.matmul %340, %342, %cst_145 {dimension_numbers = #tpu.dot_dimension_numbers<[1], [0], [0], [1], [0, 0, 1, 1], [], []>} : vector<8x128xf32>, vector<128x32xf32>, vector<8x32xf32> -> vector<8x32xf32>
    %344 = arith.addf %294, %343 : vector<8x32xf32>
    %c1_146 = arith.constant 1 : index
    %c0_147 = arith.constant 0 : index
    %c0_148 = arith.constant 0 : index
    %345 = vector.load %arg13[%c1_146, %c0_147, %c0_148] : memref<6x1x32xf32, #tpu.memory_space<vmem>>, vector<1x1x32xf32>
    %346 = vector.shape_cast %345 : vector<1x1x32xf32> to vector<1x32xf32>
    %347 = vector.broadcast %346 : vector<1x32xf32> to vector<8x32xf32>
    %348 = arith.addf %344, %347 : vector<8x32xf32>
    %c2 = arith.constant 2 : index
    %c0_149 = arith.constant 0 : index
    %c0_150 = arith.constant 0 : index
    %349 = vector.load %arg2[%c2, %c0_149, %c0_150] : memref<6x1x32xf32, #tpu.memory_space<vmem>>, vector<1x1x32xf32>
    %350 = vector.shape_cast %349 : vector<1x1x32xf32> to vector<1x32xf32>
    %c2_151 = arith.constant 2 : index
    %c0_152 = arith.constant 0 : index
    %c0_153 = arith.constant 0 : index
    %351 = vector.load %arg3[%c2_151, %c0_152, %c0_153] : memref<6x1x32xf32, #tpu.memory_space<vmem>>, vector<1x1x32xf32>
    %352 = vector.shape_cast %351 : vector<1x1x32xf32> to vector<1x32xf32>
    %cst_154 = arith.constant dense<0.000000e+00> : vector<8xf32>
    %353 = vector.multi_reduction <add>, %348, %cst_154 [1] : vector<8x32xf32> to vector<8xf32>
    %354 = vector.shape_cast %353 : vector<8xf32> to vector<8x1xf32>
    %cst_155 = arith.constant 3.200000e+01 : f32
    %355 = vector.broadcast %cst_155 : f32 to vector<8x1xf32>
    %356 = arith.divf %354, %355 : vector<8x1xf32>
    %357 = vector.broadcast %356 : vector<8x1xf32> to vector<8x32xf32>
    %358 = arith.subf %348, %357 : vector<8x32xf32>
    %359 = arith.mulf %358, %358 : vector<8x32xf32>
    %cst_156 = arith.constant dense<0.000000e+00> : vector<8xf32>
    %360 = vector.multi_reduction <add>, %359, %cst_156 [1] : vector<8x32xf32> to vector<8xf32>
    %361 = vector.shape_cast %360 : vector<8xf32> to vector<8x1xf32>
    %cst_157 = arith.constant 3.200000e+01 : f32
    %362 = vector.broadcast %cst_157 : f32 to vector<8x1xf32>
    %363 = arith.divf %361, %362 : vector<8x1xf32>
    %364 = vector.broadcast %356 : vector<8x1xf32> to vector<8x32xf32>
    %365 = arith.subf %348, %364 : vector<8x32xf32>
    %cst_158 = arith.constant 9.99999974E-6 : f32
    %366 = vector.broadcast %cst_158 : f32 to vector<8x1xf32>
    %367 = arith.addf %363, %366 : vector<8x1xf32>
    %368 = math.rsqrt %367 : vector<8x1xf32>
    %369 = vector.broadcast %368 : vector<8x1xf32> to vector<8x32xf32>
    %370 = arith.mulf %365, %369 : vector<8x32xf32>
    %371 = vector.broadcast %350 : vector<1x32xf32> to vector<8x32xf32>
    %372 = arith.mulf %370, %371 : vector<8x32xf32>
    %373 = vector.broadcast %352 : vector<1x32xf32> to vector<8x32xf32>
    %374 = arith.addf %372, %373 : vector<8x32xf32>
    %c2_159 = arith.constant 2 : index
    %c0_160 = arith.constant 0 : index
    %c0_161 = arith.constant 0 : index
    %375 = vector.load %arg4[%c2_159, %c0_160, %c0_161] : memref<6x32x96xf32, #tpu.memory_space<vmem>>, vector<1x32x96xf32>
    %376 = vector.shape_cast %375 : vector<1x32x96xf32> to vector<32x96xf32>
    %cst_162 = arith.constant dense<0.000000e+00> : vector<8x96xf32>
    %377 = tpu.matmul %374, %376, %cst_162 {dimension_numbers = #tpu.dot_dimension_numbers<[1], [0], [0], [1], [0, 0, 1, 1], [], []>} : vector<8x32xf32>, vector<32x96xf32>, vector<8x96xf32> -> vector<8x96xf32>
    %c2_163 = arith.constant 2 : index
    %c0_164 = arith.constant 0 : index
    %c0_165 = arith.constant 0 : index
    %378 = vector.load %arg5[%c2_163, %c0_164, %c0_165] : memref<6x1x96xf32, #tpu.memory_space<vmem>>, vector<1x1x96xf32>
    %379 = vector.shape_cast %378 : vector<1x1x96xf32> to vector<1x96xf32>
    %380 = vector.broadcast %379 : vector<1x96xf32> to vector<8x96xf32>
    %381 = arith.addf %377, %380 : vector<8x96xf32>
    %c2_166 = arith.constant 2 : index
    %c0_167 = arith.constant 0 : index
    %c0_168 = arith.constant 0 : index
    %382 = vector.load %arg6[%c2_166, %c0_167, %c0_168] : memref<6x32x32xf32, #tpu.memory_space<vmem>>, vector<1x32x32xf32>
    %383 = vector.shape_cast %382 : vector<1x32x32xf32> to vector<32x32xf32>
    %cst_169 = arith.constant 0.000000e+00 : f32
    %384 = vector.broadcast %cst_169 : f32 to vector<8x32xf32>
    %385 = vector.extract_strided_slice %381 {offsets = [0, 0], sizes = [8, 8], strides = [1, 1]} : vector<8x96xf32> to vector<8x8xf32>
    %386 = vector.extract_strided_slice %381 {offsets = [0, 32], sizes = [8, 8], strides = [1, 1]} : vector<8x96xf32> to vector<8x8xf32>
    %387 = vector.extract_strided_slice %381 {offsets = [0, 64], sizes = [8, 8], strides = [1, 1]} : vector<8x96xf32> to vector<8x8xf32>
    "tpu.trace_start"() <{level = 10 : i32, message = "qd,kd->qk"}> : () -> ()
    %cst_170 = arith.constant dense<0.000000e+00> : vector<8x8xf32>
    %388 = tpu.matmul %385, %386, %cst_170 {dimension_numbers = #tpu.dot_dimension_numbers<[1], [1], [0], [0], [0, 0, 1, 0], [], []>} : vector<8x8xf32>, vector<8x8xf32>, vector<8x8xf32> -> vector<8x8xf32>
    "tpu.trace_stop"() : () -> ()
    %389 = arith.addf %388, %6 : vector<8x8xf32>
    %cst_171 = arith.constant dense<0xFF800000> : vector<8xf32>
    %390 = vector.multi_reduction <maximumf>, %389, %cst_171 [1] : vector<8x8xf32> to vector<8xf32>
    %391 = vector.shape_cast %390 : vector<8xf32> to vector<8x1xf32>
    %392 = vector.broadcast %391 : vector<8x1xf32> to vector<8x8xf32>
    %393 = arith.subf %389, %392 : vector<8x8xf32>
    %394 = math.exp %393 : vector<8x8xf32>
    %cst_172 = arith.constant dense<0.000000e+00> : vector<8xf32>
    %395 = vector.multi_reduction <add>, %394, %cst_172 [1] : vector<8x8xf32> to vector<8xf32>
    %396 = vector.shape_cast %395 : vector<8xf32> to vector<8x1xf32>
    %397 = tpu.reciprocal %396 {approx = true} : vector<8x1xf32> -> vector<8x1xf32>
    %398 = vector.broadcast %397 : vector<8x1xf32> to vector<8x8xf32>
    %399 = arith.mulf %394, %398 : vector<8x8xf32>
    %cst_173 = arith.constant dense<0.000000e+00> : vector<8x8xf32>
    %400 = tpu.matmul %399, %387, %cst_173 {dimension_numbers = #tpu.dot_dimension_numbers<[1], [0], [0], [1], [0, 0, 1, 1], [], []>} : vector<8x8xf32>, vector<8x8xf32>, vector<8x8xf32> -> vector<8x8xf32>
    %401 = vector.extract_strided_slice %383 {offsets = [0, 0], sizes = [8, 32], strides = [1, 1]} : vector<32x32xf32> to vector<8x32xf32>
    %cst_174 = arith.constant dense<0.000000e+00> : vector<8x32xf32>
    %402 = tpu.matmul %400, %401, %cst_174 {dimension_numbers = #tpu.dot_dimension_numbers<[1], [0], [0], [1], [0, 0, 1, 1], [], []>} : vector<8x8xf32>, vector<8x32xf32>, vector<8x32xf32> -> vector<8x32xf32>
    %403 = arith.addf %384, %402 : vector<8x32xf32>
    %404 = vector.extract_strided_slice %381 {offsets = [0, 8], sizes = [8, 8], strides = [1, 1]} : vector<8x96xf32> to vector<8x8xf32>
    %405 = vector.extract_strided_slice %381 {offsets = [0, 40], sizes = [8, 8], strides = [1, 1]} : vector<8x96xf32> to vector<8x8xf32>
    %406 = vector.extract_strided_slice %381 {offsets = [0, 72], sizes = [8, 8], strides = [1, 1]} : vector<8x96xf32> to vector<8x8xf32>
    "tpu.trace_start"() <{level = 10 : i32, message = "qd,kd->qk"}> : () -> ()
    %cst_175 = arith.constant dense<0.000000e+00> : vector<8x8xf32>
    %407 = tpu.matmul %404, %405, %cst_175 {dimension_numbers = #tpu.dot_dimension_numbers<[1], [1], [0], [0], [0, 0, 1, 0], [], []>} : vector<8x8xf32>, vector<8x8xf32>, vector<8x8xf32> -> vector<8x8xf32>
    "tpu.trace_stop"() : () -> ()
    %408 = arith.addf %407, %6 : vector<8x8xf32>
    %cst_176 = arith.constant dense<0xFF800000> : vector<8xf32>
    %409 = vector.multi_reduction <maximumf>, %408, %cst_176 [1] : vector<8x8xf32> to vector<8xf32>
    %410 = vector.shape_cast %409 : vector<8xf32> to vector<8x1xf32>
    %411 = vector.broadcast %410 : vector<8x1xf32> to vector<8x8xf32>
    %412 = arith.subf %408, %411 : vector<8x8xf32>
    %413 = math.exp %412 : vector<8x8xf32>
    %cst_177 = arith.constant dense<0.000000e+00> : vector<8xf32>
    %414 = vector.multi_reduction <add>, %413, %cst_177 [1] : vector<8x8xf32> to vector<8xf32>
    %415 = vector.shape_cast %414 : vector<8xf32> to vector<8x1xf32>
    %416 = tpu.reciprocal %415 {approx = true} : vector<8x1xf32> -> vector<8x1xf32>
    %417 = vector.broadcast %416 : vector<8x1xf32> to vector<8x8xf32>
    %418 = arith.mulf %413, %417 : vector<8x8xf32>
    %cst_178 = arith.constant dense<0.000000e+00> : vector<8x8xf32>
    %419 = tpu.matmul %418, %406, %cst_178 {dimension_numbers = #tpu.dot_dimension_numbers<[1], [0], [0], [1], [0, 0, 1, 1], [], []>} : vector<8x8xf32>, vector<8x8xf32>, vector<8x8xf32> -> vector<8x8xf32>
    %420 = vector.extract_strided_slice %383 {offsets = [8, 0], sizes = [8, 32], strides = [1, 1]} : vector<32x32xf32> to vector<8x32xf32>
    %cst_179 = arith.constant dense<0.000000e+00> : vector<8x32xf32>
    %421 = tpu.matmul %419, %420, %cst_179 {dimension_numbers = #tpu.dot_dimension_numbers<[1], [0], [0], [1], [0, 0, 1, 1], [], []>} : vector<8x8xf32>, vector<8x32xf32>, vector<8x32xf32> -> vector<8x32xf32>
    %422 = arith.addf %403, %421 : vector<8x32xf32>
    %423 = vector.extract_strided_slice %381 {offsets = [0, 16], sizes = [8, 8], strides = [1, 1]} : vector<8x96xf32> to vector<8x8xf32>
    %424 = vector.extract_strided_slice %381 {offsets = [0, 48], sizes = [8, 8], strides = [1, 1]} : vector<8x96xf32> to vector<8x8xf32>
    %425 = vector.extract_strided_slice %381 {offsets = [0, 80], sizes = [8, 8], strides = [1, 1]} : vector<8x96xf32> to vector<8x8xf32>
    "tpu.trace_start"() <{level = 10 : i32, message = "qd,kd->qk"}> : () -> ()
    %cst_180 = arith.constant dense<0.000000e+00> : vector<8x8xf32>
    %426 = tpu.matmul %423, %424, %cst_180 {dimension_numbers = #tpu.dot_dimension_numbers<[1], [1], [0], [0], [0, 0, 1, 0], [], []>} : vector<8x8xf32>, vector<8x8xf32>, vector<8x8xf32> -> vector<8x8xf32>
    "tpu.trace_stop"() : () -> ()
    %427 = arith.addf %426, %6 : vector<8x8xf32>
    %cst_181 = arith.constant dense<0xFF800000> : vector<8xf32>
    %428 = vector.multi_reduction <maximumf>, %427, %cst_181 [1] : vector<8x8xf32> to vector<8xf32>
    %429 = vector.shape_cast %428 : vector<8xf32> to vector<8x1xf32>
    %430 = vector.broadcast %429 : vector<8x1xf32> to vector<8x8xf32>
    %431 = arith.subf %427, %430 : vector<8x8xf32>
    %432 = math.exp %431 : vector<8x8xf32>
    %cst_182 = arith.constant dense<0.000000e+00> : vector<8xf32>
    %433 = vector.multi_reduction <add>, %432, %cst_182 [1] : vector<8x8xf32> to vector<8xf32>
    %434 = vector.shape_cast %433 : vector<8xf32> to vector<8x1xf32>
    %435 = tpu.reciprocal %434 {approx = true} : vector<8x1xf32> -> vector<8x1xf32>
    %436 = vector.broadcast %435 : vector<8x1xf32> to vector<8x8xf32>
    %437 = arith.mulf %432, %436 : vector<8x8xf32>
    %cst_183 = arith.constant dense<0.000000e+00> : vector<8x8xf32>
    %438 = tpu.matmul %437, %425, %cst_183 {dimension_numbers = #tpu.dot_dimension_numbers<[1], [0], [0], [1], [0, 0, 1, 1], [], []>} : vector<8x8xf32>, vector<8x8xf32>, vector<8x8xf32> -> vector<8x8xf32>
    %439 = vector.extract_strided_slice %383 {offsets = [16, 0], sizes = [8, 32], strides = [1, 1]} : vector<32x32xf32> to vector<8x32xf32>
    %cst_184 = arith.constant dense<0.000000e+00> : vector<8x32xf32>
    %440 = tpu.matmul %438, %439, %cst_184 {dimension_numbers = #tpu.dot_dimension_numbers<[1], [0], [0], [1], [0, 0, 1, 1], [], []>} : vector<8x8xf32>, vector<8x32xf32>, vector<8x32xf32> -> vector<8x32xf32>
    %441 = arith.addf %422, %440 : vector<8x32xf32>
    %442 = vector.extract_strided_slice %381 {offsets = [0, 24], sizes = [8, 8], strides = [1, 1]} : vector<8x96xf32> to vector<8x8xf32>
    %443 = vector.extract_strided_slice %381 {offsets = [0, 56], sizes = [8, 8], strides = [1, 1]} : vector<8x96xf32> to vector<8x8xf32>
    %444 = vector.extract_strided_slice %381 {offsets = [0, 88], sizes = [8, 8], strides = [1, 1]} : vector<8x96xf32> to vector<8x8xf32>
    "tpu.trace_start"() <{level = 10 : i32, message = "qd,kd->qk"}> : () -> ()
    %cst_185 = arith.constant dense<0.000000e+00> : vector<8x8xf32>
    %445 = tpu.matmul %442, %443, %cst_185 {dimension_numbers = #tpu.dot_dimension_numbers<[1], [1], [0], [0], [0, 0, 1, 0], [], []>} : vector<8x8xf32>, vector<8x8xf32>, vector<8x8xf32> -> vector<8x8xf32>
    "tpu.trace_stop"() : () -> ()
    %446 = arith.addf %445, %6 : vector<8x8xf32>
    %cst_186 = arith.constant dense<0xFF800000> : vector<8xf32>
    %447 = vector.multi_reduction <maximumf>, %446, %cst_186 [1] : vector<8x8xf32> to vector<8xf32>
    %448 = vector.shape_cast %447 : vector<8xf32> to vector<8x1xf32>
    %449 = vector.broadcast %448 : vector<8x1xf32> to vector<8x8xf32>
    %450 = arith.subf %446, %449 : vector<8x8xf32>
    %451 = math.exp %450 : vector<8x8xf32>
    %cst_187 = arith.constant dense<0.000000e+00> : vector<8xf32>
    %452 = vector.multi_reduction <add>, %451, %cst_187 [1] : vector<8x8xf32> to vector<8xf32>
    %453 = vector.shape_cast %452 : vector<8xf32> to vector<8x1xf32>
    %454 = tpu.reciprocal %453 {approx = true} : vector<8x1xf32> -> vector<8x1xf32>
    %455 = vector.broadcast %454 : vector<8x1xf32> to vector<8x8xf32>
    %456 = arith.mulf %451, %455 : vector<8x8xf32>
    %cst_188 = arith.constant dense<0.000000e+00> : vector<8x8xf32>
    %457 = tpu.matmul %456, %444, %cst_188 {dimension_numbers = #tpu.dot_dimension_numbers<[1], [0], [0], [1], [0, 0, 1, 1], [], []>} : vector<8x8xf32>, vector<8x8xf32>, vector<8x8xf32> -> vector<8x8xf32>
    %458 = vector.extract_strided_slice %383 {offsets = [24, 0], sizes = [8, 32], strides = [1, 1]} : vector<32x32xf32> to vector<8x32xf32>
    %cst_189 = arith.constant dense<0.000000e+00> : vector<8x32xf32>
    %459 = tpu.matmul %457, %458, %cst_189 {dimension_numbers = #tpu.dot_dimension_numbers<[1], [0], [0], [1], [0, 0, 1, 1], [], []>} : vector<8x8xf32>, vector<8x32xf32>, vector<8x32xf32> -> vector<8x32xf32>
    %460 = arith.addf %441, %459 : vector<8x32xf32>
    %461 = arith.addf %348, %460 : vector<8x32xf32>
    %c2_190 = arith.constant 2 : index
    %c0_191 = arith.constant 0 : index
    %c0_192 = arith.constant 0 : index
    %462 = vector.load %arg7[%c2_190, %c0_191, %c0_192] : memref<6x1x32xf32, #tpu.memory_space<vmem>>, vector<1x1x32xf32>
    %463 = vector.shape_cast %462 : vector<1x1x32xf32> to vector<1x32xf32>
    %464 = vector.broadcast %463 : vector<1x32xf32> to vector<8x32xf32>
    %465 = arith.addf %461, %464 : vector<8x32xf32>
    %c2_193 = arith.constant 2 : index
    %c0_194 = arith.constant 0 : index
    %c0_195 = arith.constant 0 : index
    %466 = vector.load %arg8[%c2_193, %c0_194, %c0_195] : memref<6x1x32xf32, #tpu.memory_space<vmem>>, vector<1x1x32xf32>
    %467 = vector.shape_cast %466 : vector<1x1x32xf32> to vector<1x32xf32>
    %c2_196 = arith.constant 2 : index
    %c0_197 = arith.constant 0 : index
    %c0_198 = arith.constant 0 : index
    %468 = vector.load %arg9[%c2_196, %c0_197, %c0_198] : memref<6x1x32xf32, #tpu.memory_space<vmem>>, vector<1x1x32xf32>
    %469 = vector.shape_cast %468 : vector<1x1x32xf32> to vector<1x32xf32>
    %cst_199 = arith.constant dense<0.000000e+00> : vector<8xf32>
    %470 = vector.multi_reduction <add>, %465, %cst_199 [1] : vector<8x32xf32> to vector<8xf32>
    %471 = vector.shape_cast %470 : vector<8xf32> to vector<8x1xf32>
    %cst_200 = arith.constant 3.200000e+01 : f32
    %472 = vector.broadcast %cst_200 : f32 to vector<8x1xf32>
    %473 = arith.divf %471, %472 : vector<8x1xf32>
    %474 = vector.broadcast %473 : vector<8x1xf32> to vector<8x32xf32>
    %475 = arith.subf %465, %474 : vector<8x32xf32>
    %476 = arith.mulf %475, %475 : vector<8x32xf32>
    %cst_201 = arith.constant dense<0.000000e+00> : vector<8xf32>
    %477 = vector.multi_reduction <add>, %476, %cst_201 [1] : vector<8x32xf32> to vector<8xf32>
    %478 = vector.shape_cast %477 : vector<8xf32> to vector<8x1xf32>
    %cst_202 = arith.constant 3.200000e+01 : f32
    %479 = vector.broadcast %cst_202 : f32 to vector<8x1xf32>
    %480 = arith.divf %478, %479 : vector<8x1xf32>
    %481 = vector.broadcast %473 : vector<8x1xf32> to vector<8x32xf32>
    %482 = arith.subf %465, %481 : vector<8x32xf32>
    %cst_203 = arith.constant 9.99999974E-6 : f32
    %483 = vector.broadcast %cst_203 : f32 to vector<8x1xf32>
    %484 = arith.addf %480, %483 : vector<8x1xf32>
    %485 = math.rsqrt %484 : vector<8x1xf32>
    %486 = vector.broadcast %485 : vector<8x1xf32> to vector<8x32xf32>
    %487 = arith.mulf %482, %486 : vector<8x32xf32>
    %488 = vector.broadcast %467 : vector<1x32xf32> to vector<8x32xf32>
    %489 = arith.mulf %487, %488 : vector<8x32xf32>
    %490 = vector.broadcast %469 : vector<1x32xf32> to vector<8x32xf32>
    %491 = arith.addf %489, %490 : vector<8x32xf32>
    %c2_204 = arith.constant 2 : index
    %c0_205 = arith.constant 0 : index
    %c0_206 = arith.constant 0 : index
    %492 = vector.load %arg10[%c2_204, %c0_205, %c0_206] : memref<6x32x128xf32, #tpu.memory_space<vmem>>, vector<1x32x128xf32>
    %493 = vector.shape_cast %492 : vector<1x32x128xf32> to vector<32x128xf32>
    %cst_207 = arith.constant dense<0.000000e+00> : vector<8x128xf32>
    %494 = tpu.matmul %491, %493, %cst_207 {dimension_numbers = #tpu.dot_dimension_numbers<[1], [0], [0], [1], [0, 0, 1, 1], [], []>} : vector<8x32xf32>, vector<32x128xf32>, vector<8x128xf32> -> vector<8x128xf32>
    %c2_208 = arith.constant 2 : index
    %c0_209 = arith.constant 0 : index
    %c0_210 = arith.constant 0 : index
    %495 = vector.load %arg11[%c2_208, %c0_209, %c0_210] : memref<6x1x128xf32, #tpu.memory_space<vmem>>, vector<1x1x128xf32>
    %496 = vector.shape_cast %495 : vector<1x1x128xf32> to vector<1x128xf32>
    %497 = vector.broadcast %496 : vector<1x128xf32> to vector<8x128xf32>
    %498 = arith.addf %494, %497 : vector<8x128xf32>
    %cst_211 = arith.constant 5.000000e-01 : f32
    %499 = vector.broadcast %cst_211 : f32 to vector<8x128xf32>
    %500 = arith.mulf %499, %498 : vector<8x128xf32>
    %cst_212 = arith.constant 4.471500e-02 : f32
    %501 = vector.broadcast %cst_212 : f32 to vector<8x128xf32>
    %502 = arith.mulf %501, %498 : vector<8x128xf32>
    %503 = arith.mulf %502, %498 : vector<8x128xf32>
    %504 = arith.mulf %503, %498 : vector<8x128xf32>
    %505 = arith.addf %498, %504 : vector<8x128xf32>
    %cst_213 = arith.constant 0.797884583 : f32
    %506 = vector.broadcast %cst_213 : f32 to vector<8x128xf32>
    %507 = arith.mulf %506, %505 : vector<8x128xf32>
    %508 = math.tanh %507 : vector<8x128xf32>
    %cst_214 = arith.constant 1.000000e+00 : f32
    %509 = vector.broadcast %cst_214 : f32 to vector<8x128xf32>
    %510 = arith.addf %509, %508 : vector<8x128xf32>
    %511 = arith.mulf %500, %510 : vector<8x128xf32>
    %c2_215 = arith.constant 2 : index
    %c0_216 = arith.constant 0 : index
    %c0_217 = arith.constant 0 : index
    %512 = vector.load %arg12[%c2_215, %c0_216, %c0_217] : memref<6x128x32xf32, #tpu.memory_space<vmem>>, vector<1x128x32xf32>
    %513 = vector.shape_cast %512 : vector<1x128x32xf32> to vector<128x32xf32>
    %cst_218 = arith.constant dense<0.000000e+00> : vector<8x32xf32>
    %514 = tpu.matmul %511, %513, %cst_218 {dimension_numbers = #tpu.dot_dimension_numbers<[1], [0], [0], [1], [0, 0, 1, 1], [], []>} : vector<8x128xf32>, vector<128x32xf32>, vector<8x32xf32> -> vector<8x32xf32>
    %515 = arith.addf %465, %514 : vector<8x32xf32>
    %c2_219 = arith.constant 2 : index
    %c0_220 = arith.constant 0 : index
    %c0_221 = arith.constant 0 : index
    %516 = vector.load %arg13[%c2_219, %c0_220, %c0_221] : memref<6x1x32xf32, #tpu.memory_space<vmem>>, vector<1x1x32xf32>
    %517 = vector.shape_cast %516 : vector<1x1x32xf32> to vector<1x32xf32>
    %518 = vector.broadcast %517 : vector<1x32xf32> to vector<8x32xf32>
    %519 = arith.addf %515, %518 : vector<8x32xf32>
    %c3 = arith.constant 3 : index
    %c0_222 = arith.constant 0 : index
    %c0_223 = arith.constant 0 : index
    %520 = vector.load %arg2[%c3, %c0_222, %c0_223] : memref<6x1x32xf32, #tpu.memory_space<vmem>>, vector<1x1x32xf32>
    %521 = vector.shape_cast %520 : vector<1x1x32xf32> to vector<1x32xf32>
    %c3_224 = arith.constant 3 : index
    %c0_225 = arith.constant 0 : index
    %c0_226 = arith.constant 0 : index
    %522 = vector.load %arg3[%c3_224, %c0_225, %c0_226] : memref<6x1x32xf32, #tpu.memory_space<vmem>>, vector<1x1x32xf32>
    %523 = vector.shape_cast %522 : vector<1x1x32xf32> to vector<1x32xf32>
    %cst_227 = arith.constant dense<0.000000e+00> : vector<8xf32>
    %524 = vector.multi_reduction <add>, %519, %cst_227 [1] : vector<8x32xf32> to vector<8xf32>
    %525 = vector.shape_cast %524 : vector<8xf32> to vector<8x1xf32>
    %cst_228 = arith.constant 3.200000e+01 : f32
    %526 = vector.broadcast %cst_228 : f32 to vector<8x1xf32>
    %527 = arith.divf %525, %526 : vector<8x1xf32>
    %528 = vector.broadcast %527 : vector<8x1xf32> to vector<8x32xf32>
    %529 = arith.subf %519, %528 : vector<8x32xf32>
    %530 = arith.mulf %529, %529 : vector<8x32xf32>
    %cst_229 = arith.constant dense<0.000000e+00> : vector<8xf32>
    %531 = vector.multi_reduction <add>, %530, %cst_229 [1] : vector<8x32xf32> to vector<8xf32>
    %532 = vector.shape_cast %531 : vector<8xf32> to vector<8x1xf32>
    %cst_230 = arith.constant 3.200000e+01 : f32
    %533 = vector.broadcast %cst_230 : f32 to vector<8x1xf32>
    %534 = arith.divf %532, %533 : vector<8x1xf32>
    %535 = vector.broadcast %527 : vector<8x1xf32> to vector<8x32xf32>
    %536 = arith.subf %519, %535 : vector<8x32xf32>
    %cst_231 = arith.constant 9.99999974E-6 : f32
    %537 = vector.broadcast %cst_231 : f32 to vector<8x1xf32>
    %538 = arith.addf %534, %537 : vector<8x1xf32>
    %539 = math.rsqrt %538 : vector<8x1xf32>
    %540 = vector.broadcast %539 : vector<8x1xf32> to vector<8x32xf32>
    %541 = arith.mulf %536, %540 : vector<8x32xf32>
    %542 = vector.broadcast %521 : vector<1x32xf32> to vector<8x32xf32>
    %543 = arith.mulf %541, %542 : vector<8x32xf32>
    %544 = vector.broadcast %523 : vector<1x32xf32> to vector<8x32xf32>
    %545 = arith.addf %543, %544 : vector<8x32xf32>
    %c3_232 = arith.constant 3 : index
    %c0_233 = arith.constant 0 : index
    %c0_234 = arith.constant 0 : index
    %546 = vector.load %arg4[%c3_232, %c0_233, %c0_234] : memref<6x32x96xf32, #tpu.memory_space<vmem>>, vector<1x32x96xf32>
    %547 = vector.shape_cast %546 : vector<1x32x96xf32> to vector<32x96xf32>
    %cst_235 = arith.constant dense<0.000000e+00> : vector<8x96xf32>
    %548 = tpu.matmul %545, %547, %cst_235 {dimension_numbers = #tpu.dot_dimension_numbers<[1], [0], [0], [1], [0, 0, 1, 1], [], []>} : vector<8x32xf32>, vector<32x96xf32>, vector<8x96xf32> -> vector<8x96xf32>
    %c3_236 = arith.constant 3 : index
    %c0_237 = arith.constant 0 : index
    %c0_238 = arith.constant 0 : index
    %549 = vector.load %arg5[%c3_236, %c0_237, %c0_238] : memref<6x1x96xf32, #tpu.memory_space<vmem>>, vector<1x1x96xf32>
    %550 = vector.shape_cast %549 : vector<1x1x96xf32> to vector<1x96xf32>
    %551 = vector.broadcast %550 : vector<1x96xf32> to vector<8x96xf32>
    %552 = arith.addf %548, %551 : vector<8x96xf32>
    %c3_239 = arith.constant 3 : index
    %c0_240 = arith.constant 0 : index
    %c0_241 = arith.constant 0 : index
    %553 = vector.load %arg6[%c3_239, %c0_240, %c0_241] : memref<6x32x32xf32, #tpu.memory_space<vmem>>, vector<1x32x32xf32>
    %554 = vector.shape_cast %553 : vector<1x32x32xf32> to vector<32x32xf32>
    %cst_242 = arith.constant 0.000000e+00 : f32
    %555 = vector.broadcast %cst_242 : f32 to vector<8x32xf32>
    %556 = vector.extract_strided_slice %552 {offsets = [0, 0], sizes = [8, 8], strides = [1, 1]} : vector<8x96xf32> to vector<8x8xf32>
    %557 = vector.extract_strided_slice %552 {offsets = [0, 32], sizes = [8, 8], strides = [1, 1]} : vector<8x96xf32> to vector<8x8xf32>
    %558 = vector.extract_strided_slice %552 {offsets = [0, 64], sizes = [8, 8], strides = [1, 1]} : vector<8x96xf32> to vector<8x8xf32>
    "tpu.trace_start"() <{level = 10 : i32, message = "qd,kd->qk"}> : () -> ()
    %cst_243 = arith.constant dense<0.000000e+00> : vector<8x8xf32>
    %559 = tpu.matmul %556, %557, %cst_243 {dimension_numbers = #tpu.dot_dimension_numbers<[1], [1], [0], [0], [0, 0, 1, 0], [], []>} : vector<8x8xf32>, vector<8x8xf32>, vector<8x8xf32> -> vector<8x8xf32>
    "tpu.trace_stop"() : () -> ()
    %560 = arith.addf %559, %6 : vector<8x8xf32>
    %cst_244 = arith.constant dense<0xFF800000> : vector<8xf32>
    %561 = vector.multi_reduction <maximumf>, %560, %cst_244 [1] : vector<8x8xf32> to vector<8xf32>
    %562 = vector.shape_cast %561 : vector<8xf32> to vector<8x1xf32>
    %563 = vector.broadcast %562 : vector<8x1xf32> to vector<8x8xf32>
    %564 = arith.subf %560, %563 : vector<8x8xf32>
    %565 = math.exp %564 : vector<8x8xf32>
    %cst_245 = arith.constant dense<0.000000e+00> : vector<8xf32>
    %566 = vector.multi_reduction <add>, %565, %cst_245 [1] : vector<8x8xf32> to vector<8xf32>
    %567 = vector.shape_cast %566 : vector<8xf32> to vector<8x1xf32>
    %568 = tpu.reciprocal %567 {approx = true} : vector<8x1xf32> -> vector<8x1xf32>
    %569 = vector.broadcast %568 : vector<8x1xf32> to vector<8x8xf32>
    %570 = arith.mulf %565, %569 : vector<8x8xf32>
    %cst_246 = arith.constant dense<0.000000e+00> : vector<8x8xf32>
    %571 = tpu.matmul %570, %558, %cst_246 {dimension_numbers = #tpu.dot_dimension_numbers<[1], [0], [0], [1], [0, 0, 1, 1], [], []>} : vector<8x8xf32>, vector<8x8xf32>, vector<8x8xf32> -> vector<8x8xf32>
    %572 = vector.extract_strided_slice %554 {offsets = [0, 0], sizes = [8, 32], strides = [1, 1]} : vector<32x32xf32> to vector<8x32xf32>
    %cst_247 = arith.constant dense<0.000000e+00> : vector<8x32xf32>
    %573 = tpu.matmul %571, %572, %cst_247 {dimension_numbers = #tpu.dot_dimension_numbers<[1], [0], [0], [1], [0, 0, 1, 1], [], []>} : vector<8x8xf32>, vector<8x32xf32>, vector<8x32xf32> -> vector<8x32xf32>
    %574 = arith.addf %555, %573 : vector<8x32xf32>
    %575 = vector.extract_strided_slice %552 {offsets = [0, 8], sizes = [8, 8], strides = [1, 1]} : vector<8x96xf32> to vector<8x8xf32>
    %576 = vector.extract_strided_slice %552 {offsets = [0, 40], sizes = [8, 8], strides = [1, 1]} : vector<8x96xf32> to vector<8x8xf32>
    %577 = vector.extract_strided_slice %552 {offsets = [0, 72], sizes = [8, 8], strides = [1, 1]} : vector<8x96xf32> to vector<8x8xf32>
    "tpu.trace_start"() <{level = 10 : i32, message = "qd,kd->qk"}> : () -> ()
    %cst_248 = arith.constant dense<0.000000e+00> : vector<8x8xf32>
    %578 = tpu.matmul %575, %576, %cst_248 {dimension_numbers = #tpu.dot_dimension_numbers<[1], [1], [0], [0], [0, 0, 1, 0], [], []>} : vector<8x8xf32>, vector<8x8xf32>, vector<8x8xf32> -> vector<8x8xf32>
    "tpu.trace_stop"() : () -> ()
    %579 = arith.addf %578, %6 : vector<8x8xf32>
    %cst_249 = arith.constant dense<0xFF800000> : vector<8xf32>
    %580 = vector.multi_reduction <maximumf>, %579, %cst_249 [1] : vector<8x8xf32> to vector<8xf32>
    %581 = vector.shape_cast %580 : vector<8xf32> to vector<8x1xf32>
    %582 = vector.broadcast %581 : vector<8x1xf32> to vector<8x8xf32>
    %583 = arith.subf %579, %582 : vector<8x8xf32>
    %584 = math.exp %583 : vector<8x8xf32>
    %cst_250 = arith.constant dense<0.000000e+00> : vector<8xf32>
    %585 = vector.multi_reduction <add>, %584, %cst_250 [1] : vector<8x8xf32> to vector<8xf32>
    %586 = vector.shape_cast %585 : vector<8xf32> to vector<8x1xf32>
    %587 = tpu.reciprocal %586 {approx = true} : vector<8x1xf32> -> vector<8x1xf32>
    %588 = vector.broadcast %587 : vector<8x1xf32> to vector<8x8xf32>
    %589 = arith.mulf %584, %588 : vector<8x8xf32>
    %cst_251 = arith.constant dense<0.000000e+00> : vector<8x8xf32>
    %590 = tpu.matmul %589, %577, %cst_251 {dimension_numbers = #tpu.dot_dimension_numbers<[1], [0], [0], [1], [0, 0, 1, 1], [], []>} : vector<8x8xf32>, vector<8x8xf32>, vector<8x8xf32> -> vector<8x8xf32>
    %591 = vector.extract_strided_slice %554 {offsets = [8, 0], sizes = [8, 32], strides = [1, 1]} : vector<32x32xf32> to vector<8x32xf32>
    %cst_252 = arith.constant dense<0.000000e+00> : vector<8x32xf32>
    %592 = tpu.matmul %590, %591, %cst_252 {dimension_numbers = #tpu.dot_dimension_numbers<[1], [0], [0], [1], [0, 0, 1, 1], [], []>} : vector<8x8xf32>, vector<8x32xf32>, vector<8x32xf32> -> vector<8x32xf32>
    %593 = arith.addf %574, %592 : vector<8x32xf32>
    %594 = vector.extract_strided_slice %552 {offsets = [0, 16], sizes = [8, 8], strides = [1, 1]} : vector<8x96xf32> to vector<8x8xf32>
    %595 = vector.extract_strided_slice %552 {offsets = [0, 48], sizes = [8, 8], strides = [1, 1]} : vector<8x96xf32> to vector<8x8xf32>
    %596 = vector.extract_strided_slice %552 {offsets = [0, 80], sizes = [8, 8], strides = [1, 1]} : vector<8x96xf32> to vector<8x8xf32>
    "tpu.trace_start"() <{level = 10 : i32, message = "qd,kd->qk"}> : () -> ()
    %cst_253 = arith.constant dense<0.000000e+00> : vector<8x8xf32>
    %597 = tpu.matmul %594, %595, %cst_253 {dimension_numbers = #tpu.dot_dimension_numbers<[1], [1], [0], [0], [0, 0, 1, 0], [], []>} : vector<8x8xf32>, vector<8x8xf32>, vector<8x8xf32> -> vector<8x8xf32>
    "tpu.trace_stop"() : () -> ()
    %598 = arith.addf %597, %6 : vector<8x8xf32>
    %cst_254 = arith.constant dense<0xFF800000> : vector<8xf32>
    %599 = vector.multi_reduction <maximumf>, %598, %cst_254 [1] : vector<8x8xf32> to vector<8xf32>
    %600 = vector.shape_cast %599 : vector<8xf32> to vector<8x1xf32>
    %601 = vector.broadcast %600 : vector<8x1xf32> to vector<8x8xf32>
    %602 = arith.subf %598, %601 : vector<8x8xf32>
    %603 = math.exp %602 : vector<8x8xf32>
    %cst_255 = arith.constant dense<0.000000e+00> : vector<8xf32>
    %604 = vector.multi_reduction <add>, %603, %cst_255 [1] : vector<8x8xf32> to vector<8xf32>
    %605 = vector.shape_cast %604 : vector<8xf32> to vector<8x1xf32>
    %606 = tpu.reciprocal %605 {approx = true} : vector<8x1xf32> -> vector<8x1xf32>
    %607 = vector.broadcast %606 : vector<8x1xf32> to vector<8x8xf32>
    %608 = arith.mulf %603, %607 : vector<8x8xf32>
    %cst_256 = arith.constant dense<0.000000e+00> : vector<8x8xf32>
    %609 = tpu.matmul %608, %596, %cst_256 {dimension_numbers = #tpu.dot_dimension_numbers<[1], [0], [0], [1], [0, 0, 1, 1], [], []>} : vector<8x8xf32>, vector<8x8xf32>, vector<8x8xf32> -> vector<8x8xf32>
    %610 = vector.extract_strided_slice %554 {offsets = [16, 0], sizes = [8, 32], strides = [1, 1]} : vector<32x32xf32> to vector<8x32xf32>
    %cst_257 = arith.constant dense<0.000000e+00> : vector<8x32xf32>
    %611 = tpu.matmul %609, %610, %cst_257 {dimension_numbers = #tpu.dot_dimension_numbers<[1], [0], [0], [1], [0, 0, 1, 1], [], []>} : vector<8x8xf32>, vector<8x32xf32>, vector<8x32xf32> -> vector<8x32xf32>
    %612 = arith.addf %593, %611 : vector<8x32xf32>
    %613 = vector.extract_strided_slice %552 {offsets = [0, 24], sizes = [8, 8], strides = [1, 1]} : vector<8x96xf32> to vector<8x8xf32>
    %614 = vector.extract_strided_slice %552 {offsets = [0, 56], sizes = [8, 8], strides = [1, 1]} : vector<8x96xf32> to vector<8x8xf32>
    %615 = vector.extract_strided_slice %552 {offsets = [0, 88], sizes = [8, 8], strides = [1, 1]} : vector<8x96xf32> to vector<8x8xf32>
    "tpu.trace_start"() <{level = 10 : i32, message = "qd,kd->qk"}> : () -> ()
    %cst_258 = arith.constant dense<0.000000e+00> : vector<8x8xf32>
    %616 = tpu.matmul %613, %614, %cst_258 {dimension_numbers = #tpu.dot_dimension_numbers<[1], [1], [0], [0], [0, 0, 1, 0], [], []>} : vector<8x8xf32>, vector<8x8xf32>, vector<8x8xf32> -> vector<8x8xf32>
    "tpu.trace_stop"() : () -> ()
    %617 = arith.addf %616, %6 : vector<8x8xf32>
    %cst_259 = arith.constant dense<0xFF800000> : vector<8xf32>
    %618 = vector.multi_reduction <maximumf>, %617, %cst_259 [1] : vector<8x8xf32> to vector<8xf32>
    %619 = vector.shape_cast %618 : vector<8xf32> to vector<8x1xf32>
    %620 = vector.broadcast %619 : vector<8x1xf32> to vector<8x8xf32>
    %621 = arith.subf %617, %620 : vector<8x8xf32>
    %622 = math.exp %621 : vector<8x8xf32>
    %cst_260 = arith.constant dense<0.000000e+00> : vector<8xf32>
    %623 = vector.multi_reduction <add>, %622, %cst_260 [1] : vector<8x8xf32> to vector<8xf32>
    %624 = vector.shape_cast %623 : vector<8xf32> to vector<8x1xf32>
    %625 = tpu.reciprocal %624 {approx = true} : vector<8x1xf32> -> vector<8x1xf32>
    %626 = vector.broadcast %625 : vector<8x1xf32> to vector<8x8xf32>
    %627 = arith.mulf %622, %626 : vector<8x8xf32>
    %cst_261 = arith.constant dense<0.000000e+00> : vector<8x8xf32>
    %628 = tpu.matmul %627, %615, %cst_261 {dimension_numbers = #tpu.dot_dimension_numbers<[1], [0], [0], [1], [0, 0, 1, 1], [], []>} : vector<8x8xf32>, vector<8x8xf32>, vector<8x8xf32> -> vector<8x8xf32>
    %629 = vector.extract_strided_slice %554 {offsets = [24, 0], sizes = [8, 32], strides = [1, 1]} : vector<32x32xf32> to vector<8x32xf32>
    %cst_262 = arith.constant dense<0.000000e+00> : vector<8x32xf32>
    %630 = tpu.matmul %628, %629, %cst_262 {dimension_numbers = #tpu.dot_dimension_numbers<[1], [0], [0], [1], [0, 0, 1, 1], [], []>} : vector<8x8xf32>, vector<8x32xf32>, vector<8x32xf32> -> vector<8x32xf32>
    %631 = arith.addf %612, %630 : vector<8x32xf32>
    %632 = arith.addf %519, %631 : vector<8x32xf32>
    %c3_263 = arith.constant 3 : index
    %c0_264 = arith.constant 0 : index
    %c0_265 = arith.constant 0 : index
    %633 = vector.load %arg7[%c3_263, %c0_264, %c0_265] : memref<6x1x32xf32, #tpu.memory_space<vmem>>, vector<1x1x32xf32>
    %634 = vector.shape_cast %633 : vector<1x1x32xf32> to vector<1x32xf32>
    %635 = vector.broadcast %634 : vector<1x32xf32> to vector<8x32xf32>
    %636 = arith.addf %632, %635 : vector<8x32xf32>
    %c3_266 = arith.constant 3 : index
    %c0_267 = arith.constant 0 : index
    %c0_268 = arith.constant 0 : index
    %637 = vector.load %arg8[%c3_266, %c0_267, %c0_268] : memref<6x1x32xf32, #tpu.memory_space<vmem>>, vector<1x1x32xf32>
    %638 = vector.shape_cast %637 : vector<1x1x32xf32> to vector<1x32xf32>
    %c3_269 = arith.constant 3 : index
    %c0_270 = arith.constant 0 : index
    %c0_271 = arith.constant 0 : index
    %639 = vector.load %arg9[%c3_269, %c0_270, %c0_271] : memref<6x1x32xf32, #tpu.memory_space<vmem>>, vector<1x1x32xf32>
    %640 = vector.shape_cast %639 : vector<1x1x32xf32> to vector<1x32xf32>
    %cst_272 = arith.constant dense<0.000000e+00> : vector<8xf32>
    %641 = vector.multi_reduction <add>, %636, %cst_272 [1] : vector<8x32xf32> to vector<8xf32>
    %642 = vector.shape_cast %641 : vector<8xf32> to vector<8x1xf32>
    %cst_273 = arith.constant 3.200000e+01 : f32
    %643 = vector.broadcast %cst_273 : f32 to vector<8x1xf32>
    %644 = arith.divf %642, %643 : vector<8x1xf32>
    %645 = vector.broadcast %644 : vector<8x1xf32> to vector<8x32xf32>
    %646 = arith.subf %636, %645 : vector<8x32xf32>
    %647 = arith.mulf %646, %646 : vector<8x32xf32>
    %cst_274 = arith.constant dense<0.000000e+00> : vector<8xf32>
    %648 = vector.multi_reduction <add>, %647, %cst_274 [1] : vector<8x32xf32> to vector<8xf32>
    %649 = vector.shape_cast %648 : vector<8xf32> to vector<8x1xf32>
    %cst_275 = arith.constant 3.200000e+01 : f32
    %650 = vector.broadcast %cst_275 : f32 to vector<8x1xf32>
    %651 = arith.divf %649, %650 : vector<8x1xf32>
    %652 = vector.broadcast %644 : vector<8x1xf32> to vector<8x32xf32>
    %653 = arith.subf %636, %652 : vector<8x32xf32>
    %cst_276 = arith.constant 9.99999974E-6 : f32
    %654 = vector.broadcast %cst_276 : f32 to vector<8x1xf32>
    %655 = arith.addf %651, %654 : vector<8x1xf32>
    %656 = math.rsqrt %655 : vector<8x1xf32>
    %657 = vector.broadcast %656 : vector<8x1xf32> to vector<8x32xf32>
    %658 = arith.mulf %653, %657 : vector<8x32xf32>
    %659 = vector.broadcast %638 : vector<1x32xf32> to vector<8x32xf32>
    %660 = arith.mulf %658, %659 : vector<8x32xf32>
    %661 = vector.broadcast %640 : vector<1x32xf32> to vector<8x32xf32>
    %662 = arith.addf %660, %661 : vector<8x32xf32>
    %c3_277 = arith.constant 3 : index
    %c0_278 = arith.constant 0 : index
    %c0_279 = arith.constant 0 : index
    %663 = vector.load %arg10[%c3_277, %c0_278, %c0_279] : memref<6x32x128xf32, #tpu.memory_space<vmem>>, vector<1x32x128xf32>
    %664 = vector.shape_cast %663 : vector<1x32x128xf32> to vector<32x128xf32>
    %cst_280 = arith.constant dense<0.000000e+00> : vector<8x128xf32>
    %665 = tpu.matmul %662, %664, %cst_280 {dimension_numbers = #tpu.dot_dimension_numbers<[1], [0], [0], [1], [0, 0, 1, 1], [], []>} : vector<8x32xf32>, vector<32x128xf32>, vector<8x128xf32> -> vector<8x128xf32>
    %c3_281 = arith.constant 3 : index
    %c0_282 = arith.constant 0 : index
    %c0_283 = arith.constant 0 : index
    %666 = vector.load %arg11[%c3_281, %c0_282, %c0_283] : memref<6x1x128xf32, #tpu.memory_space<vmem>>, vector<1x1x128xf32>
    %667 = vector.shape_cast %666 : vector<1x1x128xf32> to vector<1x128xf32>
    %668 = vector.broadcast %667 : vector<1x128xf32> to vector<8x128xf32>
    %669 = arith.addf %665, %668 : vector<8x128xf32>
    %cst_284 = arith.constant 5.000000e-01 : f32
    %670 = vector.broadcast %cst_284 : f32 to vector<8x128xf32>
    %671 = arith.mulf %670, %669 : vector<8x128xf32>
    %cst_285 = arith.constant 4.471500e-02 : f32
    %672 = vector.broadcast %cst_285 : f32 to vector<8x128xf32>
    %673 = arith.mulf %672, %669 : vector<8x128xf32>
    %674 = arith.mulf %673, %669 : vector<8x128xf32>
    %675 = arith.mulf %674, %669 : vector<8x128xf32>
    %676 = arith.addf %669, %675 : vector<8x128xf32>
    %cst_286 = arith.constant 0.797884583 : f32
    %677 = vector.broadcast %cst_286 : f32 to vector<8x128xf32>
    %678 = arith.mulf %677, %676 : vector<8x128xf32>
    %679 = math.tanh %678 : vector<8x128xf32>
    %cst_287 = arith.constant 1.000000e+00 : f32
    %680 = vector.broadcast %cst_287 : f32 to vector<8x128xf32>
    %681 = arith.addf %680, %679 : vector<8x128xf32>
    %682 = arith.mulf %671, %681 : vector<8x128xf32>
    %c3_288 = arith.constant 3 : index
    %c0_289 = arith.constant 0 : index
    %c0_290 = arith.constant 0 : index
    %683 = vector.load %arg12[%c3_288, %c0_289, %c0_290] : memref<6x128x32xf32, #tpu.memory_space<vmem>>, vector<1x128x32xf32>
    %684 = vector.shape_cast %683 : vector<1x128x32xf32> to vector<128x32xf32>
    %cst_291 = arith.constant dense<0.000000e+00> : vector<8x32xf32>
    %685 = tpu.matmul %682, %684, %cst_291 {dimension_numbers = #tpu.dot_dimension_numbers<[1], [0], [0], [1], [0, 0, 1, 1], [], []>} : vector<8x128xf32>, vector<128x32xf32>, vector<8x32xf32> -> vector<8x32xf32>
    %686 = arith.addf %636, %685 : vector<8x32xf32>
    %c3_292 = arith.constant 3 : index
    %c0_293 = arith.constant 0 : index
    %c0_294 = arith.constant 0 : index
    %687 = vector.load %arg13[%c3_292, %c0_293, %c0_294] : memref<6x1x32xf32, #tpu.memory_space<vmem>>, vector<1x1x32xf32>
    %688 = vector.shape_cast %687 : vector<1x1x32xf32> to vector<1x32xf32>
    %689 = vector.broadcast %688 : vector<1x32xf32> to vector<8x32xf32>
    %690 = arith.addf %686, %689 : vector<8x32xf32>
    %c4 = arith.constant 4 : index
    %c0_295 = arith.constant 0 : index
    %c0_296 = arith.constant 0 : index
    %691 = vector.load %arg2[%c4, %c0_295, %c0_296] : memref<6x1x32xf32, #tpu.memory_space<vmem>>, vector<1x1x32xf32>
    %692 = vector.shape_cast %691 : vector<1x1x32xf32> to vector<1x32xf32>
    %c4_297 = arith.constant 4 : index
    %c0_298 = arith.constant 0 : index
    %c0_299 = arith.constant 0 : index
    %693 = vector.load %arg3[%c4_297, %c0_298, %c0_299] : memref<6x1x32xf32, #tpu.memory_space<vmem>>, vector<1x1x32xf32>
    %694 = vector.shape_cast %693 : vector<1x1x32xf32> to vector<1x32xf32>
    %cst_300 = arith.constant dense<0.000000e+00> : vector<8xf32>
    %695 = vector.multi_reduction <add>, %690, %cst_300 [1] : vector<8x32xf32> to vector<8xf32>
    %696 = vector.shape_cast %695 : vector<8xf32> to vector<8x1xf32>
    %cst_301 = arith.constant 3.200000e+01 : f32
    %697 = vector.broadcast %cst_301 : f32 to vector<8x1xf32>
    %698 = arith.divf %696, %697 : vector<8x1xf32>
    %699 = vector.broadcast %698 : vector<8x1xf32> to vector<8x32xf32>
    %700 = arith.subf %690, %699 : vector<8x32xf32>
    %701 = arith.mulf %700, %700 : vector<8x32xf32>
    %cst_302 = arith.constant dense<0.000000e+00> : vector<8xf32>
    %702 = vector.multi_reduction <add>, %701, %cst_302 [1] : vector<8x32xf32> to vector<8xf32>
    %703 = vector.shape_cast %702 : vector<8xf32> to vector<8x1xf32>
    %cst_303 = arith.constant 3.200000e+01 : f32
    %704 = vector.broadcast %cst_303 : f32 to vector<8x1xf32>
    %705 = arith.divf %703, %704 : vector<8x1xf32>
    %706 = vector.broadcast %698 : vector<8x1xf32> to vector<8x32xf32>
    %707 = arith.subf %690, %706 : vector<8x32xf32>
    %cst_304 = arith.constant 9.99999974E-6 : f32
    %708 = vector.broadcast %cst_304 : f32 to vector<8x1xf32>
    %709 = arith.addf %705, %708 : vector<8x1xf32>
    %710 = math.rsqrt %709 : vector<8x1xf32>
    %711 = vector.broadcast %710 : vector<8x1xf32> to vector<8x32xf32>
    %712 = arith.mulf %707, %711 : vector<8x32xf32>
    %713 = vector.broadcast %692 : vector<1x32xf32> to vector<8x32xf32>
    %714 = arith.mulf %712, %713 : vector<8x32xf32>
    %715 = vector.broadcast %694 : vector<1x32xf32> to vector<8x32xf32>
    %716 = arith.addf %714, %715 : vector<8x32xf32>
    %c4_305 = arith.constant 4 : index
    %c0_306 = arith.constant 0 : index
    %c0_307 = arith.constant 0 : index
    %717 = vector.load %arg4[%c4_305, %c0_306, %c0_307] : memref<6x32x96xf32, #tpu.memory_space<vmem>>, vector<1x32x96xf32>
    %718 = vector.shape_cast %717 : vector<1x32x96xf32> to vector<32x96xf32>
    %cst_308 = arith.constant dense<0.000000e+00> : vector<8x96xf32>
    %719 = tpu.matmul %716, %718, %cst_308 {dimension_numbers = #tpu.dot_dimension_numbers<[1], [0], [0], [1], [0, 0, 1, 1], [], []>} : vector<8x32xf32>, vector<32x96xf32>, vector<8x96xf32> -> vector<8x96xf32>
    %c4_309 = arith.constant 4 : index
    %c0_310 = arith.constant 0 : index
    %c0_311 = arith.constant 0 : index
    %720 = vector.load %arg5[%c4_309, %c0_310, %c0_311] : memref<6x1x96xf32, #tpu.memory_space<vmem>>, vector<1x1x96xf32>
    %721 = vector.shape_cast %720 : vector<1x1x96xf32> to vector<1x96xf32>
    %722 = vector.broadcast %721 : vector<1x96xf32> to vector<8x96xf32>
    %723 = arith.addf %719, %722 : vector<8x96xf32>
    %c4_312 = arith.constant 4 : index
    %c0_313 = arith.constant 0 : index
    %c0_314 = arith.constant 0 : index
    %724 = vector.load %arg6[%c4_312, %c0_313, %c0_314] : memref<6x32x32xf32, #tpu.memory_space<vmem>>, vector<1x32x32xf32>
    %725 = vector.shape_cast %724 : vector<1x32x32xf32> to vector<32x32xf32>
    %cst_315 = arith.constant 0.000000e+00 : f32
    %726 = vector.broadcast %cst_315 : f32 to vector<8x32xf32>
    %727 = vector.extract_strided_slice %723 {offsets = [0, 0], sizes = [8, 8], strides = [1, 1]} : vector<8x96xf32> to vector<8x8xf32>
    %728 = vector.extract_strided_slice %723 {offsets = [0, 32], sizes = [8, 8], strides = [1, 1]} : vector<8x96xf32> to vector<8x8xf32>
    %729 = vector.extract_strided_slice %723 {offsets = [0, 64], sizes = [8, 8], strides = [1, 1]} : vector<8x96xf32> to vector<8x8xf32>
    "tpu.trace_start"() <{level = 10 : i32, message = "qd,kd->qk"}> : () -> ()
    %cst_316 = arith.constant dense<0.000000e+00> : vector<8x8xf32>
    %730 = tpu.matmul %727, %728, %cst_316 {dimension_numbers = #tpu.dot_dimension_numbers<[1], [1], [0], [0], [0, 0, 1, 0], [], []>} : vector<8x8xf32>, vector<8x8xf32>, vector<8x8xf32> -> vector<8x8xf32>
    "tpu.trace_stop"() : () -> ()
    %731 = arith.addf %730, %6 : vector<8x8xf32>
    %cst_317 = arith.constant dense<0xFF800000> : vector<8xf32>
    %732 = vector.multi_reduction <maximumf>, %731, %cst_317 [1] : vector<8x8xf32> to vector<8xf32>
    %733 = vector.shape_cast %732 : vector<8xf32> to vector<8x1xf32>
    %734 = vector.broadcast %733 : vector<8x1xf32> to vector<8x8xf32>
    %735 = arith.subf %731, %734 : vector<8x8xf32>
    %736 = math.exp %735 : vector<8x8xf32>
    %cst_318 = arith.constant dense<0.000000e+00> : vector<8xf32>
    %737 = vector.multi_reduction <add>, %736, %cst_318 [1] : vector<8x8xf32> to vector<8xf32>
    %738 = vector.shape_cast %737 : vector<8xf32> to vector<8x1xf32>
    %739 = tpu.reciprocal %738 {approx = true} : vector<8x1xf32> -> vector<8x1xf32>
    %740 = vector.broadcast %739 : vector<8x1xf32> to vector<8x8xf32>
    %741 = arith.mulf %736, %740 : vector<8x8xf32>
    %cst_319 = arith.constant dense<0.000000e+00> : vector<8x8xf32>
    %742 = tpu.matmul %741, %729, %cst_319 {dimension_numbers = #tpu.dot_dimension_numbers<[1], [0], [0], [1], [0, 0, 1, 1], [], []>} : vector<8x8xf32>, vector<8x8xf32>, vector<8x8xf32> -> vector<8x8xf32>
    %743 = vector.extract_strided_slice %725 {offsets = [0, 0], sizes = [8, 32], strides = [1, 1]} : vector<32x32xf32> to vector<8x32xf32>
    %cst_320 = arith.constant dense<0.000000e+00> : vector<8x32xf32>
    %744 = tpu.matmul %742, %743, %cst_320 {dimension_numbers = #tpu.dot_dimension_numbers<[1], [0], [0], [1], [0, 0, 1, 1], [], []>} : vector<8x8xf32>, vector<8x32xf32>, vector<8x32xf32> -> vector<8x32xf32>
    %745 = arith.addf %726, %744 : vector<8x32xf32>
    %746 = vector.extract_strided_slice %723 {offsets = [0, 8], sizes = [8, 8], strides = [1, 1]} : vector<8x96xf32> to vector<8x8xf32>
    %747 = vector.extract_strided_slice %723 {offsets = [0, 40], sizes = [8, 8], strides = [1, 1]} : vector<8x96xf32> to vector<8x8xf32>
    %748 = vector.extract_strided_slice %723 {offsets = [0, 72], sizes = [8, 8], strides = [1, 1]} : vector<8x96xf32> to vector<8x8xf32>
    "tpu.trace_start"() <{level = 10 : i32, message = "qd,kd->qk"}> : () -> ()
    %cst_321 = arith.constant dense<0.000000e+00> : vector<8x8xf32>
    %749 = tpu.matmul %746, %747, %cst_321 {dimension_numbers = #tpu.dot_dimension_numbers<[1], [1], [0], [0], [0, 0, 1, 0], [], []>} : vector<8x8xf32>, vector<8x8xf32>, vector<8x8xf32> -> vector<8x8xf32>
    "tpu.trace_stop"() : () -> ()
    %750 = arith.addf %749, %6 : vector<8x8xf32>
    %cst_322 = arith.constant dense<0xFF800000> : vector<8xf32>
    %751 = vector.multi_reduction <maximumf>, %750, %cst_322 [1] : vector<8x8xf32> to vector<8xf32>
    %752 = vector.shape_cast %751 : vector<8xf32> to vector<8x1xf32>
    %753 = vector.broadcast %752 : vector<8x1xf32> to vector<8x8xf32>
    %754 = arith.subf %750, %753 : vector<8x8xf32>
    %755 = math.exp %754 : vector<8x8xf32>
    %cst_323 = arith.constant dense<0.000000e+00> : vector<8xf32>
    %756 = vector.multi_reduction <add>, %755, %cst_323 [1] : vector<8x8xf32> to vector<8xf32>
    %757 = vector.shape_cast %756 : vector<8xf32> to vector<8x1xf32>
    %758 = tpu.reciprocal %757 {approx = true} : vector<8x1xf32> -> vector<8x1xf32>
    %759 = vector.broadcast %758 : vector<8x1xf32> to vector<8x8xf32>
    %760 = arith.mulf %755, %759 : vector<8x8xf32>
    %cst_324 = arith.constant dense<0.000000e+00> : vector<8x8xf32>
    %761 = tpu.matmul %760, %748, %cst_324 {dimension_numbers = #tpu.dot_dimension_numbers<[1], [0], [0], [1], [0, 0, 1, 1], [], []>} : vector<8x8xf32>, vector<8x8xf32>, vector<8x8xf32> -> vector<8x8xf32>
    %762 = vector.extract_strided_slice %725 {offsets = [8, 0], sizes = [8, 32], strides = [1, 1]} : vector<32x32xf32> to vector<8x32xf32>
    %cst_325 = arith.constant dense<0.000000e+00> : vector<8x32xf32>
    %763 = tpu.matmul %761, %762, %cst_325 {dimension_numbers = #tpu.dot_dimension_numbers<[1], [0], [0], [1], [0, 0, 1, 1], [], []>} : vector<8x8xf32>, vector<8x32xf32>, vector<8x32xf32> -> vector<8x32xf32>
    %764 = arith.addf %745, %763 : vector<8x32xf32>
    %765 = vector.extract_strided_slice %723 {offsets = [0, 16], sizes = [8, 8], strides = [1, 1]} : vector<8x96xf32> to vector<8x8xf32>
    %766 = vector.extract_strided_slice %723 {offsets = [0, 48], sizes = [8, 8], strides = [1, 1]} : vector<8x96xf32> to vector<8x8xf32>
    %767 = vector.extract_strided_slice %723 {offsets = [0, 80], sizes = [8, 8], strides = [1, 1]} : vector<8x96xf32> to vector<8x8xf32>
    "tpu.trace_start"() <{level = 10 : i32, message = "qd,kd->qk"}> : () -> ()
    %cst_326 = arith.constant dense<0.000000e+00> : vector<8x8xf32>
    %768 = tpu.matmul %765, %766, %cst_326 {dimension_numbers = #tpu.dot_dimension_numbers<[1], [1], [0], [0], [0, 0, 1, 0], [], []>} : vector<8x8xf32>, vector<8x8xf32>, vector<8x8xf32> -> vector<8x8xf32>
    "tpu.trace_stop"() : () -> ()
    %769 = arith.addf %768, %6 : vector<8x8xf32>
    %cst_327 = arith.constant dense<0xFF800000> : vector<8xf32>
    %770 = vector.multi_reduction <maximumf>, %769, %cst_327 [1] : vector<8x8xf32> to vector<8xf32>
    %771 = vector.shape_cast %770 : vector<8xf32> to vector<8x1xf32>
    %772 = vector.broadcast %771 : vector<8x1xf32> to vector<8x8xf32>
    %773 = arith.subf %769, %772 : vector<8x8xf32>
    %774 = math.exp %773 : vector<8x8xf32>
    %cst_328 = arith.constant dense<0.000000e+00> : vector<8xf32>
    %775 = vector.multi_reduction <add>, %774, %cst_328 [1] : vector<8x8xf32> to vector<8xf32>
    %776 = vector.shape_cast %775 : vector<8xf32> to vector<8x1xf32>
    %777 = tpu.reciprocal %776 {approx = true} : vector<8x1xf32> -> vector<8x1xf32>
    %778 = vector.broadcast %777 : vector<8x1xf32> to vector<8x8xf32>
    %779 = arith.mulf %774, %778 : vector<8x8xf32>
    %cst_329 = arith.constant dense<0.000000e+00> : vector<8x8xf32>
    %780 = tpu.matmul %779, %767, %cst_329 {dimension_numbers = #tpu.dot_dimension_numbers<[1], [0], [0], [1], [0, 0, 1, 1], [], []>} : vector<8x8xf32>, vector<8x8xf32>, vector<8x8xf32> -> vector<8x8xf32>
    %781 = vector.extract_strided_slice %725 {offsets = [16, 0], sizes = [8, 32], strides = [1, 1]} : vector<32x32xf32> to vector<8x32xf32>
    %cst_330 = arith.constant dense<0.000000e+00> : vector<8x32xf32>
    %782 = tpu.matmul %780, %781, %cst_330 {dimension_numbers = #tpu.dot_dimension_numbers<[1], [0], [0], [1], [0, 0, 1, 1], [], []>} : vector<8x8xf32>, vector<8x32xf32>, vector<8x32xf32> -> vector<8x32xf32>
    %783 = arith.addf %764, %782 : vector<8x32xf32>
    %784 = vector.extract_strided_slice %723 {offsets = [0, 24], sizes = [8, 8], strides = [1, 1]} : vector<8x96xf32> to vector<8x8xf32>
    %785 = vector.extract_strided_slice %723 {offsets = [0, 56], sizes = [8, 8], strides = [1, 1]} : vector<8x96xf32> to vector<8x8xf32>
    %786 = vector.extract_strided_slice %723 {offsets = [0, 88], sizes = [8, 8], strides = [1, 1]} : vector<8x96xf32> to vector<8x8xf32>
    "tpu.trace_start"() <{level = 10 : i32, message = "qd,kd->qk"}> : () -> ()
    %cst_331 = arith.constant dense<0.000000e+00> : vector<8x8xf32>
    %787 = tpu.matmul %784, %785, %cst_331 {dimension_numbers = #tpu.dot_dimension_numbers<[1], [1], [0], [0], [0, 0, 1, 0], [], []>} : vector<8x8xf32>, vector<8x8xf32>, vector<8x8xf32> -> vector<8x8xf32>
    "tpu.trace_stop"() : () -> ()
    %788 = arith.addf %787, %6 : vector<8x8xf32>
    %cst_332 = arith.constant dense<0xFF800000> : vector<8xf32>
    %789 = vector.multi_reduction <maximumf>, %788, %cst_332 [1] : vector<8x8xf32> to vector<8xf32>
    %790 = vector.shape_cast %789 : vector<8xf32> to vector<8x1xf32>
    %791 = vector.broadcast %790 : vector<8x1xf32> to vector<8x8xf32>
    %792 = arith.subf %788, %791 : vector<8x8xf32>
    %793 = math.exp %792 : vector<8x8xf32>
    %cst_333 = arith.constant dense<0.000000e+00> : vector<8xf32>
    %794 = vector.multi_reduction <add>, %793, %cst_333 [1] : vector<8x8xf32> to vector<8xf32>
    %795 = vector.shape_cast %794 : vector<8xf32> to vector<8x1xf32>
    %796 = tpu.reciprocal %795 {approx = true} : vector<8x1xf32> -> vector<8x1xf32>
    %797 = vector.broadcast %796 : vector<8x1xf32> to vector<8x8xf32>
    %798 = arith.mulf %793, %797 : vector<8x8xf32>
    %cst_334 = arith.constant dense<0.000000e+00> : vector<8x8xf32>
    %799 = tpu.matmul %798, %786, %cst_334 {dimension_numbers = #tpu.dot_dimension_numbers<[1], [0], [0], [1], [0, 0, 1, 1], [], []>} : vector<8x8xf32>, vector<8x8xf32>, vector<8x8xf32> -> vector<8x8xf32>
    %800 = vector.extract_strided_slice %725 {offsets = [24, 0], sizes = [8, 32], strides = [1, 1]} : vector<32x32xf32> to vector<8x32xf32>
    %cst_335 = arith.constant dense<0.000000e+00> : vector<8x32xf32>
    %801 = tpu.matmul %799, %800, %cst_335 {dimension_numbers = #tpu.dot_dimension_numbers<[1], [0], [0], [1], [0, 0, 1, 1], [], []>} : vector<8x8xf32>, vector<8x32xf32>, vector<8x32xf32> -> vector<8x32xf32>
    %802 = arith.addf %783, %801 : vector<8x32xf32>
    %803 = arith.addf %690, %802 : vector<8x32xf32>
    %c4_336 = arith.constant 4 : index
    %c0_337 = arith.constant 0 : index
    %c0_338 = arith.constant 0 : index
    %804 = vector.load %arg7[%c4_336, %c0_337, %c0_338] : memref<6x1x32xf32, #tpu.memory_space<vmem>>, vector<1x1x32xf32>
    %805 = vector.shape_cast %804 : vector<1x1x32xf32> to vector<1x32xf32>
    %806 = vector.broadcast %805 : vector<1x32xf32> to vector<8x32xf32>
    %807 = arith.addf %803, %806 : vector<8x32xf32>
    %c4_339 = arith.constant 4 : index
    %c0_340 = arith.constant 0 : index
    %c0_341 = arith.constant 0 : index
    %808 = vector.load %arg8[%c4_339, %c0_340, %c0_341] : memref<6x1x32xf32, #tpu.memory_space<vmem>>, vector<1x1x32xf32>
    %809 = vector.shape_cast %808 : vector<1x1x32xf32> to vector<1x32xf32>
    %c4_342 = arith.constant 4 : index
    %c0_343 = arith.constant 0 : index
    %c0_344 = arith.constant 0 : index
    %810 = vector.load %arg9[%c4_342, %c0_343, %c0_344] : memref<6x1x32xf32, #tpu.memory_space<vmem>>, vector<1x1x32xf32>
    %811 = vector.shape_cast %810 : vector<1x1x32xf32> to vector<1x32xf32>
    %cst_345 = arith.constant dense<0.000000e+00> : vector<8xf32>
    %812 = vector.multi_reduction <add>, %807, %cst_345 [1] : vector<8x32xf32> to vector<8xf32>
    %813 = vector.shape_cast %812 : vector<8xf32> to vector<8x1xf32>
    %cst_346 = arith.constant 3.200000e+01 : f32
    %814 = vector.broadcast %cst_346 : f32 to vector<8x1xf32>
    %815 = arith.divf %813, %814 : vector<8x1xf32>
    %816 = vector.broadcast %815 : vector<8x1xf32> to vector<8x32xf32>
    %817 = arith.subf %807, %816 : vector<8x32xf32>
    %818 = arith.mulf %817, %817 : vector<8x32xf32>
    %cst_347 = arith.constant dense<0.000000e+00> : vector<8xf32>
    %819 = vector.multi_reduction <add>, %818, %cst_347 [1] : vector<8x32xf32> to vector<8xf32>
    %820 = vector.shape_cast %819 : vector<8xf32> to vector<8x1xf32>
    %cst_348 = arith.constant 3.200000e+01 : f32
    %821 = vector.broadcast %cst_348 : f32 to vector<8x1xf32>
    %822 = arith.divf %820, %821 : vector<8x1xf32>
    %823 = vector.broadcast %815 : vector<8x1xf32> to vector<8x32xf32>
    %824 = arith.subf %807, %823 : vector<8x32xf32>
    %cst_349 = arith.constant 9.99999974E-6 : f32
    %825 = vector.broadcast %cst_349 : f32 to vector<8x1xf32>
    %826 = arith.addf %822, %825 : vector<8x1xf32>
    %827 = math.rsqrt %826 : vector<8x1xf32>
    %828 = vector.broadcast %827 : vector<8x1xf32> to vector<8x32xf32>
    %829 = arith.mulf %824, %828 : vector<8x32xf32>
    %830 = vector.broadcast %809 : vector<1x32xf32> to vector<8x32xf32>
    %831 = arith.mulf %829, %830 : vector<8x32xf32>
    %832 = vector.broadcast %811 : vector<1x32xf32> to vector<8x32xf32>
    %833 = arith.addf %831, %832 : vector<8x32xf32>
    %c4_350 = arith.constant 4 : index
    %c0_351 = arith.constant 0 : index
    %c0_352 = arith.constant 0 : index
    %834 = vector.load %arg10[%c4_350, %c0_351, %c0_352] : memref<6x32x128xf32, #tpu.memory_space<vmem>>, vector<1x32x128xf32>
    %835 = vector.shape_cast %834 : vector<1x32x128xf32> to vector<32x128xf32>
    %cst_353 = arith.constant dense<0.000000e+00> : vector<8x128xf32>
    %836 = tpu.matmul %833, %835, %cst_353 {dimension_numbers = #tpu.dot_dimension_numbers<[1], [0], [0], [1], [0, 0, 1, 1], [], []>} : vector<8x32xf32>, vector<32x128xf32>, vector<8x128xf32> -> vector<8x128xf32>
    %c4_354 = arith.constant 4 : index
    %c0_355 = arith.constant 0 : index
    %c0_356 = arith.constant 0 : index
    %837 = vector.load %arg11[%c4_354, %c0_355, %c0_356] : memref<6x1x128xf32, #tpu.memory_space<vmem>>, vector<1x1x128xf32>
    %838 = vector.shape_cast %837 : vector<1x1x128xf32> to vector<1x128xf32>
    %839 = vector.broadcast %838 : vector<1x128xf32> to vector<8x128xf32>
    %840 = arith.addf %836, %839 : vector<8x128xf32>
    %cst_357 = arith.constant 5.000000e-01 : f32
    %841 = vector.broadcast %cst_357 : f32 to vector<8x128xf32>
    %842 = arith.mulf %841, %840 : vector<8x128xf32>
    %cst_358 = arith.constant 4.471500e-02 : f32
    %843 = vector.broadcast %cst_358 : f32 to vector<8x128xf32>
    %844 = arith.mulf %843, %840 : vector<8x128xf32>
    %845 = arith.mulf %844, %840 : vector<8x128xf32>
    %846 = arith.mulf %845, %840 : vector<8x128xf32>
    %847 = arith.addf %840, %846 : vector<8x128xf32>
    %cst_359 = arith.constant 0.797884583 : f32
    %848 = vector.broadcast %cst_359 : f32 to vector<8x128xf32>
    %849 = arith.mulf %848, %847 : vector<8x128xf32>
    %850 = math.tanh %849 : vector<8x128xf32>
    %cst_360 = arith.constant 1.000000e+00 : f32
    %851 = vector.broadcast %cst_360 : f32 to vector<8x128xf32>
    %852 = arith.addf %851, %850 : vector<8x128xf32>
    %853 = arith.mulf %842, %852 : vector<8x128xf32>
    %c4_361 = arith.constant 4 : index
    %c0_362 = arith.constant 0 : index
    %c0_363 = arith.constant 0 : index
    %854 = vector.load %arg12[%c4_361, %c0_362, %c0_363] : memref<6x128x32xf32, #tpu.memory_space<vmem>>, vector<1x128x32xf32>
    %855 = vector.shape_cast %854 : vector<1x128x32xf32> to vector<128x32xf32>
    %cst_364 = arith.constant dense<0.000000e+00> : vector<8x32xf32>
    %856 = tpu.matmul %853, %855, %cst_364 {dimension_numbers = #tpu.dot_dimension_numbers<[1], [0], [0], [1], [0, 0, 1, 1], [], []>} : vector<8x128xf32>, vector<128x32xf32>, vector<8x32xf32> -> vector<8x32xf32>
    %857 = arith.addf %807, %856 : vector<8x32xf32>
    %c4_365 = arith.constant 4 : index
    %c0_366 = arith.constant 0 : index
    %c0_367 = arith.constant 0 : index
    %858 = vector.load %arg13[%c4_365, %c0_366, %c0_367] : memref<6x1x32xf32, #tpu.memory_space<vmem>>, vector<1x1x32xf32>
    %859 = vector.shape_cast %858 : vector<1x1x32xf32> to vector<1x32xf32>
    %860 = vector.broadcast %859 : vector<1x32xf32> to vector<8x32xf32>
    %861 = arith.addf %857, %860 : vector<8x32xf32>
    %c5 = arith.constant 5 : index
    %c0_368 = arith.constant 0 : index
    %c0_369 = arith.constant 0 : index
    %862 = vector.load %arg2[%c5, %c0_368, %c0_369] : memref<6x1x32xf32, #tpu.memory_space<vmem>>, vector<1x1x32xf32>
    %863 = vector.shape_cast %862 : vector<1x1x32xf32> to vector<1x32xf32>
    %c5_370 = arith.constant 5 : index
    %c0_371 = arith.constant 0 : index
    %c0_372 = arith.constant 0 : index
    %864 = vector.load %arg3[%c5_370, %c0_371, %c0_372] : memref<6x1x32xf32, #tpu.memory_space<vmem>>, vector<1x1x32xf32>
    %865 = vector.shape_cast %864 : vector<1x1x32xf32> to vector<1x32xf32>
    %cst_373 = arith.constant dense<0.000000e+00> : vector<8xf32>
    %866 = vector.multi_reduction <add>, %861, %cst_373 [1] : vector<8x32xf32> to vector<8xf32>
    %867 = vector.shape_cast %866 : vector<8xf32> to vector<8x1xf32>
    %cst_374 = arith.constant 3.200000e+01 : f32
    %868 = vector.broadcast %cst_374 : f32 to vector<8x1xf32>
    %869 = arith.divf %867, %868 : vector<8x1xf32>
    %870 = vector.broadcast %869 : vector<8x1xf32> to vector<8x32xf32>
    %871 = arith.subf %861, %870 : vector<8x32xf32>
    %872 = arith.mulf %871, %871 : vector<8x32xf32>
    %cst_375 = arith.constant dense<0.000000e+00> : vector<8xf32>
    %873 = vector.multi_reduction <add>, %872, %cst_375 [1] : vector<8x32xf32> to vector<8xf32>
    %874 = vector.shape_cast %873 : vector<8xf32> to vector<8x1xf32>
    %cst_376 = arith.constant 3.200000e+01 : f32
    %875 = vector.broadcast %cst_376 : f32 to vector<8x1xf32>
    %876 = arith.divf %874, %875 : vector<8x1xf32>
    %877 = vector.broadcast %869 : vector<8x1xf32> to vector<8x32xf32>
    %878 = arith.subf %861, %877 : vector<8x32xf32>
    %cst_377 = arith.constant 9.99999974E-6 : f32
    %879 = vector.broadcast %cst_377 : f32 to vector<8x1xf32>
    %880 = arith.addf %876, %879 : vector<8x1xf32>
    %881 = math.rsqrt %880 : vector<8x1xf32>
    %882 = vector.broadcast %881 : vector<8x1xf32> to vector<8x32xf32>
    %883 = arith.mulf %878, %882 : vector<8x32xf32>
    %884 = vector.broadcast %863 : vector<1x32xf32> to vector<8x32xf32>
    %885 = arith.mulf %883, %884 : vector<8x32xf32>
    %886 = vector.broadcast %865 : vector<1x32xf32> to vector<8x32xf32>
    %887 = arith.addf %885, %886 : vector<8x32xf32>
    %c5_378 = arith.constant 5 : index
    %c0_379 = arith.constant 0 : index
    %c0_380 = arith.constant 0 : index
    %888 = vector.load %arg4[%c5_378, %c0_379, %c0_380] : memref<6x32x96xf32, #tpu.memory_space<vmem>>, vector<1x32x96xf32>
    %889 = vector.shape_cast %888 : vector<1x32x96xf32> to vector<32x96xf32>
    %cst_381 = arith.constant dense<0.000000e+00> : vector<8x96xf32>
    %890 = tpu.matmul %887, %889, %cst_381 {dimension_numbers = #tpu.dot_dimension_numbers<[1], [0], [0], [1], [0, 0, 1, 1], [], []>} : vector<8x32xf32>, vector<32x96xf32>, vector<8x96xf32> -> vector<8x96xf32>
    %c5_382 = arith.constant 5 : index
    %c0_383 = arith.constant 0 : index
    %c0_384 = arith.constant 0 : index
    %891 = vector.load %arg5[%c5_382, %c0_383, %c0_384] : memref<6x1x96xf32, #tpu.memory_space<vmem>>, vector<1x1x96xf32>
    %892 = vector.shape_cast %891 : vector<1x1x96xf32> to vector<1x96xf32>
    %893 = vector.broadcast %892 : vector<1x96xf32> to vector<8x96xf32>
    %894 = arith.addf %890, %893 : vector<8x96xf32>
    %c5_385 = arith.constant 5 : index
    %c0_386 = arith.constant 0 : index
    %c0_387 = arith.constant 0 : index
    %895 = vector.load %arg6[%c5_385, %c0_386, %c0_387] : memref<6x32x32xf32, #tpu.memory_space<vmem>>, vector<1x32x32xf32>
    %896 = vector.shape_cast %895 : vector<1x32x32xf32> to vector<32x32xf32>
    %cst_388 = arith.constant 0.000000e+00 : f32
    %897 = vector.broadcast %cst_388 : f32 to vector<8x32xf32>
    %898 = vector.extract_strided_slice %894 {offsets = [0, 0], sizes = [8, 8], strides = [1, 1]} : vector<8x96xf32> to vector<8x8xf32>
    %899 = vector.extract_strided_slice %894 {offsets = [0, 32], sizes = [8, 8], strides = [1, 1]} : vector<8x96xf32> to vector<8x8xf32>
    %900 = vector.extract_strided_slice %894 {offsets = [0, 64], sizes = [8, 8], strides = [1, 1]} : vector<8x96xf32> to vector<8x8xf32>
    "tpu.trace_start"() <{level = 10 : i32, message = "qd,kd->qk"}> : () -> ()
    %cst_389 = arith.constant dense<0.000000e+00> : vector<8x8xf32>
    %901 = tpu.matmul %898, %899, %cst_389 {dimension_numbers = #tpu.dot_dimension_numbers<[1], [1], [0], [0], [0, 0, 1, 0], [], []>} : vector<8x8xf32>, vector<8x8xf32>, vector<8x8xf32> -> vector<8x8xf32>
    "tpu.trace_stop"() : () -> ()
    %902 = arith.addf %901, %6 : vector<8x8xf32>
    %cst_390 = arith.constant dense<0xFF800000> : vector<8xf32>
    %903 = vector.multi_reduction <maximumf>, %902, %cst_390 [1] : vector<8x8xf32> to vector<8xf32>
    %904 = vector.shape_cast %903 : vector<8xf32> to vector<8x1xf32>
    %905 = vector.broadcast %904 : vector<8x1xf32> to vector<8x8xf32>
    %906 = arith.subf %902, %905 : vector<8x8xf32>
    %907 = math.exp %906 : vector<8x8xf32>
    %cst_391 = arith.constant dense<0.000000e+00> : vector<8xf32>
    %908 = vector.multi_reduction <add>, %907, %cst_391 [1] : vector<8x8xf32> to vector<8xf32>
    %909 = vector.shape_cast %908 : vector<8xf32> to vector<8x1xf32>
    %910 = tpu.reciprocal %909 {approx = true} : vector<8x1xf32> -> vector<8x1xf32>
    %911 = vector.broadcast %910 : vector<8x1xf32> to vector<8x8xf32>
    %912 = arith.mulf %907, %911 : vector<8x8xf32>
    %cst_392 = arith.constant dense<0.000000e+00> : vector<8x8xf32>
    %913 = tpu.matmul %912, %900, %cst_392 {dimension_numbers = #tpu.dot_dimension_numbers<[1], [0], [0], [1], [0, 0, 1, 1], [], []>} : vector<8x8xf32>, vector<8x8xf32>, vector<8x8xf32> -> vector<8x8xf32>
    %914 = vector.extract_strided_slice %896 {offsets = [0, 0], sizes = [8, 32], strides = [1, 1]} : vector<32x32xf32> to vector<8x32xf32>
    %cst_393 = arith.constant dense<0.000000e+00> : vector<8x32xf32>
    %915 = tpu.matmul %913, %914, %cst_393 {dimension_numbers = #tpu.dot_dimension_numbers<[1], [0], [0], [1], [0, 0, 1, 1], [], []>} : vector<8x8xf32>, vector<8x32xf32>, vector<8x32xf32> -> vector<8x32xf32>
    %916 = arith.addf %897, %915 : vector<8x32xf32>
    %917 = vector.extract_strided_slice %894 {offsets = [0, 8], sizes = [8, 8], strides = [1, 1]} : vector<8x96xf32> to vector<8x8xf32>
    %918 = vector.extract_strided_slice %894 {offsets = [0, 40], sizes = [8, 8], strides = [1, 1]} : vector<8x96xf32> to vector<8x8xf32>
    %919 = vector.extract_strided_slice %894 {offsets = [0, 72], sizes = [8, 8], strides = [1, 1]} : vector<8x96xf32> to vector<8x8xf32>
    "tpu.trace_start"() <{level = 10 : i32, message = "qd,kd->qk"}> : () -> ()
    %cst_394 = arith.constant dense<0.000000e+00> : vector<8x8xf32>
    %920 = tpu.matmul %917, %918, %cst_394 {dimension_numbers = #tpu.dot_dimension_numbers<[1], [1], [0], [0], [0, 0, 1, 0], [], []>} : vector<8x8xf32>, vector<8x8xf32>, vector<8x8xf32> -> vector<8x8xf32>
    "tpu.trace_stop"() : () -> ()
    %921 = arith.addf %920, %6 : vector<8x8xf32>
    %cst_395 = arith.constant dense<0xFF800000> : vector<8xf32>
    %922 = vector.multi_reduction <maximumf>, %921, %cst_395 [1] : vector<8x8xf32> to vector<8xf32>
    %923 = vector.shape_cast %922 : vector<8xf32> to vector<8x1xf32>
    %924 = vector.broadcast %923 : vector<8x1xf32> to vector<8x8xf32>
    %925 = arith.subf %921, %924 : vector<8x8xf32>
    %926 = math.exp %925 : vector<8x8xf32>
    %cst_396 = arith.constant dense<0.000000e+00> : vector<8xf32>
    %927 = vector.multi_reduction <add>, %926, %cst_396 [1] : vector<8x8xf32> to vector<8xf32>
    %928 = vector.shape_cast %927 : vector<8xf32> to vector<8x1xf32>
    %929 = tpu.reciprocal %928 {approx = true} : vector<8x1xf32> -> vector<8x1xf32>
    %930 = vector.broadcast %929 : vector<8x1xf32> to vector<8x8xf32>
    %931 = arith.mulf %926, %930 : vector<8x8xf32>
    %cst_397 = arith.constant dense<0.000000e+00> : vector<8x8xf32>
    %932 = tpu.matmul %931, %919, %cst_397 {dimension_numbers = #tpu.dot_dimension_numbers<[1], [0], [0], [1], [0, 0, 1, 1], [], []>} : vector<8x8xf32>, vector<8x8xf32>, vector<8x8xf32> -> vector<8x8xf32>
    %933 = vector.extract_strided_slice %896 {offsets = [8, 0], sizes = [8, 32], strides = [1, 1]} : vector<32x32xf32> to vector<8x32xf32>
    %cst_398 = arith.constant dense<0.000000e+00> : vector<8x32xf32>
    %934 = tpu.matmul %932, %933, %cst_398 {dimension_numbers = #tpu.dot_dimension_numbers<[1], [0], [0], [1], [0, 0, 1, 1], [], []>} : vector<8x8xf32>, vector<8x32xf32>, vector<8x32xf32> -> vector<8x32xf32>
    %935 = arith.addf %916, %934 : vector<8x32xf32>
    %936 = vector.extract_strided_slice %894 {offsets = [0, 16], sizes = [8, 8], strides = [1, 1]} : vector<8x96xf32> to vector<8x8xf32>
    %937 = vector.extract_strided_slice %894 {offsets = [0, 48], sizes = [8, 8], strides = [1, 1]} : vector<8x96xf32> to vector<8x8xf32>
    %938 = vector.extract_strided_slice %894 {offsets = [0, 80], sizes = [8, 8], strides = [1, 1]} : vector<8x96xf32> to vector<8x8xf32>
    "tpu.trace_start"() <{level = 10 : i32, message = "qd,kd->qk"}> : () -> ()
    %cst_399 = arith.constant dense<0.000000e+00> : vector<8x8xf32>
    %939 = tpu.matmul %936, %937, %cst_399 {dimension_numbers = #tpu.dot_dimension_numbers<[1], [1], [0], [0], [0, 0, 1, 0], [], []>} : vector<8x8xf32>, vector<8x8xf32>, vector<8x8xf32> -> vector<8x8xf32>
    "tpu.trace_stop"() : () -> ()
    %940 = arith.addf %939, %6 : vector<8x8xf32>
    %cst_400 = arith.constant dense<0xFF800000> : vector<8xf32>
    %941 = vector.multi_reduction <maximumf>, %940, %cst_400 [1] : vector<8x8xf32> to vector<8xf32>
    %942 = vector.shape_cast %941 : vector<8xf32> to vector<8x1xf32>
    %943 = vector.broadcast %942 : vector<8x1xf32> to vector<8x8xf32>
    %944 = arith.subf %940, %943 : vector<8x8xf32>
    %945 = math.exp %944 : vector<8x8xf32>
    %cst_401 = arith.constant dense<0.000000e+00> : vector<8xf32>
    %946 = vector.multi_reduction <add>, %945, %cst_401 [1] : vector<8x8xf32> to vector<8xf32>
    %947 = vector.shape_cast %946 : vector<8xf32> to vector<8x1xf32>
    %948 = tpu.reciprocal %947 {approx = true} : vector<8x1xf32> -> vector<8x1xf32>
    %949 = vector.broadcast %948 : vector<8x1xf32> to vector<8x8xf32>
    %950 = arith.mulf %945, %949 : vector<8x8xf32>
    %cst_402 = arith.constant dense<0.000000e+00> : vector<8x8xf32>
    %951 = tpu.matmul %950, %938, %cst_402 {dimension_numbers = #tpu.dot_dimension_numbers<[1], [0], [0], [1], [0, 0, 1, 1], [], []>} : vector<8x8xf32>, vector<8x8xf32>, vector<8x8xf32> -> vector<8x8xf32>
    %952 = vector.extract_strided_slice %896 {offsets = [16, 0], sizes = [8, 32], strides = [1, 1]} : vector<32x32xf32> to vector<8x32xf32>
    %cst_403 = arith.constant dense<0.000000e+00> : vector<8x32xf32>
    %953 = tpu.matmul %951, %952, %cst_403 {dimension_numbers = #tpu.dot_dimension_numbers<[1], [0], [0], [1], [0, 0, 1, 1], [], []>} : vector<8x8xf32>, vector<8x32xf32>, vector<8x32xf32> -> vector<8x32xf32>
    %954 = arith.addf %935, %953 : vector<8x32xf32>
    %955 = vector.extract_strided_slice %894 {offsets = [0, 24], sizes = [8, 8], strides = [1, 1]} : vector<8x96xf32> to vector<8x8xf32>
    %956 = vector.extract_strided_slice %894 {offsets = [0, 56], sizes = [8, 8], strides = [1, 1]} : vector<8x96xf32> to vector<8x8xf32>
    %957 = vector.extract_strided_slice %894 {offsets = [0, 88], sizes = [8, 8], strides = [1, 1]} : vector<8x96xf32> to vector<8x8xf32>
    "tpu.trace_start"() <{level = 10 : i32, message = "qd,kd->qk"}> : () -> ()
    %cst_404 = arith.constant dense<0.000000e+00> : vector<8x8xf32>
    %958 = tpu.matmul %955, %956, %cst_404 {dimension_numbers = #tpu.dot_dimension_numbers<[1], [1], [0], [0], [0, 0, 1, 0], [], []>} : vector<8x8xf32>, vector<8x8xf32>, vector<8x8xf32> -> vector<8x8xf32>
    "tpu.trace_stop"() : () -> ()
    %959 = arith.addf %958, %6 : vector<8x8xf32>
    %cst_405 = arith.constant dense<0xFF800000> : vector<8xf32>
    %960 = vector.multi_reduction <maximumf>, %959, %cst_405 [1] : vector<8x8xf32> to vector<8xf32>
    %961 = vector.shape_cast %960 : vector<8xf32> to vector<8x1xf32>
    %962 = vector.broadcast %961 : vector<8x1xf32> to vector<8x8xf32>
    %963 = arith.subf %959, %962 : vector<8x8xf32>
    %964 = math.exp %963 : vector<8x8xf32>
    %cst_406 = arith.constant dense<0.000000e+00> : vector<8xf32>
    %965 = vector.multi_reduction <add>, %964, %cst_406 [1] : vector<8x8xf32> to vector<8xf32>
    %966 = vector.shape_cast %965 : vector<8xf32> to vector<8x1xf32>
    %967 = tpu.reciprocal %966 {approx = true} : vector<8x1xf32> -> vector<8x1xf32>
    %968 = vector.broadcast %967 : vector<8x1xf32> to vector<8x8xf32>
    %969 = arith.mulf %964, %968 : vector<8x8xf32>
    %cst_407 = arith.constant dense<0.000000e+00> : vector<8x8xf32>
    %970 = tpu.matmul %969, %957, %cst_407 {dimension_numbers = #tpu.dot_dimension_numbers<[1], [0], [0], [1], [0, 0, 1, 1], [], []>} : vector<8x8xf32>, vector<8x8xf32>, vector<8x8xf32> -> vector<8x8xf32>
    %971 = vector.extract_strided_slice %896 {offsets = [24, 0], sizes = [8, 32], strides = [1, 1]} : vector<32x32xf32> to vector<8x32xf32>
    %cst_408 = arith.constant dense<0.000000e+00> : vector<8x32xf32>
    %972 = tpu.matmul %970, %971, %cst_408 {dimension_numbers = #tpu.dot_dimension_numbers<[1], [0], [0], [1], [0, 0, 1, 1], [], []>} : vector<8x8xf32>, vector<8x32xf32>, vector<8x32xf32> -> vector<8x32xf32>
    %973 = arith.addf %954, %972 : vector<8x32xf32>
    %974 = arith.addf %861, %973 : vector<8x32xf32>
    %c5_409 = arith.constant 5 : index
    %c0_410 = arith.constant 0 : index
    %c0_411 = arith.constant 0 : index
    %975 = vector.load %arg7[%c5_409, %c0_410, %c0_411] : memref<6x1x32xf32, #tpu.memory_space<vmem>>, vector<1x1x32xf32>
    %976 = vector.shape_cast %975 : vector<1x1x32xf32> to vector<1x32xf32>
    %977 = vector.broadcast %976 : vector<1x32xf32> to vector<8x32xf32>
    %978 = arith.addf %974, %977 : vector<8x32xf32>
    %c5_412 = arith.constant 5 : index
    %c0_413 = arith.constant 0 : index
    %c0_414 = arith.constant 0 : index
    %979 = vector.load %arg8[%c5_412, %c0_413, %c0_414] : memref<6x1x32xf32, #tpu.memory_space<vmem>>, vector<1x1x32xf32>
    %980 = vector.shape_cast %979 : vector<1x1x32xf32> to vector<1x32xf32>
    %c5_415 = arith.constant 5 : index
    %c0_416 = arith.constant 0 : index
    %c0_417 = arith.constant 0 : index
    %981 = vector.load %arg9[%c5_415, %c0_416, %c0_417] : memref<6x1x32xf32, #tpu.memory_space<vmem>>, vector<1x1x32xf32>
    %982 = vector.shape_cast %981 : vector<1x1x32xf32> to vector<1x32xf32>
    %cst_418 = arith.constant dense<0.000000e+00> : vector<8xf32>
    %983 = vector.multi_reduction <add>, %978, %cst_418 [1] : vector<8x32xf32> to vector<8xf32>
    %984 = vector.shape_cast %983 : vector<8xf32> to vector<8x1xf32>
    %cst_419 = arith.constant 3.200000e+01 : f32
    %985 = vector.broadcast %cst_419 : f32 to vector<8x1xf32>
    %986 = arith.divf %984, %985 : vector<8x1xf32>
    %987 = vector.broadcast %986 : vector<8x1xf32> to vector<8x32xf32>
    %988 = arith.subf %978, %987 : vector<8x32xf32>
    %989 = arith.mulf %988, %988 : vector<8x32xf32>
    %cst_420 = arith.constant dense<0.000000e+00> : vector<8xf32>
    %990 = vector.multi_reduction <add>, %989, %cst_420 [1] : vector<8x32xf32> to vector<8xf32>
    %991 = vector.shape_cast %990 : vector<8xf32> to vector<8x1xf32>
    %cst_421 = arith.constant 3.200000e+01 : f32
    %992 = vector.broadcast %cst_421 : f32 to vector<8x1xf32>
    %993 = arith.divf %991, %992 : vector<8x1xf32>
    %994 = vector.broadcast %986 : vector<8x1xf32> to vector<8x32xf32>
    %995 = arith.subf %978, %994 : vector<8x32xf32>
    %cst_422 = arith.constant 9.99999974E-6 : f32
    %996 = vector.broadcast %cst_422 : f32 to vector<8x1xf32>
    %997 = arith.addf %993, %996 : vector<8x1xf32>
    %998 = math.rsqrt %997 : vector<8x1xf32>
    %999 = vector.broadcast %998 : vector<8x1xf32> to vector<8x32xf32>
    %1000 = arith.mulf %995, %999 : vector<8x32xf32>
    %1001 = vector.broadcast %980 : vector<1x32xf32> to vector<8x32xf32>
    %1002 = arith.mulf %1000, %1001 : vector<8x32xf32>
    %1003 = vector.broadcast %982 : vector<1x32xf32> to vector<8x32xf32>
    %1004 = arith.addf %1002, %1003 : vector<8x32xf32>
    %c5_423 = arith.constant 5 : index
    %c0_424 = arith.constant 0 : index
    %c0_425 = arith.constant 0 : index
    %1005 = vector.load %arg10[%c5_423, %c0_424, %c0_425] : memref<6x32x128xf32, #tpu.memory_space<vmem>>, vector<1x32x128xf32>
    %1006 = vector.shape_cast %1005 : vector<1x32x128xf32> to vector<32x128xf32>
    %cst_426 = arith.constant dense<0.000000e+00> : vector<8x128xf32>
    %1007 = tpu.matmul %1004, %1006, %cst_426 {dimension_numbers = #tpu.dot_dimension_numbers<[1], [0], [0], [1], [0, 0, 1, 1], [], []>} : vector<8x32xf32>, vector<32x128xf32>, vector<8x128xf32> -> vector<8x128xf32>
    %c5_427 = arith.constant 5 : index
    %c0_428 = arith.constant 0 : index
    %c0_429 = arith.constant 0 : index
    %1008 = vector.load %arg11[%c5_427, %c0_428, %c0_429] : memref<6x1x128xf32, #tpu.memory_space<vmem>>, vector<1x1x128xf32>
    %1009 = vector.shape_cast %1008 : vector<1x1x128xf32> to vector<1x128xf32>
    %1010 = vector.broadcast %1009 : vector<1x128xf32> to vector<8x128xf32>
    %1011 = arith.addf %1007, %1010 : vector<8x128xf32>
    %cst_430 = arith.constant 5.000000e-01 : f32
    %1012 = vector.broadcast %cst_430 : f32 to vector<8x128xf32>
    %1013 = arith.mulf %1012, %1011 : vector<8x128xf32>
    %cst_431 = arith.constant 4.471500e-02 : f32
    %1014 = vector.broadcast %cst_431 : f32 to vector<8x128xf32>
    %1015 = arith.mulf %1014, %1011 : vector<8x128xf32>
    %1016 = arith.mulf %1015, %1011 : vector<8x128xf32>
    %1017 = arith.mulf %1016, %1011 : vector<8x128xf32>
    %1018 = arith.addf %1011, %1017 : vector<8x128xf32>
    %cst_432 = arith.constant 0.797884583 : f32
    %1019 = vector.broadcast %cst_432 : f32 to vector<8x128xf32>
    %1020 = arith.mulf %1019, %1018 : vector<8x128xf32>
    %1021 = math.tanh %1020 : vector<8x128xf32>
    %cst_433 = arith.constant 1.000000e+00 : f32
    %1022 = vector.broadcast %cst_433 : f32 to vector<8x128xf32>
    %1023 = arith.addf %1022, %1021 : vector<8x128xf32>
    %1024 = arith.mulf %1013, %1023 : vector<8x128xf32>
    %c5_434 = arith.constant 5 : index
    %c0_435 = arith.constant 0 : index
    %c0_436 = arith.constant 0 : index
    %1025 = vector.load %arg12[%c5_434, %c0_435, %c0_436] : memref<6x128x32xf32, #tpu.memory_space<vmem>>, vector<1x128x32xf32>
    %1026 = vector.shape_cast %1025 : vector<1x128x32xf32> to vector<128x32xf32>
    %cst_437 = arith.constant dense<0.000000e+00> : vector<8x32xf32>
    %1027 = tpu.matmul %1024, %1026, %cst_437 {dimension_numbers = #tpu.dot_dimension_numbers<[1], [0], [0], [1], [0, 0, 1, 1], [], []>} : vector<8x128xf32>, vector<128x32xf32>, vector<8x32xf32> -> vector<8x32xf32>
    %1028 = arith.addf %978, %1027 : vector<8x32xf32>
    %c5_438 = arith.constant 5 : index
    %c0_439 = arith.constant 0 : index
    %c0_440 = arith.constant 0 : index
    %1029 = vector.load %arg13[%c5_438, %c0_439, %c0_440] : memref<6x1x32xf32, #tpu.memory_space<vmem>>, vector<1x1x32xf32>
    %1030 = vector.shape_cast %1029 : vector<1x1x32xf32> to vector<1x32xf32>
    %1031 = vector.broadcast %1030 : vector<1x32xf32> to vector<8x32xf32>
    %1032 = arith.addf %1028, %1031 : vector<8x32xf32>
    %c0_441 = arith.constant 0 : index
    %c0_442 = arith.constant 0 : index
    %1033 = vector.load %arg14[%c0_441, %c0_442] : memref<1x32xf32, #tpu.memory_space<vmem>>, vector<1x32xf32>
    %c0_443 = arith.constant 0 : index
    %c0_444 = arith.constant 0 : index
    %1034 = vector.load %arg15[%c0_443, %c0_444] : memref<1x32xf32, #tpu.memory_space<vmem>>, vector<1x32xf32>
    %cst_445 = arith.constant dense<0.000000e+00> : vector<8xf32>
    %1035 = vector.multi_reduction <add>, %1032, %cst_445 [1] : vector<8x32xf32> to vector<8xf32>
    %1036 = vector.shape_cast %1035 : vector<8xf32> to vector<8x1xf32>
    %cst_446 = arith.constant 3.200000e+01 : f32
    %1037 = vector.broadcast %cst_446 : f32 to vector<8x1xf32>
    %1038 = arith.divf %1036, %1037 : vector<8x1xf32>
    %1039 = vector.broadcast %1038 : vector<8x1xf32> to vector<8x32xf32>
    %1040 = arith.subf %1032, %1039 : vector<8x32xf32>
    %1041 = arith.mulf %1040, %1040 : vector<8x32xf32>
    %cst_447 = arith.constant dense<0.000000e+00> : vector<8xf32>
    %1042 = vector.multi_reduction <add>, %1041, %cst_447 [1] : vector<8x32xf32> to vector<8xf32>
    %1043 = vector.shape_cast %1042 : vector<8xf32> to vector<8x1xf32>
    %cst_448 = arith.constant 3.200000e+01 : f32
    %1044 = vector.broadcast %cst_448 : f32 to vector<8x1xf32>
    %1045 = arith.divf %1043, %1044 : vector<8x1xf32>
    %1046 = vector.broadcast %1038 : vector<8x1xf32> to vector<8x32xf32>
    %1047 = arith.subf %1032, %1046 : vector<8x32xf32>
    %cst_449 = arith.constant 9.99999974E-6 : f32
    %1048 = vector.broadcast %cst_449 : f32 to vector<8x1xf32>
    %1049 = arith.addf %1045, %1048 : vector<8x1xf32>
    %1050 = math.rsqrt %1049 : vector<8x1xf32>
    %1051 = vector.broadcast %1050 : vector<8x1xf32> to vector<8x32xf32>
    %1052 = arith.mulf %1047, %1051 : vector<8x32xf32>
    %1053 = vector.broadcast %1033 : vector<1x32xf32> to vector<8x32xf32>
    %1054 = arith.mulf %1052, %1053 : vector<8x32xf32>
    %1055 = vector.broadcast %1034 : vector<1x32xf32> to vector<8x32xf32>
    %1056 = arith.addf %1054, %1055 : vector<8x32xf32>
    %c0_450 = arith.constant 0 : index
    %c0_451 = arith.constant 0 : index
    %1057 = vector.load %arg16[%c0_450, %c0_451] : memref<8x32xf32, #tpu.memory_space<vmem>>, vector<8x32xf32>
    tpu.vector_store %arg16[%c0_450, %c0_451], %1056 {strides = array<i32>} : memref<8x32xf32, #tpu.memory_space<vmem>>, vector<8x32xf32>,
    return
  }
  func.func @transform_0(%arg0: i32) -> (i32, i32) {
    %c0_i32 = arith.constant 0 : i32
    %c0_i32_0 = arith.constant 0 : i32
    return %arg0, %c0_i32 : i32, i32
  }
  func.func @transform_1(%arg0: i32) -> (i32, i32, i32) {
    %c0_i32 = arith.constant 0 : i32
    %c0_i32_0 = arith.constant 0 : i32
    %c0_i32_1 = arith.constant 0 : i32
    %c0_i32_2 = arith.constant 0 : i32
    return %c0_i32, %c0_i32_0, %c0_i32_1 : i32, i32, i32
  }
  func.func @transform_2(%arg0: i32) -> (i32, i32, i32) {
    %c0_i32 = arith.constant 0 : i32
    %c0_i32_0 = arith.constant 0 : i32
    %c0_i32_1 = arith.constant 0 : i32
    %c0_i32_2 = arith.constant 0 : i32
    return %c0_i32, %c0_i32_0, %c0_i32_1 : i32, i32, i32
  }
  func.func @transform_3(%arg0: i32) -> (i32, i32, i32) {
    %c0_i32 = arith.constant 0 : i32
    %c0_i32_0 = arith.constant 0 : i32
    %c0_i32_1 = arith.constant 0 : i32
    %c0_i32_2 = arith.constant 0 : i32
    return %c0_i32, %c0_i32_0, %c0_i32_1 : i32, i32, i32
  }
  func.func @transform_4(%arg0: i32) -> (i32, i32, i32) {
    %c0_i32 = arith.constant 0 : i32
    %c0_i32_0 = arith.constant 0 : i32
    %c0_i32_1 = arith.constant 0 : i32
    %c0_i32_2 = arith.constant 0 : i32
    return %c0_i32, %c0_i32_0, %c0_i32_1 : i32, i32, i32
  }
  func.func @transform_5(%arg0: i32) -> (i32, i32, i32) {
    %c0_i32 = arith.constant 0 : i32
    %c0_i32_0 = arith.constant 0 : i32
    %c0_i32_1 = arith.constant 0 : i32
    %c0_i32_2 = arith.constant 0 : i32
    return %c0_i32, %c0_i32_0, %c0_i32_1 : i32, i32, i32
  }
  func.func @transform_6(%arg0: i32) -> (i32, i32, i32) {
    %c0_i32 = arith.constant 0 : i32
    %c0_i32_0 = arith.constant 0 : i32
    %c0_i32_1 = arith.constant 0 : i32
    %c0_i32_2 = arith.constant 0 : i32
    return %c0_i32, %c0_i32_0, %c0_i32_1 : i32, i32, i32
  }
  func.func @transform_7(%arg0: i32) -> (i32, i32, i32) {
    %c0_i32 = arith.constant 0 : i32
    %c0_i32_0 = arith.constant 0 : i32
    %c0_i32_1 = arith.constant 0 : i32
    %c0_i32_2 = arith.constant 0 : i32
    return %c0_i32, %c0_i32_0, %c0_i32_1 : i32, i32, i32
  }
  func.func @transform_8(%arg0: i32) -> (i32, i32, i32) {
    %c0_i32 = arith.constant 0 : i32
    %c0_i32_0 = arith.constant 0 : i32
    %c0_i32_1 = arith.constant 0 : i32
    %c0_i32_2 = arith.constant 0 : i32
    return %c0_i32, %c0_i32_0, %c0_i32_1 : i32, i32, i32
  }
  func.func @transform_9(%arg0: i32) -> (i32, i32, i32) {
    %c0_i32 = arith.constant 0 : i32
    %c0_i32_0 = arith.constant 0 : i32
    %c0_i32_1 = arith.constant 0 : i32
    %c0_i32_2 = arith.constant 0 : i32
    return %c0_i32, %c0_i32_0, %c0_i32_1 : i32, i32, i32
  }
  func.func @transform_10(%arg0: i32) -> (i32, i32, i32) {
    %c0_i32 = arith.constant 0 : i32
    %c0_i32_0 = arith.constant 0 : i32
    %c0_i32_1 = arith.constant 0 : i32
    %c0_i32_2 = arith.constant 0 : i32
    return %c0_i32, %c0_i32_0, %c0_i32_1 : i32, i32, i32
  }
  func.func @transform_11(%arg0: i32) -> (i32, i32, i32) {
    %c0_i32 = arith.constant 0 : i32
    %c0_i32_0 = arith.constant 0 : i32
    %c0_i32_1 = arith.constant 0 : i32
    %c0_i32_2 = arith.constant 0 : i32
    return %c0_i32, %c0_i32_0, %c0_i32_1 : i32, i32, i32
  }
  func.func @transform_12(%arg0: i32) -> (i32, i32, i32) {
    %c0_i32 = arith.constant 0 : i32
    %c0_i32_0 = arith.constant 0 : i32
    %c0_i32_1 = arith.constant 0 : i32
    %c0_i32_2 = arith.constant 0 : i32
    return %c0_i32, %c0_i32_0, %c0_i32_1 : i32, i32, i32
  }
  func.func @transform_13(%arg0: i32) -> (i32, i32) {
    %c0_i32 = arith.constant 0 : i32
    %c0_i32_0 = arith.constant 0 : i32
    %c0_i32_1 = arith.constant 0 : i32
    return %c0_i32, %c0_i32_0 : i32, i32
  }
  func.func @transform_14(%arg0: i32) -> (i32, i32) {
    %c0_i32 = arith.constant 0 : i32
    %c0_i32_0 = arith.constant 0 : i32
    %c0_i32_1 = arith.constant 0 : i32
    return %c0_i32, %c0_i32_0 : i32, i32
  }
  func.func @transform_15(%arg0: i32) -> (i32, i32) {
    %c0_i32 = arith.constant 0 : i32
    %c0_i32_0 = arith.constant 0 : i32
    return %arg0, %c0_i32 : i32, i32
  }
}

</mosaic_0001>

<bundles_post_ra>
// kernel: gpt2_node2_forward.1
= control target key start
LH: loop header
LB: loop body
LE: loop exit
PB: predicated region body
PF: predicated region fallthrough
CT: control target
= control target key end

     0   :  { %s11856_s0 = inlined_call_operand.vmem [shape: f32[16,32], index: 0, kind: input, shape index: {}]   ;;  %s11857_s1 = inlined_call_operand.vmem [shape: f32[6,1,32], index: 1, kind: input, shape index: {}]   ;;  %s11858_s2 = inlined_call_operand.vmem [shape: f32[6,1,32], index: 2, kind: input, shape index: {}]   ;;  %s11859_s3 = inlined_call_operand.vmem [shape: f32[6,32,96], index: 3, kind: input, shape index: {}]   ;;  %s11860_s4 = inlined_call_operand.vmem [shape: f32[6,1,96], index: 4, kind: input, shape index: {}]   ;;  %s11861_s5 = inlined_call_operand.vmem [shape: f32[6,32,32], index: 5, kind: input, shape index: {}]   ;;  %s11862_s6 = inlined_call_operand.vmem [shape: f32[6,1,32], index: 6, kind: input, shape index: {}]   ;;  %s11863_s7 = inlined_call_operand.vmem [shape: f32[6,1,32], index: 7, kind: input, shape index: {}]   ;;  %s11864_s8 = inlined_call_operand.vmem [shape: f32[6,1,32], index: 8, kind: input, shape index: {}]   ;;  %s11865_s9 = inlined_call_operand.vmem [shape: f32[6,32,128], index: 9, kind: input, shape index: {}]   ;;  %s11866_s10 = inlined_call_operand.vmem [shape: f32[6,1,128], index: 10, kind: input, shape index: {}]   ;;  %s11867_s11 = inlined_call_operand.vmem [shape: f32[6,128,32], index: 11, kind: input, shape index: {}]   ;;  %s11868_s12 = inlined_call_operand.vmem [shape: f32[6,1,32], index: 12, kind: input, shape index: {}]   ;;  %s11869_s13 = inlined_call_operand.vmem [shape: f32[1,32], index: 13, kind: input, shape index: {}]   ;;  %s11870_s14 = inlined_call_operand.vmem [shape: f32[1,32], index: 14, kind: input, shape index: {}]   ;;  %s11871_s15 = inlined_call_operand.hbm [shape: f32[16,32], index: 15, kind: output, shape index: {}]  }
   0x1   :  { %11906 = sst [smem:[#allocation14_spill]] %s11856_s0 }
   0x2   :  { %11907 = sst [smem:[#allocation15_spill]] %s11864_s8 }
   0x3   :  { %11908 = sst [smem:[#allocation16_spill]] %s11869_s13 }
   0x4   :  { %11909 = sst [smem:[#allocation17_spill]] %s11870_s14 }
   0x5   :  { %11910 = sst [smem:[#allocation18_spill]] %s11871_s15 }
   0x6   :  { %20 = vsyncpa [#allocation3], 0 }
   0x7   :  { %22 = vsyncpa [#allocation3 + $0x1], 0  ;;  %s10359_s18 = smov 0   ;;  %s10361_s19 = smov 0  }
   0x8   :  { %s10363_s20 = smov 0   ;;  %s10365_s21 = smov 0  }
   0x9 LB: > { %11911 = sst [smem:[#allocation5_spill]] %s10249_s18  ;;  %s10380_s22 = sadd.s32 4294967295, %s10261_s21   ;;  %s10261_s21 = sphi %s10365_s21, %s11948_s21   ;;  %s10257_s20 = sphi %s10363_s20, %s11951_s20   ;;  %s10253_s19 = sphi %s10361_s19, %s11950_s19   ;;  %s10249_s18 = sphi %s10359_s18, %s11949_s18  }
   0xa   : > { %11912 = sst [smem:[#allocation6_spill]] %s10253_s19  ;;  %s8439_s23 = sadd.s32 4294967294, %s10261_s21  }
   0xb   : > { %11913 = sst [smem:[#allocation7_spill]] %s10257_s20  ;;  %s10384_s24 = sadd.s32 1, %s10261_s21  }
   0xc   : > { %11914 = sst [smem:[#allocation8_spill]] %s10261_s21  ;;  %s355_s25 = sadd.s32 1, %s10257_s20 }
   0xd   : > { %11915 = sst [smem:[#allocation9_spill]] %s10380_s22  ;;  %s352_s26 = ssub.s32 %s10261_s21, %s10384_s24 }
   0xe   : > { %11916 = sst [smem:[#allocation10_spill]] %s10384_s24  ;;  %p365_p0 = scmp.ne.s32.totalorder %s10257_s20, %s10253_s19 }
   0xf   : > { %p353_p1 = scmp.eq.s32.totalorder %s352_s26, 0  ;;  %p366_p2 = scmp.eq.s32.totalorder %s10380_s22, 1 }
  0x10   : > { %p371_p3 = scmp.ne.s32.totalorder %s10253_s19, %s10249_s18  ;;  %p372_p4 = scmp.eq.s32.totalorder %s8439_s23, 1 }
  0x11   : > { %s10395_s27 = scalar_select %p353_p1, %s10257_s20, %s355_s25  }
  0x12   : > { %p10397_p5 = por %p366_p2, %p365_p0  ;;  %p10401_p6 = por %p372_p4, %p371_p3 }
  0x13   : > { %11917 = sst [smem:[#allocation11_spill]] %s10395_s27  ;;  %p8442_p7 = scmp.ge.s32.totalorder %s10261_s21, 1 }
  0x14   : > { %s11918_s28 = scalar_select %p10397_p5, 1, 0 }
  0x15   : > { %s11920_s29 = scalar_select %p10401_p6, 1, 0 }
  0x16   : > { %11919 = sst [smem:[#allocation12_spill]] %s11918_s28  ;;  %p439_p8 = scmp.lt.s32.totalorder %s10261_s21, 3 }
  0x17   : > { %11921 = sst [smem:[#allocation13_spill]] %s11920_s29 }
  0x18   : > { %p440_p9 = pnand %p8442_p7, %p439_p8 }
  0x19   : > { %p486_p10 = scmp.lt.s32.totalorder (!%p440_p9), %s10380_s22, 1  ;;  %vm499_vm0 = vcmask (!%p440_p9), 261120   ;;  %s11922_s0 = sld [smem:[#allocation14_spill]] (!%p440_p9)  ;;  %v528_v7 = vld [vmem:[%s11859_s3] sm:$0xff] (!%p440_p9)  ;;  %v529_v8 = vld [vmem:[%s11859_s3 + $0x8] sm:$0xff] (!%p440_p9)  ;;  %v530_v9 = vld [vmem:[%s11859_s3 + $0x10] sm:$0xff] (!%p440_p9)  ;;  %v491_v30 = vlaneseq (!%p440_p9) }
  0x1a   : > { %443 = sbr.rel (%p440_p9) target bundleno = 25439 (0x635f), region = 80  ;;  %v10263_v10 = vmov (!%p440_p9), 0.0|0.0   ;;  %v9796_v11 = vpack.c.bf16 (!%p440_p9), %v529_v8, %v528_v7  ;;  %v531_v12 = vld [vmem:[%s11859_s3 + $0x18] sm:$0xff] (!%p440_p9)  ;;  %vm10264_vm1 = vmmov (!%p440_p9), 0   ;;  %v10265_v13 = vmov (!%p440_p9), 0.0   ;;  %s11886_s23 = smov (!%p440_p9), 64  }
  0x1b   : > { %9795 = vmatprep.subr.bf16.mxu0 (!%p440_p9), %v10263_v10  ;;  %9101 = vmatprep.mubr.msk.f32.mxu0 (!%p440_p9), %vm10264_vm1, %v10265_v13  ;;  %v9799_v14 = vpack.c.bf16 (!%p440_p9), %v531_v12, %v530_v9  ;;  %v8445_v19 = vld [vmem:[%s11857_s1] ss:$0 sm:$0xff] (!%p440_p9)  ;;  %vm619_vm2 = vcmask (!%p440_p9), 64512   ;;  %v492_v31 = vshrl.u32 (!%p440_p9), %v491_v30, 7  ;;  %v494_v32 = vand.u32 (!%p440_p9), 127, %v491_v30  ;;  %s11888_s27 = smov (!%p440_p9), 120  }
  0x1c   : > { %9129 = vmatprep.subr.mxu1 (!%p440_p9), %v10265_v13  ;;  %9131 = vmatprep.mubr.msk.f32.mxu1 (!%p440_p9), %vm10264_vm1, %v10265_v13  ;;  %v8446_v21 = vld [vmem:[%s11858_s2] ss:$0 sm:$0xff] (!%p440_p9)  ;;  %v10269_v33 = vmov (!%p440_p9), -1e+09   ;;  %s11876_s17 = smov (!%p440_p9), 56   ;;  %s11874_s26 = smov (!%p440_p9), 112  }
  0x1d   : > { %9797 = vmatpush3.bf16.msra.mxu0 (!%p440_p9), %v9796_v11  ;;  %v8447_v24 = vld [vmem:[%s11860_s4] ss:$0 sm:$0xff] (!%p440_p9)  ;;  %vm495_vm3 = vcmp.ge.s32.totalorder (!%p440_p9), %v492_v31, %v494_v32  ;;  %v614_v30 = vld [vmem:[%s11861_s5 + $0x10] sm:$0xff] (!%p440_p9)  ;;  %s11923_s8 = sld [smem:[#allocation15_spill]] (!%p440_p9)  ;;  %s11925_s20 = smov (!%p440_p9), 88  }
  0x1e   : > { %9798 = vmatprep.subr.bf16.mxu0 (!%p440_p9), %v10263_v10  ;;  %v10465_v34 = vsel (!%p440_p9), %vm495_vm3, 0.0, %v10269_v33  ;;  %v612_v49 = vld [vmem:[%s11861_s5] sm:$0xff] (!%p440_p9)  ;;  %s11933_s24 = smov (!%p440_p9), 72   ;;  %s11934_s18 = smov (!%p440_p9), 40  }
  0x1f   : > { %9130 = vmatpush3.msra.mxu1 (!%p440_p9), %v612_v49  ;;  %s11935_s15 = sld [smem:[#allocation15_spill]] (!%p440_p9)  ;;  %s11944_s14 = sld [smem:[#allocation18_spill]] (!%p440_p9) }
  0x20   : > { %9139 = vmatprep.subr.mxu1 (!%p440_p9), %v10265_v13 }
  0x21   : > { %s487_s30 = scalar_select %p486_p10, %s10380_s22, 1  ;;  %9800 = vmatpush3.bf16.msra.mxu0 %v9799_v14 }
  0x22   : > { %9104 = vmatprep.subr.mxu0 %v10265_v13 }
  0x23   : > { %s8444_s16 = sshll.u32 %s487_s30, 3  ;;  %s11884_s30 = smov 48  }
  0x24   : > { %s489_s25 = scalar_lea.vmem %s11922_s0, %s8444_s16  ;;  %s11890_s0 = smov 88  }
  0x25   : > { %v10412_v0 = vld [vmem:[%s489_s25] sm:$0xff]  ;;  %s11892_s25 = smov 96   ;;  %s11872_s16 = smov 80  }
  0x26   : > { %v500_v1 = vsel %vm499_vm0, %v10412_v0, 0.0 }
  0x27   : > { %501 = vadd.xlane.f32.xlu0 %v500_v1 }
  0xb4   : > { %v502_v2 = vpop.xlane.xlu0 %501 }
  0xb5   : > { %v504_v3 = vmul.f32 0.03125, %v502_v2 }
  0xb7   : > { %v505_v4 = vsub.f32 %v10412_v0, %v504_v3 }
  0xb9   : > { %v506_v5 = vmul.f32 %v505_v4, %v505_v4 }
  0xbb   : > { %v507_v6 = vsel %vm499_vm0, %v506_v5, 0.0  ;;  %v613_v5 = vld [vmem:[%s11861_s5 + $0x8] sm:$0xff] }
  0xbc   : > { %508 = vadd.xlane.f32.xlu0 %v507_v6 }
 0x149   : > { %v509_v15 = vpop.xlane.xlu0 %508 }
 0x14a   : > { %v510_v16 = vmul.f32 0.03125, %v509_v15 }
 0x14c   : > { %v511_v17 = vadd.f32 1e-05, %v510_v16 }
 0x14e   : > { %10065 = vrsqrt.f32 %v511_v17 }
 0x158   : > { %v10066_v18 = vpop.eup %10065 }
 0x159   : > { %v513_v20 = vmul.f32 %v10066_v18, %v505_v4 }
 0x15b   : > { %v520_v22 = vmul.f32 %v8445_v19, %v513_v20 }
 0x15d   : > { %v527_v23 = vadd.f32 %v8446_v21, %v520_v22 }
 0x15f   : > { %9102 = vmatmul.mubr.msk.f32.vlgmr.msra.gmra.mrb[0].mxu0 %vm499_vm0, %v527_v23 }
 0x160   : > { %9106 = vmatprep.mubr.msk.f32.mxu0 %vm10264_vm1, %v10265_v13 }
 0x232   : > { %v608_v25 = vpop.f32.mrb[0].mxu0 }
 0x233   : > { %v10450_v26 = vadd.f32 %v8447_v24, %v608_v25  ;;  %v9103_v27 = vpop.f32.mrb[1].mxu0 }
 0x235   : > { %705 = vrot.lane.b32.xlu0 %v10450_v26, %s11886_s23  ;;  %617 = vrot.lane.b32.xlu1 %v10450_v26, %s11892_s25  ;;  %s11927_s23 = smov 64   ;;  %s11931_s25 = smov 48  }
 0x239   : > { %783 = vrot.lane.b32.xlu0 %v10450_v26, %s11890_s0  ;;  %s11932_s0 = smov 104  }
 0x2a7   : > { %v618_v28 = vpop.permute.xlu1 %617  ;;  %v706_v29 = vpop.permute.xlu0 %705 }
 0x2a8   : > { %9105 = vmatpush3.xpose.msk.msra.mxu0 %vm619_vm2, %v618_v28 }
 0x2a9   : > { %9109 = vmatprep.subr.mxu0 %v10265_v13 }
 0x2ab   : > { %9107 = vmatmul.mubr.msk.f32.vlgmr.msra.gmra.mrb[2].mxu0 %vm619_vm2, %v10450_v26  ;;  %v784_v44 = vpop.permute.xlu0 %783 }
 0x2ac   : > { %9110 = vmatpush3.msra.mxu0 %v706_v29  ;;  %9111 = vmatprep.mubr.msk.f32.mxu0 %vm10264_vm1, %v10265_v13 }
 0x2ad   : > { %9114 = vmatprep.subr.mxu0 %v10265_v13 }
 0x37e   : > { %v690_v35 = vpop.f32.mrb[2].mxu0 }
 0x37f   : > { %v691_v36 = vadd.f32 %v690_v35, %v10465_v34  ;;  %v9108_v37 = vpop.f32.mrb[3].mxu0 }
 0x381   : > { %v694_v38 = vsel %vm619_vm2, %v691_v36, -inf }
 0x382   : > { %695 = vmax.xlane.f32.xlu1 %v694_v38 }
 0x40f   : > { %v696_v39 = vpop.xlane.xlu1 %695 }
 0x410   : > { %v697_v40 = vsub.f32 %v691_v36, %v696_v39 }
 0x412   : > { %v698_v41 = vmul.f32 1.442695, %v697_v40 }
 0x414   : > { %10067 = vpow2.f32 %v698_v41 }
 0x41e   : > { %v10068_v42 = vpop.eup %10067 }
 0x41f   : > { %v700_v43 = vsel %vm619_vm2, %v10068_v42, 0.0 }
 0x420   : > { %701 = vadd.xlane.f32.xlu0 %v700_v43 }
 0x436   : > { %781 = vrot.lane.b32.xlu0 %v10450_v26, %s11888_s27  ;;  %s11928_s27 = smov 56  }
 0x4ad   : > { %v702_v45 = vpop.xlane.xlu0 %701 }
 0x4ae   : > { %10069 = vrcp.f32 %v702_v45 }
 0x4b1   : > { %v782_v48 = vpop.permute.xlu0 %781 }
 0x4b8   : > { %v10070_v46 = vpop.eup %10069 }
 0x4b9   : > { %v704_v47 = vmul.f32 %v10070_v46, %v10068_v42 }
 0x4bb   : > { %9112 = vmatmul.mubr.msk.f32.vlgmr.msra.gmra.mrb[4].mxu0 %vm619_vm2, %v704_v47 }
 0x4bc   : > { %9115 = vmatpush3.xpose.msk.msra.mxu0 %vm619_vm2, %v784_v44  ;;  %9116 = vmatprep.mubr.msk.f32.mxu0 %vm10264_vm1, %v10265_v13  ;;  %v615_v44 = vld [vmem:[%s11861_s5 + $0x18] sm:$0xff] }
 0x4bd   : > { %9119 = vmatprep.subr.mxu0 %v10265_v13 }
 0x4bf   : > { %9117 = vmatmul.mubr.msk.f32.vlgmr.msra.gmra.mrb[6].mxu0 %vm619_vm2, %v782_v48 }
 0x4c0   : > { %9121 = vmatprep.mubr.msk.f32.mxu0 %vm10264_vm1, %v10265_v13 }
 0x58e   : > { %v777_v50 = vpop.f32.mrb[4].mxu0 }
 0x58f   : > { %v9113_v51 = vpop.f32.mrb[5].mxu0  ;;  %9132 = vmatmul.mubr.msk.f32.vlgmr.msra.gmra.mrb[0].mxu1 %vm619_vm2, %v777_v50 }
 0x590   : > { %9141 = vmatprep.mubr.msk.f32.mxu1 %vm10264_vm1, %v10265_v13 }
 0x592   : > { %v855_v52 = vpop.f32.mrb[6].mxu0 }
 0x593   : > { %v856_v53 = vadd.f32 %v855_v52, %v10465_v34  ;;  %v9118_v54 = vpop.f32.mrb[7].mxu0 }
 0x595   : > { %v859_v55 = vsel %vm619_vm2, %v856_v53, -inf }
 0x596   : > { %860 = vmax.xlane.f32.xlu1 %v859_v55  ;;  %v8465_v55 = vld [vmem:[%s11862_s6] ss:$0 sm:$0xff] }
 0x5a7   : > { %870 = vrot.lane.b32.xlu1 %v10450_v26, %s11876_s17  ;;  %s11880_s17 = smov 104  }
 0x5ab   : > { %1094 = vrot.lane.b32.xlu1 %v10450_v26, %s11872_s16  ;;  %s11878_s16 = smov 72  }
 0x5af   : > { %1092 = vrot.lane.b32.xlu1 %v10450_v26, %s11874_s26  ;;  %s11926_s26 = smov 120  }
 0x623   : > { %v861_v56 = vpop.xlane.xlu1 %860 }
 0x624   : > { %v862_v57 = vsub.f32 %v856_v53, %v861_v56 }
 0x626   : > { %v863_v58 = vmul.f32 1.442695, %v862_v57 }
 0x627   : > { %v871_v59 = vpop.permute.xlu1 %870 }
 0x628   : > { %10071 = vpow2.f32 %v863_v58  ;;  %9120 = vmatpush3.msra.mxu0 %v871_v59 }
 0x629   : > { %9124 = vmatprep.subr.mxu0 %v10265_v13 }
 0x62b   : > { %v1095_v6 = vpop.permute.xlu1 %1094 }
 0x62f   : > { %v1093_v9 = vpop.permute.xlu1 %1092 }
 0x632   : > { %v10072_v60 = vpop.eup %10071 }
 0x633   : > { %v865_v61 = vsel %vm619_vm2, %v10072_v60, 0.0 }
 0x634   : > { %866 = vadd.xlane.f32.xlu0 %v865_v61 }
 0x64a   : > { %1181 = vrot.lane.b32.xlu0 %v10450_v26, %s11884_s30  ;;  %s11929_s30 = smov 112  }
 0x64e   : > { %1333 = vrot.lane.b32.xlu0 %v10450_v26, %s11878_s16  ;;  %s11924_s16 = smov 96  }
 0x662   : > { %v1088_v62 = vpop.f32.mrb[0].mxu1 }
 0x663   : > { %v9133_v63 = vpop.f32.mrb[1].mxu1 }
 0x6c1   : > { %v867_v1 = vpop.xlane.xlu0 %866 }
 0x6c2   : > { %10073 = vrcp.f32 %v867_v1  ;;  %v1608_v1 = vld [vmem:[%s11865_s9] sm:$0xff] }
 0x6c5   : > { %v1182_v2 = vpop.permute.xlu0 %1181 }
 0x6c6   : > { %9140 = vmatpush3.msra.mxu1 %v1182_v2 }
 0x6c7   : > { %9149 = vmatprep.subr.mxu1 %v10265_v13 }
 0x6c9   : > { %v1334_v24 = vpop.permute.xlu0 %1333 }
 0x6cc   : > { %v10074_v3 = vpop.eup %10073 }
 0x6cd   : > { %v869_v4 = vmul.f32 %v10074_v3, %v10072_v60  ;;  %v1610_v3 = vld [vmem:[%s11865_s9 + $0x10] sm:$0xff] }
 0x6cf   : > { %9122 = vmatmul.mubr.msk.f32.vlgmr.msra.gmra.mrb[8].mxu0 %vm619_vm2, %v869_v4  ;;  %v1611_v4 = vld [vmem:[%s11865_s9 + $0x18] sm:$0xff] }
 0x6d0   : > { %9125 = vmatpush3.msra.mxu0 %v613_v5  ;;  %9126 = vmatprep.mubr.msk.f32.mxu0 %vm10264_vm1, %v10265_v13  ;;  %v9805_v5 = vpack.c.bf16 %v1611_v4, %v1610_v3  ;;  %v8475_v3 = vld [vmem:[%s11859_s3 + $0x20] sm:$0xff] }
 0x6d1   : > { %9134 = vmatprep.subr.mxu0 %v10265_v13 }
 0x7a2   : > { %v942_v7 = vpop.f32.mrb[8].mxu0 }
 0x7a3   : > { %v9123_v8 = vpop.f32.mrb[9].mxu0  ;;  %9127 = vmatmul.mubr.msk.f32.vlgmr.msra.gmra.mrb[10].mxu0 %vm619_vm2, %v942_v7  ;;  %v1702_v7 = vld [vmem:[%s11867_s11 + $0x8] sm:$0xff] }
 0x7a4   : > { %9135 = vmatpush3.xpose.msk.msra.mxu0 %vm619_vm2, %v1095_v6  ;;  %9136 = vmatprep.mubr.msk.f32.mxu0 %vm10264_vm1, %v10265_v13  ;;  %v1701_v6 = vld [vmem:[%s11867_s11] sm:$0xff] }
 0x7a5   : > { %9144 = vmatprep.subr.mxu0 %v10265_v13  ;;  %v9808_v8 = vpack.c.bf16 %v1702_v7, %v1701_v6  ;;  %v8478_v6 = vld [vmem:[%s11859_s3 + $0x38] sm:$0xff] }
 0x7a7   : > { %9137 = vmatmul.mubr.msk.f32.vlgmr.msra.gmra.mrb[12].mxu0 %vm619_vm2, %v1093_v9 }
 0x7a8   : > { %9146 = vmatprep.mubr.msk.f32.mxu0 %vm10264_vm1, %v10265_v13  ;;  %9145 = vmatpush3.msra.mxu0 %v614_v30  ;;  %v1709_v30 = vld [vmem:[%s11867_s11 + $0x40] sm:$0xff] }
 0x7a9   : > { %9154 = vmatprep.subr.mxu0 %v10265_v13 }
 0x876   : > { %v1015_v11 = vpop.f32.mrb[10].mxu0 }
 0x877   : > { %v1089_v12 = vadd.f32 %v1088_v62, %v1015_v11  ;;  %v9128_v14 = vpop.f32.mrb[11].mxu0 }
 0x87a   : > { %v1166_v15 = vpop.f32.mrb[12].mxu0 }
 0x87b   : > { %v1167_v16 = vadd.f32 %v1166_v15, %v10465_v34  ;;  %v9138_v17 = vpop.f32.mrb[13].mxu0  ;;  %v8466_v15 = vld [vmem:[%s11863_s7] ss:$0 sm:$0xff] }
 0x87c   : > { %v8467_v17 = vld [vmem:[%s11923_s8] ss:$0 sm:$0xff] }
 0x87d   : > { %v1170_v18 = vsel %vm619_vm2, %v1167_v16, -inf }
 0x87e   : > { %1171 = vmax.xlane.f32.xlu1 %v1170_v18 }
 0x90b   : > { %v1172_v19 = vpop.xlane.xlu1 %1171 }
 0x90c   : > { %v1173_v20 = vsub.f32 %v1167_v16, %v1172_v19 }
 0x90e   : > { %v1174_v21 = vmul.f32 1.442695, %v1173_v20  ;;  %v1703_v20 = vld [vmem:[%s11867_s11 + $0x10] sm:$0xff] }
 0x910   : > { %10075 = vpow2.f32 %v1174_v21  ;;  %v1704_v21 = vld [vmem:[%s11867_s11 + $0x18] sm:$0xff] }
 0x91a   : > { %v10076_v22 = vpop.eup %10075 }
 0x91b   : > { %v1176_v23 = vsel %vm619_vm2, %v10076_v22, 0.0 }
 0x91c   : > { %1177 = vadd.xlane.f32.xlu0 %v1176_v23  ;;  %v1705_v23 = vld [vmem:[%s11867_s11 + $0x20] sm:$0xff] }
 0x932   : > { %1331 = vrot.lane.b32.xlu0 %v10450_v26, %s11880_s17  ;;  %s11882_s17 = smov 40  }
 0x9a9   : > { %v1178_v25 = vpop.xlane.xlu0 %1177 }
 0x9aa   : > { %10077 = vrcp.f32 %v1178_v25 }
 0x9ad   : > { %v1332_v29 = vpop.permute.xlu0 %1331 }
 0x9b4   : > { %v10078_v27 = vpop.eup %10077 }
 0x9b5   : > { %v1180_v28 = vmul.f32 %v10078_v27, %v10076_v22  ;;  %v9811_v22 = vpack.c.bf16 %v1704_v21, %v1703_v20  ;;  %v1707_v27 = vld [vmem:[%s11867_s11 + $0x30] sm:$0xff] }
 0x9b7   : > { %9142 = vmatmul.mubr.msk.f32.vlgmr.msra.gmra.mrb[2].mxu1 %vm619_vm2, %v1180_v28  ;;  %v1708_v28 = vld [vmem:[%s11867_s11 + $0x38] sm:$0xff] }
 0x9b8   : > { %9150 = vmatpush3.xpose.msk.msra.mxu1 %vm619_vm2, %v1334_v24  ;;  %9151 = vmatprep.mubr.msk.f32.mxu1 %vm10264_vm1, %v10265_v13  ;;  %v1706_v24 = vld [vmem:[%s11867_s11 + $0x28] sm:$0xff] }
 0x9b9   : > { %9159 = vmatprep.subr.mxu1 %v10265_v13  ;;  %v9814_v25 = vpack.c.bf16 %v1706_v24, %v1705_v23 }
 0x9bb   : > { %9152 = vmatmul.mubr.msk.f32.vlgmr.msra.gmra.mrb[4].mxu1 %vm619_vm2, %v1332_v29  ;;  %v9817_v29 = vpack.c.bf16 %v1708_v28, %v1707_v27 }
 0x9bc   : > { %9161 = vmatprep.mubr.msk.f32.mxu1 %vm10264_vm1, %v10265_v13  ;;  %9160 = vmatpush3.msra.mxu1 %v615_v44 }
 0x9bd   : > { %9807 = vmatprep.subr.bf16.mxu1 %v10263_v10 }
 0xa8a   : > { %v1253_v31 = vpop.f32.mrb[2].mxu1 }
 0xa8b   : > { %v9143_v32 = vpop.f32.mrb[3].mxu1  ;;  %9147 = vmatmul.mubr.msk.f32.vlgmr.msra.gmra.mrb[14].mxu0 %vm619_vm2, %v1253_v31  ;;  %v1710_v31 = vld [vmem:[%s11867_s11 + $0x48] sm:$0xff] }
 0xa8c   : > { %9156 = vmatprep.mubr.msk.f32.mxu0 %vm10264_vm1, %v10265_v13  ;;  %v9820_v32 = vpack.c.bf16 %v1710_v31, %v1709_v30 }
 0xa8e   : > { %v1405_v33 = vpop.f32.mrb[4].mxu1 }
 0xa8f   : > { %v1406_v35 = vadd.f32 %v1405_v33, %v10465_v34  ;;  %v9153_v36 = vpop.f32.mrb[5].mxu1  ;;  %v1711_v33 = vld [vmem:[%s11867_s11 + $0x50] sm:$0xff] }
 0xa91   : > { %v1409_v37 = vsel %vm619_vm2, %v1406_v35, -inf }
 0xa92   : > { %1410 = vmax.xlane.f32.xlu1 %v1409_v37  ;;  %v1713_v37 = vld [vmem:[%s11867_s11 + $0x60] sm:$0xff] }
 0xaa3   : > { %1420 = vrot.lane.b32.xlu1 %v10450_v26, %s11882_s17  ;;  %s11930_s17 = smov 80  }
 0xb1f   : > { %v1411_v38 = vpop.xlane.xlu1 %1410 }
 0xb20   : > { %v1412_v39 = vsub.f32 %v1406_v35, %v1411_v38  ;;  %v1712_v35 = vld [vmem:[%s11867_s11 + $0x58] sm:$0xff]  ;;  %v1714_v38 = vld [vmem:[%s11867_s11 + $0x68] sm:$0xff] }
 0xb21   : > { %v9823_v36 = vpack.c.bf16 %v1712_v35, %v1711_v33 }
 0xb22   : > { %v1413_v40 = vmul.f32 1.442695, %v1412_v39  ;;  %v9826_v39 = vpack.c.bf16 %v1714_v38, %v1713_v37 }
 0xb23   : > { %v1421_v41 = vpop.permute.xlu1 %1420 }
 0xb24   : > { %10079 = vpow2.f32 %v1413_v40  ;;  %9155 = vmatpush3.msra.mxu0 %v1421_v41  ;;  %v1715_v40 = vld [vmem:[%s11867_s11 + $0x70] sm:$0xff]  ;;  %v1716_v41 = vld [vmem:[%s11867_s11 + $0x78] sm:$0xff] }
 0xb25   : > { %9801 = vmatprep.subr.bf16.mxu0 %v10263_v10 }
 0xb2e   : > { %v10080_v42 = vpop.eup %10079 }
 0xb2f   : > { %v1415_v43 = vsel %vm619_vm2, %v10080_v42, 0.0 }
 0xb30   : > { %1416 = vadd.xlane.f32.xlu0 %v1415_v43  ;;  %v8468_v43 = vld [vmem:[%s11866_s10] ss:$0 sm:$0xff] }
 0xb5e   : > { %v1326_v26 = vpop.f32.mrb[14].mxu0 }
 0xb5f   : > { %v1330_v45 = vadd.f32 %v1326_v26, %v1089_v12  ;;  %v9148_v46 = vpop.f32.mrb[15].mxu0 }
 0xbbd   : > { %v1417_v47 = vpop.xlane.xlu0 %1416 }
 0xbbe   : > { %10081 = vrcp.f32 %v1417_v47 }
 0xbc8   : > { %v10082_v48 = vpop.eup %10081 }
 0xbc9   : > { %v1419_v49 = vmul.f32 %v10082_v48, %v10080_v42  ;;  %v9829_v42 = vpack.c.bf16 %v1716_v41, %v1715_v40  ;;  %v8482_v41 = vld [vmem:[%s11861_s5 + $0x20] sm:$0xff] }
 0xbcb   : > { %9157 = vmatmul.mubr.msk.f32.vlgmr.msra.gmra.mrb[16].mxu0 %vm619_vm2, %v1419_v49 }
 0xbcc   : > { %9172 = vmatprep.mubr.msk.f32.mxu0 %vm10264_vm1, %v10265_v13 }
 0xc9e   : > { %v1492_v50 = vpop.f32.mrb[16].mxu0 }
 0xc9f   : > { %v9158_v51 = vpop.f32.mrb[17].mxu0  ;;  %9162 = vmatmul.mubr.msk.f32.vlgmr.msra.gmra.mrb[6].mxu1 %vm619_vm2, %v1492_v50 }
 0xca0   : > { %9207 = vmatprep.mubr.msk.f32.mxu1 %vm10264_vm1, %v10265_v13  ;;  %9809 = vmatpush3.bf16.msra.mxu1 %v9808_v8 }
 0xca1   : > { %9810 = vmatprep.subr.bf16.mxu1 %v10263_v10 }
 0xca4   : > { %9812 = vmatpush3.bf16.msra.mxu1 %v9811_v22 }
 0xca5   : > { %9813 = vmatprep.subr.bf16.mxu1 %v10263_v10 }
 0xca8   : > { %9815 = vmatpush3.bf16.msra.mxu1 %v9814_v25 }
 0xca9   : > { %9816 = vmatprep.subr.bf16.mxu1 %v10263_v10 }
 0xcac   : > { %9818 = vmatpush3.bf16.msra.mxu1 %v9817_v29 }
 0xcad   : > { %9819 = vmatprep.subr.bf16.mxu1 %v10263_v10 }
 0xcb0   : > { %9821 = vmatpush3.bf16.msra.mxu1 %v9820_v32 }
 0xcb1   : > { %9822 = vmatprep.subr.bf16.mxu1 %v10263_v10 }
 0xcb4   : > { %9824 = vmatpush3.bf16.msra.mxu1 %v9823_v36 }
 0xcb5   : > { %9825 = vmatprep.subr.bf16.mxu1 %v10263_v10 }
 0xcb8   : > { %9827 = vmatpush3.bf16.msra.mxu1 %v9826_v39 }
 0xcb9   : > { %9828 = vmatprep.subr.bf16.mxu1 %v10263_v10 }
 0xcbc   : > { %9830 = vmatpush3.bf16.msra.mxu1 %v9829_v42 }
 0xcbd   : > { %9246 = vmatprep.subr.mxu1 %v10265_v13 }
 0xd72   : > { %v1565_v52 = vpop.f32.mrb[6].mxu1 }
 0xd73   : > { %v1569_v53 = vadd.f32 %v1565_v52, %v1330_v45  ;;  %v9163_v54 = vpop.f32.mrb[7].mxu1 }
 0xd75   : > { %v1570_v56 = vadd.f32 %v1569_v53, %v10412_v0  ;;  %v1609_v0 = vld [vmem:[%s11865_s9 + $0x8] sm:$0xff] }
 0xd76   : > { %v9802_v2 = vpack.c.bf16 %v1609_v0, %v1608_v1 }
 0xd77   : > { %v10557_v57 = vadd.f32 %v8465_v55, %v1570_v56  ;;  %v8470_v56 = vld [vmem:[%s11868_s12] ss:$0 sm:$0xff] }
 0xd78   : > { %9803 = vmatpush3.bf16.msra.mxu0 %v9802_v2 }
 0xd79   : > { %v1581_v58 = vsel %vm499_vm0, %v10557_v57, 0.0  ;;  %9804 = vmatprep.subr.bf16.mxu0 %v10263_v10 }
 0xd7a   : > { %1582 = vadd.xlane.f32.xlu1 %v1581_v58 }
 0xd7c   : > { %9806 = vmatpush3.bf16.msra.mxu0 %v9805_v5  ;;  %v8477_v5 = vld [vmem:[%s11859_s3 + $0x30] sm:$0xff] }
 0xd7d   : > { %9831 = vmatprep.subr.bf16.mxu0 %v10263_v10  ;;  %v9835_v7 = vpack.c.bf16 %v8478_v6, %v8477_v5 }
 0xe07   : > { %v1583_v59 = vpop.xlane.xlu1 %1582 }
 0xe08   : > { %v1584_v60 = vmul.f32 0.03125, %v1583_v59 }
 0xe0a   : > { %v1585_v61 = vsub.f32 %v10557_v57, %v1584_v60 }
 0xe0c   : > { %v1586_v62 = vmul.f32 %v1585_v61, %v1585_v61 }
 0xe0e   : > { %v1587_v63 = vsel %vm499_vm0, %v1586_v62, 0.0 }
 0xe0f   : > { %1588 = vadd.xlane.f32.xlu0 %v1587_v63 }
 0xe9c   : > { %v1589_v9 = vpop.xlane.xlu0 %1588 }
 0xe9d   : > { %v1590_v11 = vmul.f32 0.03125, %v1589_v9 }
 0xe9f   : > { %v1591_v12 = vadd.f32 1e-05, %v1590_v11 }
 0xea1   : > { %10083 = vrsqrt.f32 %v1591_v12 }
 0xeab   : > { %v10084_v14 = vpop.eup %10083 }
 0xeac   : > { %v1593_v16 = vmul.f32 %v10084_v14, %v1585_v61  ;;  %v8473_v14 = vld [vmem:[%s11857_s1 + $0x1] ss:$0 sm:$0xff] }
 0xeae   : > { %v1600_v18 = vmul.f32 %v8466_v15, %v1593_v16  ;;  %v8474_v16 = vld [vmem:[%s11858_s2 + $0x1] ss:$0 sm:$0xff] }
 0xeb0   : > { %v1607_v19 = vadd.f32 %v8467_v17, %v1600_v18 }
 0xeb2   : > { %9173 = vmatmul.mubr.msk.f32.vlgmr.msra.gmra.mrb[18].mxu0 %vm499_vm0, %v1607_v19  ;;  %v8480_v19 = vld [vmem:[%s11860_s4 + $0x1] ss:$0 sm:$0xff] }
 0xeb3   : > { %9218 = vmatprep.mubr.msk.f32.mxu0 %vm10264_vm1, %v10265_v13 }
 0xf85   : > { %v1688_v44 = vpop.f32.mrb[18].mxu0 }
 0xf86   : > { %v1689_v26 = vadd.f32 %v8468_v43, %v1688_v44  ;;  %v9174_v45 = vpop.f32.mrb[19].mxu0 }
 0xf88   : > { %v1693_v46 = vmul.f32 0.044715, %v1689_v26  ;;  %v1692_v52 = vmul.f32 0.5, %v1689_v26 }
 0xf8a   : > { %v1694_v47 = vmul.f32 %v1693_v46, %v1689_v26 }
 0xf8c   : > { %v1695_v48 = vmul.f32 %v1694_v47, %v1689_v26 }
 0xf8e   : > { %v1696_v49 = vadd.f32 %v1695_v48, %v1689_v26 }
 0xf90   : > { %v1697_v50 = vmul.f32 0.7978846, %v1696_v49 }
 0xf92   : > { %10085 = vtanh.f32 %v1697_v50 }
 0xf9c   : > { %v10086_v51 = vpop.eup %10085 }
 0xf9d   : > { %v1699_v53 = vadd.f32 1.0, %v10086_v51 }
 0xf9f   : > { %v1700_v54 = vmul.f32 %v1699_v53, %v1692_v52 }
 0xfa1   : > { %9208 = vmatmul.mubr.f32.vlgmr.msra.gmra.mrb[8].mxu1 %v1700_v54 }
 0xfa2   : > { %9248 = vmatprep.mubr.msk.f32.mxu1 %vm10264_vm1, %v10265_v13  ;;  %9247 = vmatpush3.msra.mxu1 %v8482_v41 }
 0xfa3   : > { %9256 = vmatprep.subr.mxu1 %v10265_v13 }
0x1074   : > { %v1783_v55 = vpop.f32.mrb[8].mxu1 }
0x1075   : > { %v1787_v58 = vadd.f32 %v1783_v55, %v10557_v57  ;;  %v9209_v59 = vpop.f32.mrb[9].mxu1  ;;  %v8476_v57 = vld [vmem:[%s11859_s3 + $0x28] sm:$0xff] }
0x1076   : > { %v9832_v4 = vpack.c.bf16 %v8476_v57, %v8475_v3  ;;  %v8483_v59 = vld [vmem:[%s11861_s5 + $0x28] sm:$0xff] }
0x1077   : > { %v10651_v60 = vadd.f32 %v8470_v56, %v1787_v58 }
0x1078   : > { %9833 = vmatpush3.bf16.msra.mxu0 %v9832_v4 }
0x1079   : > { %v1800_v61 = vsel %vm499_vm0, %v10651_v60, 0.0  ;;  %9834 = vmatprep.subr.bf16.mxu0 %v10263_v10 }
0x107a   : > { %1801 = vadd.xlane.f32.xlu0 %v1800_v61 }
0x107c   : > { %9836 = vmatpush3.bf16.msra.mxu0 %v9835_v7 }
0x107d   : > { %9221 = vmatprep.subr.mxu0 %v10265_v13 }
0x1107   : > { %v1802_v62 = vpop.xlane.xlu0 %1801 }
0x1108   : > { %v1803_v63 = vmul.f32 0.03125, %v1802_v62 }
0x110a   : > { %v1804_v1 = vsub.f32 %v10651_v60, %v1803_v63 }
0x110c   : > { %v1805_v0 = vmul.f32 %v1804_v1, %v1804_v1 }
0x110e   : > { %v1806_v2 = vsel %vm499_vm0, %v1805_v0, 0.0 }
0x110f   : > { %1807 = vadd.xlane.f32.xlu0 %v1806_v2 }
0x119c   : > { %v1808_v8 = vpop.xlane.xlu0 %1807 }
0x119d   : > { %v1809_v9 = vmul.f32 0.03125, %v1808_v8 }
0x119f   : > { %v1810_v11 = vadd.f32 1e-05, %v1809_v9 }
0x11a1   : > { %10087 = vrsqrt.f32 %v1810_v11 }
0x11ab   : > { %v10088_v12 = vpop.eup %10087 }
0x11ac   : > { %v1812_v15 = vmul.f32 %v10088_v12, %v1804_v1 }
0x11ae   : > { %v1819_v17 = vmul.f32 %v8473_v14, %v1812_v15 }
0x11b0   : > { %v1826_v18 = vadd.f32 %v8474_v16, %v1819_v17 }
0x11b2   : > { %9219 = vmatmul.mubr.msk.f32.vlgmr.msra.gmra.mrb[20].mxu0 %vm499_vm0, %v1826_v18 }
0x11b3   : > { %9223 = vmatprep.mubr.msk.f32.mxu0 %vm10264_vm1, %v10265_v13 }
0x1285   : > { %v1909_v20 = vpop.f32.mrb[20].mxu0 }
0x1286   : > { %v10683_v21 = vadd.f32 %v8480_v19, %v1909_v20  ;;  %v9220_v22 = vpop.f32.mrb[21].mxu0  ;;  %v8484_v20 = vld [vmem:[%s11861_s5 + $0x30] sm:$0xff] }
0x1288   : > { %1919 = vrot.lane.b32.xlu0 %v10683_v21, %s11924_s16 }
0x128c   : > { %2084 = vrot.lane.b32.xlu0 %v10683_v21, %s11925_s20 }
0x1290   : > { %2082 = vrot.lane.b32.xlu0 %v10683_v21, %s11926_s26 }
0x12fa   : > { %v1920_v23 = vpop.permute.xlu0 %1919 }
0x12fb   : > { %9222 = vmatpush3.xpose.msk.msra.mxu0 %vm619_vm2, %v1920_v23 }
0x12fc   : > { %9226 = vmatprep.subr.mxu0 %v10265_v13 }
0x12fe   : > { %9224 = vmatmul.mubr.msk.f32.vlgmr.msra.gmra.mrb[22].mxu0 %vm619_vm2, %v10683_v21  ;;  %v2085_v38 = vpop.permute.xlu0 %2084 }
0x12ff   : > { %9228 = vmatprep.mubr.msk.f32.mxu0 %vm10264_vm1, %v10265_v13 }
0x1302   : > { %v2083_v40 = vpop.permute.xlu0 %2082 }
0x13d1   : > { %v1991_v24 = vpop.f32.mrb[22].mxu0 }
0x13d2   : > { %v1992_v25 = vadd.f32 %v1991_v24, %v10465_v34  ;;  %v9225_v27 = vpop.f32.mrb[23].mxu0 }
0x13d4   : > { %v1995_v28 = vsel %vm619_vm2, %v1992_v25, -inf }
0x13d5   : > { %1996 = vmax.xlane.f32.xlu1 %v1995_v28 }
0x1462   : > { %v1997_v29 = vpop.xlane.xlu1 %1996 }
0x1463   : > { %v1998_v30 = vsub.f32 %v1992_v25, %v1997_v29 }
0x1465   : > { %v1999_v31 = vmul.f32 1.442695, %v1998_v30 }
0x1467   : > { %10089 = vpow2.f32 %v1999_v31 }
0x1471   : > { %v10090_v32 = vpop.eup %10089 }
0x1472   : > { %v2001_v33 = vsel %vm619_vm2, %v10090_v32, 0.0 }
0x1473   : > { %2002 = vadd.xlane.f32.xlu1 %v2001_v33 }
0x1484   : > { %2006 = vrot.lane.b32.xlu1 %v10683_v21, %s11927_s23 }
0x1500   : > { %v2003_v35 = vpop.xlane.xlu1 %2002 }
0x1501   : > { %10091 = vrcp.f32 %v2003_v35  ;;  %v8485_v35 = vld [vmem:[%s11861_s5 + $0x38] sm:$0xff] }
0x1504   : > { %v2007_v36 = vpop.permute.xlu1 %2006 }
0x1505   : > { %9227 = vmatpush3.msra.mxu0 %v2007_v36 }
0x1506   : > { %9231 = vmatprep.subr.mxu0 %v10265_v13 }
0x150b   : > { %v10092_v37 = vpop.eup %10091 }
0x150c   : > { %v2005_v39 = vmul.f32 %v10092_v37, %v10090_v32 }
0x150e   : > { %9229 = vmatmul.mubr.msk.f32.vlgmr.msra.gmra.mrb[24].mxu0 %vm619_vm2, %v2005_v39 }
0x150f   : > { %9232 = vmatpush3.xpose.msk.msra.mxu0 %vm619_vm2, %v2085_v38  ;;  %9233 = vmatprep.mubr.msk.f32.mxu0 %vm10264_vm1, %v10265_v13 }
0x1510   : > { %9236 = vmatprep.subr.mxu0 %v10265_v13 }
0x1512   : > { %9234 = vmatmul.mubr.msk.f32.vlgmr.msra.gmra.mrb[26].mxu0 %vm619_vm2, %v2083_v40 }
0x1513   : > { %9238 = vmatprep.mubr.msk.f32.mxu0 %vm10264_vm1, %v10265_v13 }
0x15e1   : > { %v2078_v42 = vpop.f32.mrb[24].mxu0 }
0x15e2   : > { %v9230_v43 = vpop.f32.mrb[25].mxu0  ;;  %9249 = vmatmul.mubr.msk.f32.vlgmr.msra.gmra.mrb[10].mxu1 %vm619_vm2, %v2078_v42 }
0x15e3   : > { %9258 = vmatprep.mubr.msk.f32.mxu1 %vm10264_vm1, %v10265_v13 }
0x15e5   : > { %v2156_v44 = vpop.f32.mrb[26].mxu0 }
0x15e6   : > { %v2157_v26 = vadd.f32 %v2156_v44, %v10465_v34  ;;  %v9235_v45 = vpop.f32.mrb[27].mxu0 }
0x15e8   : > { %v2160_v46 = vsel %vm619_vm2, %v2157_v26, -inf }
0x15e9   : > { %2161 = vmax.xlane.f32.xlu0 %v2160_v46  ;;  %v8503_v46 = vld [vmem:[%s11862_s6 + $0x1] ss:$0 sm:$0xff] }
0x15ff   : > { %2171 = vrot.lane.b32.xlu0 %v10683_v21, %s11928_s27 }
0x1603   : > { %2393 = vrot.lane.b32.xlu0 %v10683_v21, %s11929_s30 }
0x1676   : > { %v2162_v47 = vpop.xlane.xlu0 %2161 }
0x1677   : > { %v2163_v48 = vsub.f32 %v2157_v26, %v2162_v47 }
0x1679   : > { %v2164_v49 = vmul.f32 1.442695, %v2163_v48 }
0x167a   : > { %v2172_v50 = vpop.permute.xlu0 %2171 }
0x167b   : > { %10093 = vpow2.f32 %v2164_v49  ;;  %9237 = vmatpush3.msra.mxu0 %v2172_v50 }
0x167c   : > { %9241 = vmatprep.subr.mxu0 %v10265_v13 }
0x167e   : > { %v2394_v1 = vpop.permute.xlu0 %2393 }
0x1685   : > { %v10094_v51 = vpop.eup %10093 }
0x1686   : > { %v2166_v52 = vsel %vm619_vm2, %v10094_v51, 0.0 }
0x1687   : > { %2167 = vadd.xlane.f32.xlu1 %v2166_v52 }
0x1698   : > { %2395 = vrot.lane.b32.xlu1 %v10683_v21, %s11930_s17 }
0x16b5   : > { %v2389_v53 = vpop.f32.mrb[10].mxu1 }
0x16b6   : > { %v9250_v54 = vpop.f32.mrb[11].mxu1 }
0x1714   : > { %v2168_v55 = vpop.xlane.xlu1 %2167 }
0x1715   : > { %10095 = vrcp.f32 %v2168_v55  ;;  %v8508_v55 = vld [vmem:[%s11865_s9 + $0x20] sm:$0xff] }
0x1718   : > { %v2396_v62 = vpop.permute.xlu1 %2395 }
0x171f   : > { %v10096_v56 = vpop.eup %10095 }
0x1720   : > { %v2170_v58 = vmul.f32 %v10096_v56, %v10094_v51 }
0x1722   : > { %9239 = vmatmul.mubr.msk.f32.vlgmr.msra.gmra.mrb[28].mxu0 %vm619_vm2, %v2170_v58  ;;  %v8510_v58 = vld [vmem:[%s11865_s9 + $0x30] sm:$0xff] }
0x1723   : > { %9242 = vmatpush3.msra.mxu0 %v8483_v59  ;;  %9243 = vmatprep.mubr.msk.f32.mxu0 %vm10264_vm1, %v10265_v13  ;;  %v8511_v59 = vld [vmem:[%s11865_s9 + $0x38] sm:$0xff] }
0x1724   : > { %9251 = vmatprep.subr.mxu0 %v10265_v13 }
0x17f5   : > { %v2243_v61 = vpop.f32.mrb[28].mxu0 }
0x17f6   : > { %v9240_v63 = vpop.f32.mrb[29].mxu0  ;;  %9244 = vmatmul.mubr.msk.f32.vlgmr.msra.gmra.mrb[30].mxu0 %vm619_vm2, %v2243_v61  ;;  %v9841_v61 = vpack.c.bf16 %v8511_v59, %v8510_v58  ;;  %v8537_v58 = vld [vmem:[%s11859_s3 + $0x40] sm:$0xff] }
0x17f7   : > { %9252 = vmatpush3.xpose.msk.msra.mxu0 %vm619_vm2, %v2396_v62  ;;  %9253 = vmatprep.mubr.msk.f32.mxu0 %vm10264_vm1, %v10265_v13  ;;  %v8515_v62 = vld [vmem:[%s11867_s11 + $0x80] sm:$0xff]  ;;  %v8516_v63 = vld [vmem:[%s11867_s11 + $0x88] sm:$0xff] }
0x17f8   : > { %9261 = vmatprep.subr.mxu0 %v10265_v13 }
0x17fa   : > { %9254 = vmatmul.mubr.msk.f32.vlgmr.msra.gmra.mrb[32].mxu0 %vm619_vm2, %v2394_v1  ;;  %v9844_v1 = vpack.c.bf16 %v8516_v63, %v8515_v62  ;;  %v8540_v62 = vld [vmem:[%s11859_s3 + $0x58] sm:$0xff] }
0x17fb   : > { %9263 = vmatprep.mubr.msk.f32.mxu0 %vm10264_vm1, %v10265_v13  ;;  %9262 = vmatpush3.msra.mxu0 %v8484_v20  ;;  %v8523_v20 = vld [vmem:[%s11867_s11 + $0xc0] sm:$0xff] }
0x17fc   : > { %9271 = vmatprep.subr.mxu0 %v10265_v13 }
0x18c9   : > { %v2316_v0 = vpop.f32.mrb[30].mxu0 }
0x18ca   : > { %v2390_v2 = vadd.f32 %v2389_v53, %v2316_v0  ;;  %v9245_v3 = vpop.f32.mrb[31].mxu0 }
0x18cd   : > { %v2467_v57 = vpop.f32.mrb[32].mxu0 }
0x18ce   : > { %v2468_v4 = vadd.f32 %v2467_v57, %v10465_v34  ;;  %v9255_v5 = vpop.f32.mrb[33].mxu0 }
0x18d0   : > { %v2471_v6 = vsel %vm619_vm2, %v2468_v4, -inf }
0x18d1   : > { %2472 = vmax.xlane.f32.xlu0 %v2471_v6  ;;  %v8507_v6 = vld [vmem:[%s11923_s8 + $0x1] ss:$0 sm:$0xff]  ;;  %s11936_s8 = sld [smem:[#allocation15_spill]] }
0x18e7   : > { %2482 = vrot.lane.b32.xlu0 %v10683_v21, %s11931_s25 }
0x18eb   : > { %2632 = vrot.lane.b32.xlu0 %v10683_v21, %s11932_s0 }
0x195e   : > { %v2473_v7 = vpop.xlane.xlu0 %2472 }
0x195f   : > { %v2474_v8 = vsub.f32 %v2468_v4, %v2473_v7  ;;  %v8506_v4 = vld [vmem:[%s11863_s7 + $0x1] ss:$0 sm:$0xff] }
0x1961   : > { %v2475_v9 = vmul.f32 1.442695, %v2474_v8 }
0x1962   : > { %v2483_v11 = vpop.permute.xlu0 %2482 }
0x1963   : > { %10097 = vpow2.f32 %v2475_v9  ;;  %9257 = vmatpush3.msra.mxu1 %v2483_v11  ;;  %v8517_v9 = vld [vmem:[%s11867_s11 + $0x90] sm:$0xff]  ;;  %v8518_v11 = vld [vmem:[%s11867_s11 + $0x98] sm:$0xff] }
0x1964   : > { %9266 = vmatprep.subr.mxu1 %v10265_v13 }
0x1966   : > { %v2633_v19 = vpop.permute.xlu0 %2632 }
0x196d   : > { %v10098_v12 = vpop.eup %10097 }
0x196e   : > { %v2477_v14 = vsel %vm619_vm2, %v10098_v12, 0.0 }
0x196f   : > { %2478 = vadd.xlane.f32.xlu1 %v2477_v14  ;;  %v8519_v14 = vld [vmem:[%s11867_s11 + $0xa0] sm:$0xff] }
0x1980   : > { %2634 = vrot.lane.b32.xlu1 %v10683_v21, %s11933_s24 }
0x19fc   : > { %v2479_v15 = vpop.xlane.xlu1 %2478 }
0x19fd   : > { %10099 = vrcp.f32 %v2479_v15  ;;  %v8520_v15 = vld [vmem:[%s11867_s11 + $0xa8] sm:$0xff] }
0x1a00   : > { %v2635_v18 = vpop.permute.xlu1 %2634 }
0x1a07   : > { %v10100_v16 = vpop.eup %10099 }
0x1a08   : > { %v2481_v17 = vmul.f32 %v10100_v16, %v10098_v12  ;;  %v9847_v12 = vpack.c.bf16 %v8518_v11, %v8517_v9  ;;  %v9850_v16 = vpack.c.bf16 %v8520_v15, %v8519_v14 }
0x1a0a   : > { %9259 = vmatmul.mubr.msk.f32.vlgmr.msra.gmra.mrb[12].mxu1 %vm619_vm2, %v2481_v17  ;;  %v8521_v17 = vld [vmem:[%s11867_s11 + $0xb0] sm:$0xff] }
0x1a0b   : > { %9267 = vmatpush3.xpose.msk.msra.mxu1 %vm619_vm2, %v2635_v18  ;;  %9268 = vmatprep.mubr.msk.f32.mxu1 %vm10264_vm1, %v10265_v13  ;;  %v8522_v18 = vld [vmem:[%s11867_s11 + $0xb8] sm:$0xff] }
0x1a0c   : > { %9276 = vmatprep.subr.mxu1 %v10265_v13 }
0x1a0e   : > { %9269 = vmatmul.mubr.msk.f32.vlgmr.msra.gmra.mrb[14].mxu1 %vm619_vm2, %v2633_v19  ;;  %v9853_v19 = vpack.c.bf16 %v8522_v18, %v8521_v17 }
0x1a0f   : > { %9278 = vmatprep.mubr.msk.f32.mxu1 %vm10264_vm1, %v10265_v13  ;;  %9277 = vmatpush3.msra.mxu1 %v8485_v35  ;;  %v8513_v35 = vld [vmem:[%s11866_s10 + $0x1] ss:$0 sm:$0xff] }
0x1a10   : > { %9843 = vmatprep.subr.bf16.mxu1 %v10263_v10 }
0x1add   : > { %v2554_v22 = vpop.f32.mrb[12].mxu1 }
0x1ade   : > { %v9260_v23 = vpop.f32.mrb[13].mxu1  ;;  %9264 = vmatmul.mubr.msk.f32.vlgmr.msra.gmra.mrb[34].mxu0 %vm619_vm2, %v2554_v22  ;;  %v8524_v22 = vld [vmem:[%s11867_s11 + $0xc8] sm:$0xff] }
0x1adf   : > { %9273 = vmatprep.mubr.msk.f32.mxu0 %vm10264_vm1, %v10265_v13  ;;  %v9856_v23 = vpack.c.bf16 %v8524_v22, %v8523_v20 }
0x1ae1   : > { %v2706_v24 = vpop.f32.mrb[14].mxu1 }
0x1ae2   : > { %v2707_v25 = vadd.f32 %v2706_v24, %v10465_v34  ;;  %v9270_v27 = vpop.f32.mrb[15].mxu1  ;;  %v8525_v24 = vld [vmem:[%s11867_s11 + $0xd0] sm:$0xff] }
0x1ae4   : > { %v2710_v28 = vsel %vm619_vm2, %v2707_v25, -inf }
0x1ae5   : > { %2711 = vmax.xlane.f32.xlu1 %v2710_v28  ;;  %v8527_v28 = vld [vmem:[%s11867_s11 + $0xe0] sm:$0xff] }
0x1b72   : > { %v2712_v29 = vpop.xlane.xlu1 %2711 }
0x1b73   : > { %v2713_v30 = vsub.f32 %v2707_v25, %v2712_v29  ;;  %v8526_v25 = vld [vmem:[%s11867_s11 + $0xd8] sm:$0xff]  ;;  %v8528_v29 = vld [vmem:[%s11867_s11 + $0xe8] sm:$0xff] }
0x1b74   : > { %v9859_v27 = vpack.c.bf16 %v8526_v25, %v8525_v24 }
0x1b75   : > { %v2714_v31 = vmul.f32 1.442695, %v2713_v30  ;;  %v9862_v30 = vpack.c.bf16 %v8528_v29, %v8527_v28 }
0x1b77   : > { %10101 = vpow2.f32 %v2714_v31  ;;  %v8529_v31 = vld [vmem:[%s11867_s11 + $0xf0] sm:$0xff] }
0x1b81   : > { %v10102_v32 = vpop.eup %10101 }
0x1b82   : > { %v2716_v33 = vsel %vm619_vm2, %v10102_v32, 0.0 }
0x1b83   : > { %2717 = vadd.xlane.f32.xlu0 %v2716_v33 }
0x1b99   : > { %2721 = vrot.lane.b32.xlu0 %v10683_v21, %s11934_s18 }
0x1bb1   : > { %v2627_v36 = vpop.f32.mrb[34].mxu0 }
0x1bb2   : > { %v2631_v37 = vadd.f32 %v2627_v36, %v2390_v2  ;;  %v9265_v38 = vpop.f32.mrb[35].mxu0 }
0x1c10   : > { %v2718_v39 = vpop.xlane.xlu0 %2717 }
0x1c11   : > { %10103 = vrcp.f32 %v2718_v39 }
0x1c14   : > { %v2722_v40 = vpop.permute.xlu0 %2721 }
0x1c15   : > { %9272 = vmatpush3.msra.mxu0 %v2722_v40 }
0x1c16   : > { %9837 = vmatprep.subr.bf16.mxu0 %v10263_v10 }
0x1c1b   : > { %v10104_v41 = vpop.eup %10103 }
0x1c1c   : > { %v2720_v42 = vmul.f32 %v10104_v41, %v10102_v32  ;;  %v8530_v32 = vld [vmem:[%s11867_s11 + $0xf8] sm:$0xff] }
0x1c1d   : > { %v9865_v33 = vpack.c.bf16 %v8530_v32, %v8529_v31  ;;  %v8544_v32 = vld [vmem:[%s11861_s5 + $0x40] sm:$0xff] }
0x1c1e   : > { %9274 = vmatmul.mubr.msk.f32.vlgmr.msra.gmra.mrb[36].mxu0 %vm619_vm2, %v2720_v42 }
0x1c1f   : > { %9289 = vmatprep.mubr.msk.f32.mxu0 %vm10264_vm1, %v10265_v13 }
0x1cf1   : > { %v2793_v21 = vpop.f32.mrb[36].mxu0 }
0x1cf2   : > { %v9275_v43 = vpop.f32.mrb[37].mxu0  ;;  %9279 = vmatmul.mubr.msk.f32.vlgmr.msra.gmra.mrb[16].mxu1 %vm619_vm2, %v2793_v21 }
0x1cf3   : > { %9324 = vmatprep.mubr.msk.f32.mxu1 %vm10264_vm1, %v10265_v13  ;;  %9845 = vmatpush3.bf16.msra.mxu1 %v9844_v1 }
0x1cf4   : > { %9846 = vmatprep.subr.bf16.mxu1 %v10263_v10 }
0x1cf7   : > { %9848 = vmatpush3.bf16.msra.mxu1 %v9847_v12 }
0x1cf8   : > { %9849 = vmatprep.subr.bf16.mxu1 %v10263_v10 }
0x1cfb   : > { %9851 = vmatpush3.bf16.msra.mxu1 %v9850_v16 }
0x1cfc   : > { %9852 = vmatprep.subr.bf16.mxu1 %v10263_v10 }
0x1cff   : > { %9854 = vmatpush3.bf16.msra.mxu1 %v9853_v19 }
0x1d00   : > { %9855 = vmatprep.subr.bf16.mxu1 %v10263_v10 }
0x1d03   : > { %9857 = vmatpush3.bf16.msra.mxu1 %v9856_v23 }
0x1d04   : > { %9858 = vmatprep.subr.bf16.mxu1 %v10263_v10 }
0x1d07   : > { %9860 = vmatpush3.bf16.msra.mxu1 %v9859_v27 }
0x1d08   : > { %9861 = vmatprep.subr.bf16.mxu1 %v10263_v10 }
0x1d0b   : > { %9863 = vmatpush3.bf16.msra.mxu1 %v9862_v30 }
0x1d0c   : > { %9864 = vmatprep.subr.bf16.mxu1 %v10263_v10 }
0x1d0f   : > { %9866 = vmatpush3.bf16.msra.mxu1 %v9865_v33 }
0x1d10   : > { %9363 = vmatprep.subr.mxu1 %v10265_v13 }
0x1dc5   : > { %v2866_v44 = vpop.f32.mrb[16].mxu1 }
0x1dc6   : > { %v2870_v26 = vadd.f32 %v2866_v44, %v2631_v37  ;;  %v9280_v45 = vpop.f32.mrb[17].mxu1 }
0x1dc8   : > { %v2871_v47 = vadd.f32 %v2870_v26, %v10651_v60  ;;  %v8509_v60 = vld [vmem:[%s11865_s9 + $0x28] sm:$0xff] }
0x1dc9   : > { %v9838_v56 = vpack.c.bf16 %v8509_v60, %v8508_v55 }
0x1dca   : > { %v10788_v48 = vadd.f32 %v8503_v46, %v2871_v47  ;;  %v8532_v47 = vld [vmem:[%s11868_s12 + $0x1] ss:$0 sm:$0xff] }
0x1dcb   : > { %9839 = vmatpush3.bf16.msra.mxu0 %v9838_v56 }
0x1dcc   : > { %v2885_v49 = vsel %vm499_vm0, %v10788_v48, 0.0  ;;  %9840 = vmatprep.subr.bf16.mxu0 %v10263_v10 }
0x1dcd   : > { %2886 = vadd.xlane.f32.xlu1 %v2885_v49 }
0x1dcf   : > { %9842 = vmatpush3.bf16.msra.mxu0 %v9841_v61  ;;  %v8539_v61 = vld [vmem:[%s11859_s3 + $0x50] sm:$0xff] }
0x1dd0   : > { %9867 = vmatprep.subr.bf16.mxu0 %v10263_v10  ;;  %v9871_v63 = vpack.c.bf16 %v8540_v62, %v8539_v61 }
0x1e5a   : > { %v2887_v50 = vpop.xlane.xlu1 %2886 }
0x1e5b   : > { %v2888_v51 = vmul.f32 0.03125, %v2887_v50 }
0x1e5d   : > { %v2889_v52 = vsub.f32 %v10788_v48, %v2888_v51 }
0x1e5f   : > { %v2890_v53 = vmul.f32 %v2889_v52, %v2889_v52 }
0x1e61   : > { %v2891_v54 = vsel %vm499_vm0, %v2890_v53, 0.0 }
0x1e62   : > { %2892 = vadd.xlane.f32.xlu1 %v2891_v54 }
0x1eef   : > { %v2893_v0 = vpop.xlane.xlu1 %2892 }
0x1ef0   : > { %v2894_v2 = vmul.f32 0.03125, %v2893_v0 }
0x1ef2   : > { %v2895_v3 = vadd.f32 1e-05, %v2894_v2 }
0x1ef4   : > { %10105 = vrsqrt.f32 %v2895_v3 }
0x1efe   : > { %v10106_v57 = vpop.eup %10105 }
0x1eff   : > { %v2897_v5 = vmul.f32 %v10106_v57, %v2889_v52  ;;  %v8535_v57 = vld [vmem:[%s11857_s1 + $0x2] ss:$0 sm:$0xff] }
0x1f01   : > { %v2904_v7 = vmul.f32 %v8506_v4, %v2897_v5  ;;  %v8536_v5 = vld [vmem:[%s11858_s2 + $0x2] ss:$0 sm:$0xff] }
0x1f03   : > { %v2911_v8 = vadd.f32 %v8507_v6, %v2904_v7 }
0x1f05   : > { %9290 = vmatmul.mubr.msk.f32.vlgmr.msra.gmra.mrb[38].mxu0 %vm499_vm0, %v2911_v8  ;;  %v8542_v8 = vld [vmem:[%s11860_s4 + $0x2] ss:$0 sm:$0xff] }
0x1f06   : > { %9335 = vmatprep.mubr.msk.f32.mxu0 %vm10264_vm1, %v10265_v13 }
0x1fd8   : > { %v2994_v36 = vpop.f32.mrb[38].mxu0 }
0x1fd9   : > { %v2995_v37 = vadd.f32 %v8513_v35, %v2994_v36  ;;  %v9291_v38 = vpop.f32.mrb[39].mxu0 }
0x1fdb   : > { %v2999_v39 = vmul.f32 0.044715, %v2995_v37  ;;  %v2998_v44 = vmul.f32 0.5, %v2995_v37 }
0x1fdd   : > { %v3000_v40 = vmul.f32 %v2999_v39, %v2995_v37 }
0x1fdf   : > { %v3001_v41 = vmul.f32 %v3000_v40, %v2995_v37 }
0x1fe1   : > { %v3002_v42 = vadd.f32 %v3001_v41, %v2995_v37 }
0x1fe3   : > { %v3003_v21 = vmul.f32 0.7978846, %v3002_v42 }
0x1fe5   : > { %10107 = vtanh.f32 %v3003_v21 }
0x1fef   : > { %v10108_v43 = vpop.eup %10107 }
0x1ff0   : > { %v3005_v26 = vadd.f32 1.0, %v10108_v43 }
0x1ff2   : > { %v3006_v45 = vmul.f32 %v3005_v26, %v2998_v44 }
0x1ff4   : > { %9325 = vmatmul.mubr.f32.vlgmr.msra.gmra.mrb[18].mxu1 %v3006_v45 }
0x1ff5   : > { %9365 = vmatprep.mubr.msk.f32.mxu1 %vm10264_vm1, %v10265_v13  ;;  %9364 = vmatpush3.msra.mxu1 %v8544_v32 }
0x1ff6   : > { %9373 = vmatprep.subr.mxu1 %v10265_v13 }
0x20c7   : > { %v3090_v46 = vpop.f32.mrb[18].mxu1 }
0x20c8   : > { %v3094_v49 = vadd.f32 %v3090_v46, %v10788_v48  ;;  %v9326_v50 = vpop.f32.mrb[19].mxu1  ;;  %v8538_v48 = vld [vmem:[%s11859_s3 + $0x48] sm:$0xff] }
0x20c9   : > { %v9868_v59 = vpack.c.bf16 %v8538_v48, %v8537_v58  ;;  %v8545_v50 = vld [vmem:[%s11861_s5 + $0x48] sm:$0xff] }
0x20ca   : > { %v10882_v51 = vadd.f32 %v8532_v47, %v3094_v49 }
0x20cb   : > { %9869 = vmatpush3.bf16.msra.mxu0 %v9868_v59 }
0x20cc   : > { %v3108_v52 = vsel %vm499_vm0, %v10882_v51, 0.0  ;;  %9870 = vmatprep.subr.bf16.mxu0 %v10263_v10 }
0x20cd   : > { %3109 = vadd.xlane.f32.xlu1 %v3108_v52 }
0x20cf   : > { %9872 = vmatpush3.bf16.msra.mxu0 %v9871_v63 }
0x20d0   : > { %9338 = vmatprep.subr.mxu0 %v10265_v13 }
0x215a   : > { %v3110_v53 = vpop.xlane.xlu1 %3109 }
0x215b   : > { %v3111_v54 = vmul.f32 0.03125, %v3110_v53 }
0x215d   : > { %v3112_v55 = vsub.f32 %v10882_v51, %v3111_v54 }
0x215f   : > { %v3113_v60 = vmul.f32 %v3112_v55, %v3112_v55 }
0x2161   : > { %v3114_v56 = vsel %vm499_vm0, %v3113_v60, 0.0 }
0x2162   : > { %3115 = vadd.xlane.f32.xlu1 %v3114_v56 }
0x21ef   : > { %v3116_v1 = vpop.xlane.xlu1 %3115 }
0x21f0   : > { %v3117_v0 = vmul.f32 0.03125, %v3116_v1 }
0x21f2   : > { %v3118_v2 = vadd.f32 1e-05, %v3117_v0 }
0x21f4   : > { %10109 = vrsqrt.f32 %v3118_v2 }
0x21fe   : > { %v10110_v3 = vpop.eup %10109 }
0x21ff   : > { %v3120_v4 = vmul.f32 %v10110_v3, %v3112_v55 }
0x2201   : > { %v3127_v6 = vmul.f32 %v8535_v57, %v3120_v4 }
0x2203   : > { %v3134_v7 = vadd.f32 %v8536_v5, %v3127_v6 }
0x2205   : > { %9336 = vmatmul.mubr.msk.f32.vlgmr.msra.gmra.mrb[40].mxu0 %vm499_vm0, %v3134_v7 }
0x2206   : > { %9340 = vmatprep.mubr.msk.f32.mxu0 %vm10264_vm1, %v10265_v13 }
0x22d8   : > { %v3217_v9 = vpop.f32.mrb[40].mxu0 }
0x22d9   : > { %v10914_v11 = vadd.f32 %v8542_v8, %v3217_v9  ;;  %v9337_v12 = vpop.f32.mrb[41].mxu0  ;;  %v8546_v9 = vld [vmem:[%s11861_s5 + $0x50] sm:$0xff] }
0x22db   : > { %3227 = vrot.lane.b32.xlu1 %v10914_v11, %s11924_s16 }
0x234d   : > { %v3228_v14 = vpop.permute.xlu1 %3227 }
0x234e   : > { %9339 = vmatpush3.xpose.msk.msra.mxu0 %vm619_vm2, %v3228_v14 }
0x234f   : > { %9343 = vmatprep.subr.mxu0 %v10265_v13 }
0x2351   : > { %9341 = vmatmul.mubr.msk.f32.vlgmr.msra.gmra.mrb[42].mxu0 %vm619_vm2, %v10914_v11 }
0x2352   : > { %9345 = vmatprep.mubr.msk.f32.mxu0 %vm10264_vm1, %v10265_v13 }
0x2424   : > { %v3299_v15 = vpop.f32.mrb[42].mxu0 }
0x2425   : > { %v3300_v16 = vadd.f32 %v3299_v15, %v10465_v34  ;;  %v9342_v17 = vpop.f32.mrb[43].mxu0 }
0x2427   : > { %v3303_v18 = vsel %vm619_vm2, %v3300_v16, -inf }
0x2428   : > { %3304 = vmax.xlane.f32.xlu0 %v3303_v18 }
0x243e   : > { %3314 = vrot.lane.b32.xlu0 %v10914_v11, %s11927_s23 }
0x2442   : > { %3390 = vrot.lane.b32.xlu0 %v10914_v11, %s11926_s26 }
0x24b5   : > { %v3305_v19 = vpop.xlane.xlu0 %3304 }
0x24b6   : > { %v3306_v20 = vsub.f32 %v3300_v16, %v3305_v19 }
0x24b8   : > { %v3307_v22 = vmul.f32 1.442695, %v3306_v20 }
0x24b9   : > { %v3315_v23 = vpop.permute.xlu0 %3314 }
0x24ba   : > { %10111 = vpow2.f32 %v3307_v22  ;;  %9344 = vmatpush3.msra.mxu0 %v3315_v23 }
0x24bb   : > { %9348 = vmatprep.subr.mxu0 %v10265_v13 }
0x24bd   : > { %v3391_v31 = vpop.permute.xlu0 %3390 }
0x24c4   : > { %v10112_v24 = vpop.eup %10111 }
0x24c5   : > { %v3309_v25 = vsel %vm619_vm2, %v10112_v24, 0.0 }
0x24c6   : > { %3310 = vadd.xlane.f32.xlu1 %v3309_v25 }
0x24d7   : > { %3392 = vrot.lane.b32.xlu1 %v10914_v11, %s11925_s20 }
0x2553   : > { %v3311_v27 = vpop.xlane.xlu1 %3310 }
0x2554   : > { %10113 = vrcp.f32 %v3311_v27  ;;  %v8547_v27 = vld [vmem:[%s11861_s5 + $0x58] sm:$0xff] }
0x2557   : > { %v3393_v30 = vpop.permute.xlu1 %3392 }
0x255e   : > { %v10114_v28 = vpop.eup %10113 }
0x255f   : > { %v3313_v29 = vmul.f32 %v10114_v28, %v10112_v24 }
0x2561   : > { %9346 = vmatmul.mubr.msk.f32.vlgmr.msra.gmra.mrb[44].mxu0 %vm619_vm2, %v3313_v29 }
0x2562   : > { %9349 = vmatpush3.xpose.msk.msra.mxu0 %vm619_vm2, %v3393_v30  ;;  %9350 = vmatprep.mubr.msk.f32.mxu0 %vm10264_vm1, %v10265_v13 }
0x2563   : > { %9353 = vmatprep.subr.mxu0 %v10265_v13 }
0x2565   : > { %9351 = vmatmul.mubr.msk.f32.vlgmr.msra.gmra.mrb[46].mxu0 %vm619_vm2, %v3391_v31 }
0x2566   : > { %9355 = vmatprep.mubr.msk.f32.mxu0 %vm10264_vm1, %v10265_v13 }
0x2634   : > { %v3386_v33 = vpop.f32.mrb[44].mxu0 }
0x2635   : > { %v9347_v35 = vpop.f32.mrb[45].mxu0  ;;  %9366 = vmatmul.mubr.msk.f32.vlgmr.msra.gmra.mrb[20].mxu1 %vm619_vm2, %v3386_v33 }
0x2636   : > { %9375 = vmatprep.mubr.msk.f32.mxu1 %vm10264_vm1, %v10265_v13 }
0x2638   : > { %v3464_v36 = vpop.f32.mrb[46].mxu0 }
0x2639   : > { %v3465_v37 = vadd.f32 %v3464_v36, %v10465_v34  ;;  %v9352_v38 = vpop.f32.mrb[47].mxu0 }
0x263b   : > { %v3468_v39 = vsel %vm619_vm2, %v3465_v37, -inf }
0x263c   : > { %3469 = vmax.xlane.f32.xlu0 %v3468_v39  ;;  %v8565_v39 = vld [vmem:[%s11862_s6 + $0x2] ss:$0 sm:$0xff] }
0x2652   : > { %3479 = vrot.lane.b32.xlu0 %v10914_v11, %s11928_s27 }
0x2656   : > { %3701 = vrot.lane.b32.xlu0 %v10914_v11, %s11929_s30 }
0x26c9   : > { %v3470_v40 = vpop.xlane.xlu0 %3469 }
0x26ca   : > { %v3471_v41 = vsub.f32 %v3465_v37, %v3470_v40 }
0x26cc   : > { %v3472_v42 = vmul.f32 1.442695, %v3471_v41 }
0x26cd   : > { %v3480_v21 = vpop.permute.xlu0 %3479 }
0x26ce   : > { %10115 = vpow2.f32 %v3472_v42  ;;  %9354 = vmatpush3.msra.mxu0 %v3480_v21 }
0x26cf   : > { %9358 = vmatprep.subr.mxu0 %v10265_v13 }
0x26d1   : > { %v3702_v55 = vpop.permute.xlu0 %3701 }
0x26d8   : > { %v10116_v43 = vpop.eup %10115 }
0x26d9   : > { %v3474_v44 = vsel %vm619_vm2, %v10116_v43, 0.0 }
0x26da   : > { %3475 = vadd.xlane.f32.xlu1 %v3474_v44 }
0x26eb   : > { %3703 = vrot.lane.b32.xlu1 %v10914_v11, %s11930_s17 }
0x2708   : > { %v3697_v26 = vpop.f32.mrb[20].mxu1 }
0x2709   : > { %v9367_v45 = vpop.f32.mrb[21].mxu1 }
0x2767   : > { %v3476_v46 = vpop.xlane.xlu1 %3475 }
0x2768   : > { %10117 = vrcp.f32 %v3476_v46  ;;  %v8570_v46 = vld [vmem:[%s11865_s9 + $0x40] sm:$0xff] }
0x276b   : > { %v3704_v53 = vpop.permute.xlu1 %3703 }
0x2772   : > { %v10118_v47 = vpop.eup %10117 }
0x2773   : > { %v3478_v49 = vmul.f32 %v10118_v47, %v10116_v43 }
0x2775   : > { %9356 = vmatmul.mubr.msk.f32.vlgmr.msra.gmra.mrb[48].mxu0 %vm619_vm2, %v3478_v49  ;;  %v8572_v49 = vld [vmem:[%s11865_s9 + $0x50] sm:$0xff] }
0x2776   : > { %9359 = vmatpush3.msra.mxu0 %v8545_v50  ;;  %9360 = vmatprep.mubr.msk.f32.mxu0 %vm10264_vm1, %v10265_v13  ;;  %v8573_v50 = vld [vmem:[%s11865_s9 + $0x58] sm:$0xff] }
0x2777   : > { %9368 = vmatprep.subr.mxu0 %v10265_v13 }
0x2848   : > { %v3551_v52 = vpop.f32.mrb[48].mxu0 }
0x2849   : > { %v9357_v54 = vpop.f32.mrb[49].mxu0  ;;  %9361 = vmatmul.mubr.msk.f32.vlgmr.msra.gmra.mrb[50].mxu0 %vm619_vm2, %v3551_v52  ;;  %v9877_v52 = vpack.c.bf16 %v8573_v50, %v8572_v49  ;;  %v8599_v49 = vld [vmem:[%s11859_s3 + $0x60] sm:$0xff] }
0x284a   : > { %9369 = vmatpush3.xpose.msk.msra.mxu0 %vm619_vm2, %v3704_v53  ;;  %9370 = vmatprep.mubr.msk.f32.mxu0 %vm10264_vm1, %v10265_v13  ;;  %v8577_v53 = vld [vmem:[%s11867_s11 + $0x100] sm:$0xff]  ;;  %v8578_v54 = vld [vmem:[%s11867_s11 + $0x108] sm:$0xff] }
0x284b   : > { %9378 = vmatprep.subr.mxu0 %v10265_v13 }
0x284d   : > { %9371 = vmatmul.mubr.msk.f32.vlgmr.msra.gmra.mrb[52].mxu0 %vm619_vm2, %v3702_v55  ;;  %v9880_v55 = vpack.c.bf16 %v8578_v54, %v8577_v53  ;;  %v8602_v53 = vld [vmem:[%s11859_s3 + $0x78] sm:$0xff] }
0x284e   : > { %9380 = vmatprep.mubr.msk.f32.mxu0 %vm10264_vm1, %v10265_v13  ;;  %9379 = vmatpush3.msra.mxu0 %v8546_v9  ;;  %v8585_v9 = vld [vmem:[%s11867_s11 + $0x140] sm:$0xff] }
0x284f   : > { %9388 = vmatprep.subr.mxu0 %v10265_v13 }
0x291c   : > { %v3624_v60 = vpop.f32.mrb[50].mxu0 }
0x291d   : > { %v3698_v56 = vadd.f32 %v3697_v26, %v3624_v60  ;;  %v9362_v58 = vpop.f32.mrb[51].mxu0 }
0x2920   : > { %v3775_v48 = vpop.f32.mrb[52].mxu0 }
0x2921   : > { %v3776_v59 = vadd.f32 %v3775_v48, %v10465_v34  ;;  %v9372_v61 = vpop.f32.mrb[53].mxu0 }
0x2923   : > { %v3779_v62 = vsel %vm619_vm2, %v3776_v59, -inf }
0x2924   : > { %3780 = vmax.xlane.f32.xlu0 %v3779_v62  ;;  %v8569_v62 = vld [vmem:[%s11935_s15 + $0x2] ss:$0 sm:$0xff]  ;;  %s11937_s15 = sld [smem:[#allocation15_spill]] }
0x293a   : > { %3790 = vrot.lane.b32.xlu0 %v10914_v11, %s11931_s25 }
0x293e   : > { %3940 = vrot.lane.b32.xlu0 %v10914_v11, %s11932_s0 }
0x29b1   : > { %v3781_v63 = vpop.xlane.xlu0 %3780 }
0x29b2   : > { %v3782_v1 = vsub.f32 %v3776_v59, %v3781_v63  ;;  %v8568_v59 = vld [vmem:[%s11863_s7 + $0x2] ss:$0 sm:$0xff] }
0x29b4   : > { %v3783_v0 = vmul.f32 1.442695, %v3782_v1 }
0x29b5   : > { %v3791_v2 = vpop.permute.xlu0 %3790 }
0x29b6   : > { %10119 = vpow2.f32 %v3783_v0  ;;  %9374 = vmatpush3.msra.mxu1 %v3791_v2  ;;  %v8579_v0 = vld [vmem:[%s11867_s11 + $0x110] sm:$0xff]  ;;  %v8580_v2 = vld [vmem:[%s11867_s11 + $0x118] sm:$0xff] }
0x29b7   : > { %9383 = vmatprep.subr.mxu1 %v10265_v13 }
0x29b9   : > { %v3941_v8 = vpop.permute.xlu0 %3940 }
0x29c0   : > { %v10120_v3 = vpop.eup %10119 }
0x29c1   : > { %v3785_v57 = vsel %vm619_vm2, %v10120_v3, 0.0 }
0x29c2   : > { %3786 = vadd.xlane.f32.xlu1 %v3785_v57  ;;  %v8581_v57 = vld [vmem:[%s11867_s11 + $0x120] sm:$0xff] }
0x29d3   : > { %3942 = vrot.lane.b32.xlu1 %v10914_v11, %s11933_s24 }
0x2a4f   : > { %v3787_v4 = vpop.xlane.xlu1 %3786 }
0x2a50   : > { %10121 = vrcp.f32 %v3787_v4  ;;  %v8582_v4 = vld [vmem:[%s11867_s11 + $0x128] sm:$0xff] }
0x2a53   : > { %v3943_v7 = vpop.permute.xlu1 %3942 }
0x2a5a   : > { %v10122_v5 = vpop.eup %10121 }
0x2a5b   : > { %v3789_v6 = vmul.f32 %v10122_v5, %v10120_v3  ;;  %v9883_v3 = vpack.c.bf16 %v8580_v2, %v8579_v0  ;;  %v9886_v5 = vpack.c.bf16 %v8582_v4, %v8581_v57 }
0x2a5d   : > { %9376 = vmatmul.mubr.msk.f32.vlgmr.msra.gmra.mrb[22].mxu1 %vm619_vm2, %v3789_v6  ;;  %v8583_v6 = vld [vmem:[%s11867_s11 + $0x130] sm:$0xff] }
0x2a5e   : > { %9384 = vmatpush3.xpose.msk.msra.mxu1 %vm619_vm2, %v3943_v7  ;;  %9385 = vmatprep.mubr.msk.f32.mxu1 %vm10264_vm1, %v10265_v13  ;;  %v8584_v7 = vld [vmem:[%s11867_s11 + $0x138] sm:$0xff] }
0x2a5f   : > { %9393 = vmatprep.subr.mxu1 %v10265_v13 }
0x2a61   : > { %9386 = vmatmul.mubr.msk.f32.vlgmr.msra.gmra.mrb[24].mxu1 %vm619_vm2, %v3941_v8  ;;  %v9889_v8 = vpack.c.bf16 %v8584_v7, %v8583_v6 }
0x2a62   : > { %9395 = vmatprep.mubr.msk.f32.mxu1 %vm10264_vm1, %v10265_v13  ;;  %9394 = vmatpush3.msra.mxu1 %v8547_v27 }
0x2a63   : > { %9879 = vmatprep.subr.bf16.mxu1 %v10263_v10 }
0x2b30   : > { %v3862_v12 = vpop.f32.mrb[22].mxu1 }
0x2b31   : > { %v9377_v14 = vpop.f32.mrb[23].mxu1  ;;  %9381 = vmatmul.mubr.msk.f32.vlgmr.msra.gmra.mrb[54].mxu0 %vm619_vm2, %v3862_v12  ;;  %v8586_v12 = vld [vmem:[%s11867_s11 + $0x148] sm:$0xff] }
0x2b32   : > { %9390 = vmatprep.mubr.msk.f32.mxu0 %vm10264_vm1, %v10265_v13  ;;  %v9892_v14 = vpack.c.bf16 %v8586_v12, %v8585_v9 }
0x2b34   : > { %v4014_v15 = vpop.f32.mrb[24].mxu1 }
0x2b35   : > { %v4015_v16 = vadd.f32 %v4014_v15, %v10465_v34  ;;  %v9387_v17 = vpop.f32.mrb[25].mxu1  ;;  %v8587_v15 = vld [vmem:[%s11867_s11 + $0x150] sm:$0xff] }
0x2b37   : > { %v4018_v18 = vsel %vm619_vm2, %v4015_v16, -inf }
0x2b38   : > { %4019 = vmax.xlane.f32.xlu0 %v4018_v18  ;;  %v8589_v18 = vld [vmem:[%s11867_s11 + $0x160] sm:$0xff] }
0x2b4e   : > { %4029 = vrot.lane.b32.xlu0 %v10914_v11, %s11934_s18 }
0x2bc5   : > { %v4020_v19 = vpop.xlane.xlu0 %4019 }
0x2bc6   : > { %v4021_v20 = vsub.f32 %v4015_v16, %v4020_v19  ;;  %v8588_v16 = vld [vmem:[%s11867_s11 + $0x158] sm:$0xff]  ;;  %v8590_v19 = vld [vmem:[%s11867_s11 + $0x168] sm:$0xff] }
0x2bc7   : > { %v9895_v17 = vpack.c.bf16 %v8588_v16, %v8587_v15 }
0x2bc8   : > { %v4022_v22 = vmul.f32 1.442695, %v4021_v20  ;;  %v9898_v20 = vpack.c.bf16 %v8590_v19, %v8589_v18 }
0x2bc9   : > { %v4030_v23 = vpop.permute.xlu0 %4029 }
0x2bca   : > { %10123 = vpow2.f32 %v4022_v22  ;;  %9389 = vmatpush3.msra.mxu0 %v4030_v23  ;;  %v8591_v22 = vld [vmem:[%s11867_s11 + $0x170] sm:$0xff]  ;;  %v8592_v23 = vld [vmem:[%s11867_s11 + $0x178] sm:$0xff] }
0x2bcb   : > { %9873 = vmatprep.subr.bf16.mxu0 %v10263_v10 }
0x2bd4   : > { %v10124_v24 = vpop.eup %10123 }
0x2bd5   : > { %v4024_v25 = vsel %vm619_vm2, %v10124_v24, 0.0 }
0x2bd6   : > { %4025 = vadd.xlane.f32.xlu1 %v4024_v25  ;;  %v8575_v25 = vld [vmem:[%s11866_s10 + $0x2] ss:$0 sm:$0xff] }
0x2c04   : > { %v3935_v11 = vpop.f32.mrb[54].mxu0 }
0x2c05   : > { %v3939_v28 = vadd.f32 %v3935_v11, %v3698_v56  ;;  %v9382_v29 = vpop.f32.mrb[55].mxu0 }
0x2c63   : > { %v4026_v30 = vpop.xlane.xlu1 %4025 }
0x2c64   : > { %10125 = vrcp.f32 %v4026_v30 }
0x2c6e   : > { %v10126_v31 = vpop.eup %10125 }
0x2c6f   : > { %v4028_v32 = vmul.f32 %v10126_v31, %v10124_v24  ;;  %v9901_v24 = vpack.c.bf16 %v8592_v23, %v8591_v22  ;;  %v8606_v23 = vld [vmem:[%s11861_s5 + $0x60] sm:$0xff] }
0x2c71   : > { %9391 = vmatmul.mubr.msk.f32.vlgmr.msra.gmra.mrb[56].mxu0 %vm619_vm2, %v4028_v32 }
0x2c72   : > { %9406 = vmatprep.mubr.msk.f32.mxu0 %vm10264_vm1, %v10265_v13 }
0x2d44   : > { %v4101_v33 = vpop.f32.mrb[56].mxu0 }
0x2d45   : > { %v9392_v35 = vpop.f32.mrb[57].mxu0  ;;  %9396 = vmatmul.mubr.msk.f32.vlgmr.msra.gmra.mrb[26].mxu1 %vm619_vm2, %v4101_v33 }
0x2d46   : > { %9441 = vmatprep.mubr.msk.f32.mxu1 %vm10264_vm1, %v10265_v13  ;;  %9881 = vmatpush3.bf16.msra.mxu1 %v9880_v55 }
0x2d47   : > { %9882 = vmatprep.subr.bf16.mxu1 %v10263_v10 }
0x2d4a   : > { %9884 = vmatpush3.bf16.msra.mxu1 %v9883_v3 }
0x2d4b   : > { %9885 = vmatprep.subr.bf16.mxu1 %v10263_v10 }
0x2d4e   : > { %9887 = vmatpush3.bf16.msra.mxu1 %v9886_v5 }
0x2d4f   : > { %9888 = vmatprep.subr.bf16.mxu1 %v10263_v10 }
0x2d52   : > { %9890 = vmatpush3.bf16.msra.mxu1 %v9889_v8 }
0x2d53   : > { %9891 = vmatprep.subr.bf16.mxu1 %v10263_v10 }
0x2d56   : > { %9893 = vmatpush3.bf16.msra.mxu1 %v9892_v14 }
0x2d57   : > { %9894 = vmatprep.subr.bf16.mxu1 %v10263_v10 }
0x2d5a   : > { %9896 = vmatpush3.bf16.msra.mxu1 %v9895_v17 }
0x2d5b   : > { %9897 = vmatprep.subr.bf16.mxu1 %v10263_v10 }
0x2d5e   : > { %9899 = vmatpush3.bf16.msra.mxu1 %v9898_v20 }
0x2d5f   : > { %9900 = vmatprep.subr.bf16.mxu1 %v10263_v10 }
0x2d62   : > { %9902 = vmatpush3.bf16.msra.mxu1 %v9901_v24 }
0x2d63   : > { %9480 = vmatprep.subr.mxu1 %v10265_v13 }
0x2e18   : > { %v4174_v36 = vpop.f32.mrb[26].mxu1 }
0x2e19   : > { %v4178_v37 = vadd.f32 %v4174_v36, %v3939_v28  ;;  %v9397_v38 = vpop.f32.mrb[27].mxu1 }
0x2e1b   : > { %v4179_v40 = vadd.f32 %v4178_v37, %v10882_v51  ;;  %v8571_v51 = vld [vmem:[%s11865_s9 + $0x48] sm:$0xff] }
0x2e1c   : > { %v9874_v47 = vpack.c.bf16 %v8571_v51, %v8570_v46 }
0x2e1d   : > { %v11019_v41 = vadd.f32 %v8565_v39, %v4179_v40  ;;  %v8594_v40 = vld [vmem:[%s11868_s12 + $0x2] ss:$0 sm:$0xff] }
0x2e1e   : > { %9875 = vmatpush3.bf16.msra.mxu0 %v9874_v47 }
0x2e1f   : > { %v4193_v42 = vsel %vm499_vm0, %v11019_v41, 0.0  ;;  %9876 = vmatprep.subr.bf16.mxu0 %v10263_v10 }
0x2e20   : > { %4194 = vadd.xlane.f32.xlu1 %v4193_v42 }
0x2e22   : > { %9878 = vmatpush3.bf16.msra.mxu0 %v9877_v52  ;;  %v8601_v52 = vld [vmem:[%s11859_s3 + $0x70] sm:$0xff] }
0x2e23   : > { %9903 = vmatprep.subr.bf16.mxu0 %v10263_v10  ;;  %v9907_v54 = vpack.c.bf16 %v8602_v53, %v8601_v52 }
0x2ead   : > { %v4195_v21 = vpop.xlane.xlu1 %4194 }
0x2eae   : > { %v4196_v43 = vmul.f32 0.03125, %v4195_v21 }
0x2eb0   : > { %v4197_v44 = vsub.f32 %v11019_v41, %v4196_v43 }
0x2eb2   : > { %v4198_v26 = vmul.f32 %v4197_v44, %v4197_v44 }
0x2eb4   : > { %v4199_v45 = vsel %vm499_vm0, %v4198_v26, 0.0 }
0x2eb5   : > { %4200 = vadd.xlane.f32.xlu1 %v4199_v45 }
0x2f42   : > { %v4201_v60 = vpop.xlane.xlu1 %4200 }
0x2f43   : > { %v4202_v56 = vmul.f32 0.03125, %v4201_v60 }
0x2f45   : > { %v4203_v58 = vadd.f32 1e-05, %v4202_v56 }
0x2f47   : > { %10127 = vrsqrt.f32 %v4203_v58 }
0x2f51   : > { %v10128_v48 = vpop.eup %10127 }
0x2f52   : > { %v4205_v61 = vmul.f32 %v10128_v48, %v4197_v44  ;;  %v8597_v48 = vld [vmem:[%s11857_s1 + $0x3] ss:$0 sm:$0xff] }
0x2f54   : > { %v4212_v63 = vmul.f32 %v8568_v59, %v4205_v61  ;;  %v8598_v61 = vld [vmem:[%s11858_s2 + $0x3] ss:$0 sm:$0xff] }
0x2f56   : > { %v4219_v1 = vadd.f32 %v8569_v62, %v4212_v63 }
0x2f58   : > { %9407 = vmatmul.mubr.msk.f32.vlgmr.msra.gmra.mrb[58].mxu0 %vm499_vm0, %v4219_v1  ;;  %v8604_v1 = vld [vmem:[%s11860_s4 + $0x3] ss:$0 sm:$0xff] }
0x2f59   : > { %9452 = vmatprep.mubr.msk.f32.mxu0 %vm10264_vm1, %v10265_v13 }
0x302b   : > { %v4302_v27 = vpop.f32.mrb[58].mxu0 }
0x302c   : > { %v4303_v11 = vadd.f32 %v8575_v25, %v4302_v27  ;;  %v9408_v28 = vpop.f32.mrb[59].mxu0 }
0x302e   : > { %v4307_v29 = vmul.f32 0.044715, %v4303_v11  ;;  %v4306_v36 = vmul.f32 0.5, %v4303_v11 }
0x3030   : > { %v4308_v30 = vmul.f32 %v4307_v29, %v4303_v11 }
0x3032   : > { %v4309_v31 = vmul.f32 %v4308_v30, %v4303_v11 }
0x3034   : > { %v4310_v32 = vadd.f32 %v4309_v31, %v4303_v11 }
0x3036   : > { %v4311_v33 = vmul.f32 0.7978846, %v4310_v32 }
0x3038   : > { %10129 = vtanh.f32 %v4311_v33 }
0x3042   : > { %v10130_v35 = vpop.eup %10129 }
0x3043   : > { %v4313_v37 = vadd.f32 1.0, %v10130_v35 }
0x3045   : > { %v4314_v38 = vmul.f32 %v4313_v37, %v4306_v36 }
0x3047   : > { %9442 = vmatmul.mubr.f32.vlgmr.msra.gmra.mrb[28].mxu1 %v4314_v38 }
0x3048   : > { %9482 = vmatprep.mubr.msk.f32.mxu1 %vm10264_vm1, %v10265_v13  ;;  %9481 = vmatpush3.msra.mxu1 %v8606_v23 }
0x3049   : > { %9490 = vmatprep.subr.mxu1 %v10265_v13 }
0x311a   : > { %v4398_v39 = vpop.f32.mrb[28].mxu1 }
0x311b   : > { %v4402_v42 = vadd.f32 %v4398_v39, %v11019_v41  ;;  %v9443_v21 = vpop.f32.mrb[29].mxu1  ;;  %v8600_v41 = vld [vmem:[%s11859_s3 + $0x68] sm:$0xff] }
0x311c   : > { %v9904_v50 = vpack.c.bf16 %v8600_v41, %v8599_v49  ;;  %v8607_v21 = vld [vmem:[%s11861_s5 + $0x68] sm:$0xff] }
0x311d   : > { %v11113_v43 = vadd.f32 %v8594_v40, %v4402_v42 }
0x311e   : > { %9905 = vmatpush3.bf16.msra.mxu0 %v9904_v50 }
0x311f   : > { %v4416_v44 = vsel %vm499_vm0, %v11113_v43, 0.0  ;;  %9906 = vmatprep.subr.bf16.mxu0 %v10263_v10 }
0x3120   : > { %4417 = vadd.xlane.f32.xlu1 %v4416_v44 }
0x3122   : > { %9908 = vmatpush3.bf16.msra.mxu0 %v9907_v54 }
0x3123   : > { %9455 = vmatprep.subr.mxu0 %v10265_v13 }
0x31ad   : > { %v4418_v26 = vpop.xlane.xlu1 %4417 }
0x31ae   : > { %v4419_v45 = vmul.f32 0.03125, %v4418_v26 }
0x31b0   : > { %v4420_v46 = vsub.f32 %v11113_v43, %v4419_v45 }
0x31b2   : > { %v4421_v51 = vmul.f32 %v4420_v46, %v4420_v46 }
0x31b4   : > { %v4422_v47 = vsel %vm499_vm0, %v4421_v51, 0.0 }
0x31b5   : > { %4423 = vadd.xlane.f32.xlu1 %v4422_v47 }
0x3242   : > { %v4424_v55 = vpop.xlane.xlu1 %4423 }
0x3243   : > { %v4425_v60 = vmul.f32 0.03125, %v4424_v55 }
0x3245   : > { %v4426_v56 = vadd.f32 1e-05, %v4425_v60 }
0x3247   : > { %10131 = vrsqrt.f32 %v4426_v56 }
0x3251   : > { %v10132_v58 = vpop.eup %10131 }
0x3252   : > { %v4428_v59 = vmul.f32 %v10132_v58, %v4420_v46 }
0x3254   : > { %v4435_v62 = vmul.f32 %v8597_v48, %v4428_v59 }
0x3256   : > { %v4442_v63 = vadd.f32 %v8598_v61, %v4435_v62 }
0x3258   : > { %9453 = vmatmul.mubr.msk.f32.vlgmr.msra.gmra.mrb[60].mxu0 %vm499_vm0, %v4442_v63 }
0x3259   : > { %9457 = vmatprep.mubr.msk.f32.mxu0 %vm10264_vm1, %v10265_v13 }
0x332b   : > { %v4525_v0 = vpop.f32.mrb[60].mxu0 }
0x332c   : > { %v11145_v2 = vadd.f32 %v8604_v1, %v4525_v0  ;;  %v9454_v3 = vpop.f32.mrb[61].mxu0  ;;  %v8608_v0 = vld [vmem:[%s11861_s5 + $0x70] sm:$0xff] }
0x332e   : > { %4535 = vrot.lane.b32.xlu0 %v11145_v2, %s11924_s16 }
0x33a0   : > { %v4536_v57 = vpop.permute.xlu0 %4535 }
0x33a1   : > { %9456 = vmatpush3.xpose.msk.msra.mxu0 %vm619_vm2, %v4536_v57 }
0x33a2   : > { %9460 = vmatprep.subr.mxu0 %v10265_v13 }
0x33a4   : > { %9458 = vmatmul.mubr.msk.f32.vlgmr.msra.gmra.mrb[62].mxu0 %vm619_vm2, %v11145_v2 }
0x33a5   : > { %9462 = vmatprep.mubr.msk.f32.mxu0 %vm10264_vm1, %v10265_v13 }
0x3477   : > { %v4607_v4 = vpop.f32.mrb[62].mxu0 }
0x3478   : > { %v4608_v5 = vadd.f32 %v4607_v4, %v10465_v34  ;;  %v9459_v6 = vpop.f32.mrb[63].mxu0 }
0x347a   : > { %v4611_v7 = vsel %vm619_vm2, %v4608_v5, -inf }
0x347b   : > { %4612 = vmax.xlane.f32.xlu1 %v4611_v7 }
0x348c   : > { %4622 = vrot.lane.b32.xlu1 %v11145_v2, %s11927_s23 }
0x3490   : > { %4700 = vrot.lane.b32.xlu1 %v11145_v2, %s11925_s20 }
0x3494   : > { %4698 = vrot.lane.b32.xlu1 %v11145_v2, %s11926_s26 }
0x3508   : > { %v4613_v8 = vpop.xlane.xlu1 %4612 }
0x3509   : > { %v4614_v9 = vsub.f32 %v4608_v5, %v4613_v8 }
0x350b   : > { %v4615_v12 = vmul.f32 1.442695, %v4614_v9 }
0x350c   : > { %v4623_v14 = vpop.permute.xlu1 %4622 }
0x350d   : > { %10133 = vpow2.f32 %v4615_v12  ;;  %9461 = vmatpush3.msra.mxu0 %v4623_v14 }
0x350e   : > { %9465 = vmatprep.subr.mxu0 %v10265_v13 }
0x3510   : > { %v4701_v19 = vpop.permute.xlu1 %4700 }
0x3514   : > { %v4699_v22 = vpop.permute.xlu1 %4698 }
0x3517   : > { %v10134_v15 = vpop.eup %10133 }
0x3518   : > { %v4617_v16 = vsel %vm619_vm2, %v10134_v15, 0.0 }
0x3519   : > { %4618 = vadd.xlane.f32.xlu0 %v4617_v16  ;;  %v8609_v16 = vld [vmem:[%s11861_s5 + $0x78] sm:$0xff] }
0x35a6   : > { %v4619_v17 = vpop.xlane.xlu0 %4618 }
0x35a7   : > { %10135 = vrcp.f32 %v4619_v17 }
0x35b1   : > { %v10136_v18 = vpop.eup %10135 }
0x35b2   : > { %v4621_v20 = vmul.f32 %v10136_v18, %v10134_v15 }
0x35b4   : > { %9463 = vmatmul.mubr.msk.f32.vlgmr.msra.gmra.mrb[64].mxu0 %vm619_vm2, %v4621_v20 }
0x35b5   : > { %9466 = vmatpush3.xpose.msk.msra.mxu0 %vm619_vm2, %v4701_v19  ;;  %9467 = vmatprep.mubr.msk.f32.mxu0 %vm10264_vm1, %v10265_v13 }
0x35b6   : > { %9470 = vmatprep.subr.mxu0 %v10265_v13 }
0x35b8   : > { %9468 = vmatmul.mubr.msk.f32.vlgmr.msra.gmra.mrb[66].mxu0 %vm619_vm2, %v4699_v22 }
0x35b9   : > { %9472 = vmatprep.mubr.msk.f32.mxu0 %vm10264_vm1, %v10265_v13 }
0x3687   : > { %v4694_v24 = vpop.f32.mrb[64].mxu0 }
0x3688   : > { %v9464_v25 = vpop.f32.mrb[65].mxu0  ;;  %9483 = vmatmul.mubr.msk.f32.vlgmr.msra.gmra.mrb[30].mxu1 %vm619_vm2, %v4694_v24 }
0x3689   : > { %9492 = vmatprep.mubr.msk.f32.mxu1 %vm10264_vm1, %v10265_v13 }
0x368b   : > { %v4772_v27 = vpop.f32.mrb[66].mxu0 }
0x368c   : > { %v4773_v11 = vadd.f32 %v4772_v27, %v10465_v34  ;;  %v9469_v28 = vpop.f32.mrb[67].mxu0 }
0x368e   : > { %v4776_v29 = vsel %vm619_vm2, %v4773_v11, -inf }
0x368f   : > { %4777 = vmax.xlane.f32.xlu1 %v4776_v29  ;;  %v8627_v29 = vld [vmem:[%s11862_s6 + $0x3] ss:$0 sm:$0xff] }
0x371c   : > { %v4778_v30 = vpop.xlane.xlu1 %4777 }
0x371d   : > { %v4779_v31 = vsub.f32 %v4773_v11, %v4778_v30 }
0x371f   : > { %v4780_v32 = vmul.f32 1.442695, %v4779_v31 }
0x3721   : > { %10137 = vpow2.f32 %v4780_v32 }
0x372b   : > { %v10138_v33 = vpop.eup %10137 }
0x372c   : > { %v4782_v35 = vsel %vm619_vm2, %v10138_v33, 0.0 }
0x372d   : > { %4783 = vadd.xlane.f32.xlu0 %v4782_v35 }
0x3743   : > { %4787 = vrot.lane.b32.xlu0 %v11145_v2, %s11928_s27 }
0x3747   : > { %5011 = vrot.lane.b32.xlu0 %v11145_v2, %s11930_s17 }
0x374b   : > { %5009 = vrot.lane.b32.xlu0 %v11145_v2, %s11929_s30 }
0x375b   : > { %v5005_v36 = vpop.f32.mrb[30].mxu1 }
0x375c   : > { %v9484_v37 = vpop.f32.mrb[31].mxu1 }
0x37ba   : > { %v4784_v38 = vpop.xlane.xlu0 %4783 }
0x37bb   : > { %10139 = vrcp.f32 %v4784_v38 }
0x37be   : > { %v4788_v39 = vpop.permute.xlu0 %4787 }
0x37bf   : > { %9471 = vmatpush3.msra.mxu0 %v4788_v39  ;;  %v8632_v39 = vld [vmem:[%s11865_s9 + $0x60] sm:$0xff] }
0x37c0   : > { %9475 = vmatprep.subr.mxu0 %v10265_v13 }
0x37c2   : > { %v5012_v44 = vpop.permute.xlu0 %5011 }
0x37c5   : > { %v10140_v40 = vpop.eup %10139 }
0x37c6   : > { %v4786_v42 = vmul.f32 %v10140_v40, %v10138_v33  ;;  %v5010_v46 = vpop.permute.xlu0 %5009 }
0x37c8   : > { %9473 = vmatmul.mubr.msk.f32.vlgmr.msra.gmra.mrb[68].mxu0 %vm619_vm2, %v4786_v42  ;;  %v8634_v42 = vld [vmem:[%s11865_s9 + $0x70] sm:$0xff] }
0x37c9   : > { %9476 = vmatpush3.msra.mxu0 %v8607_v21  ;;  %9477 = vmatprep.mubr.msk.f32.mxu0 %vm10264_vm1, %v10265_v13  ;;  %v8635_v21 = vld [vmem:[%s11865_s9 + $0x78] sm:$0xff] }
0x37ca   : > { %9485 = vmatprep.subr.mxu0 %v10265_v13 }
0x389b   : > { %v4859_v26 = vpop.f32.mrb[68].mxu0 }
0x389c   : > { %v9474_v45 = vpop.f32.mrb[69].mxu0  ;;  %9478 = vmatmul.mubr.msk.f32.vlgmr.msra.gmra.mrb[70].mxu0 %vm619_vm2, %v4859_v26  ;;  %v8639_v26 = vld [vmem:[%s11867_s11 + $0x180] sm:$0xff] }
0x389d   : > { %9486 = vmatpush3.xpose.msk.msra.mxu0 %vm619_vm2, %v5012_v44  ;;  %9487 = vmatprep.mubr.msk.f32.mxu0 %vm10264_vm1, %v10265_v13  ;;  %v9913_v44 = vpack.c.bf16 %v8635_v21, %v8634_v42  ;;  %v8640_v45 = vld [vmem:[%s11867_s11 + $0x188] sm:$0xff]  ;;  %v8661_v42 = vld [vmem:[%s11859_s3 + $0x80] sm:$0xff] }
0x389e   : > { %9495 = vmatprep.subr.mxu0 %v10265_v13 }
0x38a0   : > { %9488 = vmatmul.mubr.msk.f32.vlgmr.msra.gmra.mrb[72].mxu0 %vm619_vm2, %v5010_v46  ;;  %v9916_v46 = vpack.c.bf16 %v8640_v45, %v8639_v26  ;;  %v8664_v26 = vld [vmem:[%s11859_s3 + $0x98] sm:$0xff] }
0x38a1   : > { %9497 = vmatprep.mubr.msk.f32.mxu0 %vm10264_vm1, %v10265_v13  ;;  %9496 = vmatpush3.msra.mxu0 %v8608_v0  ;;  %v8647_v0 = vld [vmem:[%s11867_s11 + $0x1c0] sm:$0xff] }
0x38a2   : > { %9505 = vmatprep.subr.mxu0 %v10265_v13 }
0x396f   : > { %v4932_v51 = vpop.f32.mrb[70].mxu0 }
0x3970   : > { %v5006_v47 = vadd.f32 %v5005_v36, %v4932_v51  ;;  %v9479_v49 = vpop.f32.mrb[71].mxu0 }
0x3973   : > { %v5083_v41 = vpop.f32.mrb[72].mxu0 }
0x3974   : > { %v5084_v50 = vadd.f32 %v5083_v41, %v10465_v34  ;;  %v9489_v52 = vpop.f32.mrb[73].mxu0 }
0x3976   : > { %v5087_v53 = vsel %vm619_vm2, %v5084_v50, -inf }
0x3977   : > { %5088 = vmax.xlane.f32.xlu1 %v5087_v53  ;;  %v8631_v53 = vld [vmem:[%s11936_s8 + $0x3] ss:$0 sm:$0xff]  ;;  %s11939_s8 = sld [smem:[#allocation6_spill]] }
0x3988   : > { %5098 = vrot.lane.b32.xlu1 %v11145_v2, %s11931_s25 }
0x398c   : > { %5250 = vrot.lane.b32.xlu1 %v11145_v2, %s11933_s24 }
0x3990   : > { %5248 = vrot.lane.b32.xlu1 %v11145_v2, %s11932_s0 }
0x3a04   : > { %v5089_v54 = vpop.xlane.xlu1 %5088 }
0x3a05   : > { %v5090_v55 = vsub.f32 %v5084_v50, %v5089_v54  ;;  %v8630_v50 = vld [vmem:[%s11863_s7 + $0x3] ss:$0 sm:$0xff] }
0x3a07   : > { %v5091_v60 = vmul.f32 1.442695, %v5090_v55 }
0x3a08   : > { %v5099_v56 = vpop.permute.xlu1 %5098 }
0x3a09   : > { %10141 = vpow2.f32 %v5091_v60  ;;  %9491 = vmatpush3.msra.mxu1 %v5099_v56  ;;  %v8641_v60 = vld [vmem:[%s11867_s11 + $0x190] sm:$0xff]  ;;  %v8642_v56 = vld [vmem:[%s11867_s11 + $0x198] sm:$0xff] }
0x3a0a   : > { %9500 = vmatprep.subr.mxu1 %v10265_v13 }
0x3a0c   : > { %v5251_v62 = vpop.permute.xlu1 %5250 }
0x3a10   : > { %v5249_v1 = vpop.permute.xlu1 %5248 }
0x3a13   : > { %v10142_v58 = vpop.eup %10141 }
0x3a14   : > { %v5093_v48 = vsel %vm619_vm2, %v10142_v58, 0.0 }
0x3a15   : > { %5094 = vadd.xlane.f32.xlu0 %v5093_v48  ;;  %v8643_v48 = vld [vmem:[%s11867_s11 + $0x1a0] sm:$0xff] }
0x3aa2   : > { %v5095_v59 = vpop.xlane.xlu0 %5094 }
0x3aa3   : > { %10143 = vrcp.f32 %v5095_v59  ;;  %v8644_v59 = vld [vmem:[%s11867_s11 + $0x1a8] sm:$0xff] }
0x3aad   : > { %v10144_v61 = vpop.eup %10143 }
0x3aae   : > { %v5097_v63 = vmul.f32 %v10144_v61, %v10142_v58  ;;  %v9919_v58 = vpack.c.bf16 %v8642_v56, %v8641_v60  ;;  %v9922_v61 = vpack.c.bf16 %v8644_v59, %v8643_v48 }
0x3ab0   : > { %9493 = vmatmul.mubr.msk.f32.vlgmr.msra.gmra.mrb[32].mxu1 %vm619_vm2, %v5097_v63  ;;  %v8646_v63 = vld [vmem:[%s11867_s11 + $0x1b8] sm:$0xff] }
0x3ab1   : > { %9501 = vmatpush3.xpose.msk.msra.mxu1 %vm619_vm2, %v5251_v62  ;;  %9502 = vmatprep.mubr.msk.f32.mxu1 %vm10264_vm1, %v10265_v13  ;;  %v8645_v62 = vld [vmem:[%s11867_s11 + $0x1b0] sm:$0xff] }
0x3ab2   : > { %9510 = vmatprep.subr.mxu1 %v10265_v13 }
0x3ab4   : > { %9503 = vmatmul.mubr.msk.f32.vlgmr.msra.gmra.mrb[34].mxu1 %vm619_vm2, %v5249_v1  ;;  %v9925_v1 = vpack.c.bf16 %v8646_v63, %v8645_v62 }
0x3ab5   : > { %9512 = vmatprep.mubr.msk.f32.mxu1 %vm10264_vm1, %v10265_v13  ;;  %9511 = vmatpush3.msra.mxu1 %v8609_v16  ;;  %v8637_v16 = vld [vmem:[%s11866_s10 + $0x3] ss:$0 sm:$0xff] }
0x3ab6   : > { %9915 = vmatprep.subr.bf16.mxu1 %v10263_v10 }
0x3b83   : > { %v5170_v3 = vpop.f32.mrb[32].mxu1 }
0x3b84   : > { %v9494_v57 = vpop.f32.mrb[33].mxu1  ;;  %9498 = vmatmul.mubr.msk.f32.vlgmr.msra.gmra.mrb[74].mxu0 %vm619_vm2, %v5170_v3  ;;  %v8648_v3 = vld [vmem:[%s11867_s11 + $0x1c8] sm:$0xff] }
0x3b85   : > { %9507 = vmatprep.mubr.msk.f32.mxu0 %vm10264_vm1, %v10265_v13  ;;  %v9928_v57 = vpack.c.bf16 %v8648_v3, %v8647_v0 }
0x3b87   : > { %v5322_v4 = vpop.f32.mrb[34].mxu1 }
0x3b88   : > { %v5323_v5 = vadd.f32 %v5322_v4, %v10465_v34  ;;  %v9504_v6 = vpop.f32.mrb[35].mxu1  ;;  %v8649_v4 = vld [vmem:[%s11867_s11 + $0x1d0] sm:$0xff] }
0x3b8a   : > { %v5326_v7 = vsel %vm619_vm2, %v5323_v5, -inf }
0x3b8b   : > { %5327 = vmax.xlane.f32.xlu1 %v5326_v7  ;;  %v8651_v7 = vld [vmem:[%s11867_s11 + $0x1e0] sm:$0xff] }
0x3c18   : > { %v5328_v8 = vpop.xlane.xlu1 %5327 }
0x3c19   : > { %v5329_v9 = vsub.f32 %v5323_v5, %v5328_v8  ;;  %v8650_v5 = vld [vmem:[%s11867_s11 + $0x1d8] sm:$0xff]  ;;  %v8652_v8 = vld [vmem:[%s11867_s11 + $0x1e8] sm:$0xff] }
0x3c1a   : > { %v9931_v6 = vpack.c.bf16 %v8650_v5, %v8649_v4 }
0x3c1b   : > { %v5330_v12 = vmul.f32 1.442695, %v5329_v9  ;;  %v9934_v9 = vpack.c.bf16 %v8652_v8, %v8651_v7 }
0x3c1d   : > { %10145 = vpow2.f32 %v5330_v12  ;;  %v8653_v12 = vld [vmem:[%s11867_s11 + $0x1f0] sm:$0xff] }
0x3c27   : > { %v10146_v14 = vpop.eup %10145 }
0x3c28   : > { %v5332_v15 = vsel %vm619_vm2, %v10146_v14, 0.0 }
0x3c29   : > { %5333 = vadd.xlane.f32.xlu0 %v5332_v15 }
0x3c3f   : > { %5337 = vrot.lane.b32.xlu0 %v11145_v2, %s11934_s18 }
0x3c57   : > { %v5243_v17 = vpop.f32.mrb[74].mxu0 }
0x3c58   : > { %v5247_v18 = vadd.f32 %v5243_v17, %v5006_v47  ;;  %v9499_v19 = vpop.f32.mrb[75].mxu0 }
0x3cb6   : > { %v5334_v20 = vpop.xlane.xlu0 %5333 }
0x3cb7   : > { %10147 = vrcp.f32 %v5334_v20 }
0x3cba   : > { %v5338_v22 = vpop.permute.xlu0 %5337 }
0x3cbb   : > { %9506 = vmatpush3.msra.mxu0 %v5338_v22 }
0x3cbc   : > { %9909 = vmatprep.subr.bf16.mxu0 %v10263_v10 }
0x3cc1   : > { %v10148_v23 = vpop.eup %10147 }
0x3cc2   : > { %v5336_v24 = vmul.f32 %v10148_v23, %v10146_v14  ;;  %v8654_v14 = vld [vmem:[%s11867_s11 + $0x1f8] sm:$0xff] }
0x3cc3   : > { %v9937_v15 = vpack.c.bf16 %v8654_v14, %v8653_v12  ;;  %v8668_v14 = vld [vmem:[%s11861_s5 + $0x80] sm:$0xff] }
0x3cc4   : > { %9508 = vmatmul.mubr.msk.f32.vlgmr.msra.gmra.mrb[76].mxu0 %vm619_vm2, %v5336_v24 }
0x3cc5   : > { %9523 = vmatprep.mubr.msk.f32.mxu0 %vm10264_vm1, %v10265_v13 }
0x3d97   : > { %v5409_v2 = vpop.f32.mrb[76].mxu0 }
0x3d98   : > { %v9509_v25 = vpop.f32.mrb[77].mxu0  ;;  %9513 = vmatmul.mubr.msk.f32.vlgmr.msra.gmra.mrb[36].mxu1 %vm619_vm2, %v5409_v2 }
0x3d99   : > { %9558 = vmatprep.mubr.msk.f32.mxu1 %vm10264_vm1, %v10265_v13  ;;  %9917 = vmatpush3.bf16.msra.mxu1 %v9916_v46 }
0x3d9a   : > { %9918 = vmatprep.subr.bf16.mxu1 %v10263_v10 }
0x3d9d   : > { %9920 = vmatpush3.bf16.msra.mxu1 %v9919_v58 }
0x3d9e   : > { %9921 = vmatprep.subr.bf16.mxu1 %v10263_v10 }
0x3da1   : > { %9923 = vmatpush3.bf16.msra.mxu1 %v9922_v61 }
0x3da2   : > { %9924 = vmatprep.subr.bf16.mxu1 %v10263_v10 }
0x3da5   : > { %9926 = vmatpush3.bf16.msra.mxu1 %v9925_v1 }
0x3da6   : > { %9927 = vmatprep.subr.bf16.mxu1 %v10263_v10 }
0x3da9   : > { %9929 = vmatpush3.bf16.msra.mxu1 %v9928_v57 }
0x3daa   : > { %9930 = vmatprep.subr.bf16.mxu1 %v10263_v10 }
0x3dad   : > { %9932 = vmatpush3.bf16.msra.mxu1 %v9931_v6 }
0x3dae   : > { %9933 = vmatprep.subr.bf16.mxu1 %v10263_v10 }
0x3db1   : > { %9935 = vmatpush3.bf16.msra.mxu1 %v9934_v9 }
0x3db2   : > { %9936 = vmatprep.subr.bf16.mxu1 %v10263_v10 }
0x3db5   : > { %9938 = vmatpush3.bf16.msra.mxu1 %v9937_v15 }
0x3db6   : > { %9597 = vmatprep.subr.mxu1 %v10265_v13 }
0x3e6b   : > { %v5482_v27 = vpop.f32.mrb[36].mxu1 }
0x3e6c   : > { %v5486_v11 = vadd.f32 %v5482_v27, %v5247_v18  ;;  %v9514_v28 = vpop.f32.mrb[37].mxu1 }
0x3e6e   : > { %v5487_v30 = vadd.f32 %v5486_v11, %v11113_v43  ;;  %v8633_v43 = vld [vmem:[%s11865_s9 + $0x68] sm:$0xff] }
0x3e6f   : > { %v9910_v40 = vpack.c.bf16 %v8633_v43, %v8632_v39 }
0x3e70   : > { %v11250_v31 = vadd.f32 %v8627_v29, %v5487_v30  ;;  %v8656_v30 = vld [vmem:[%s11868_s12 + $0x3] ss:$0 sm:$0xff] }
0x3e71   : > { %9911 = vmatpush3.bf16.msra.mxu0 %v9910_v40 }
0x3e72   : > { %v5501_v32 = vsel %vm499_vm0, %v11250_v31, 0.0  ;;  %9912 = vmatprep.subr.bf16.mxu0 %v10263_v10 }
0x3e73   : > { %5502 = vadd.xlane.f32.xlu0 %v5501_v32 }
0x3e75   : > { %9914 = vmatpush3.bf16.msra.mxu0 %v9913_v44  ;;  %v8663_v44 = vld [vmem:[%s11859_s3 + $0x90] sm:$0xff] }
0x3e76   : > { %9939 = vmatprep.subr.bf16.mxu0 %v10263_v10  ;;  %v9943_v45 = vpack.c.bf16 %v8664_v26, %v8663_v44 }
0x3f00   : > { %v5503_v33 = vpop.xlane.xlu0 %5502 }
0x3f01   : > { %v5504_v35 = vmul.f32 0.03125, %v5503_v33 }
0x3f03   : > { %v5505_v36 = vsub.f32 %v11250_v31, %v5504_v35 }
0x3f05   : > { %v5506_v37 = vmul.f32 %v5505_v36, %v5505_v36 }
0x3f07   : > { %v5507_v38 = vsel %vm499_vm0, %v5506_v37, 0.0 }
0x3f08   : > { %5508 = vadd.xlane.f32.xlu1 %v5507_v38 }
0x3f95   : > { %v5509_v51 = vpop.xlane.xlu1 %5508 }
0x3f96   : > { %v5510_v47 = vmul.f32 0.03125, %v5509_v51 }
0x3f98   : > { %v5511_v49 = vadd.f32 1e-05, %v5510_v47 }
0x3f9a   : > { %10149 = vrsqrt.f32 %v5511_v49 }
0x3fa4   : > { %v10150_v41 = vpop.eup %10149 }
0x3fa5   : > { %v5513_v52 = vmul.f32 %v10150_v41, %v5505_v36  ;;  %v8659_v41 = vld [vmem:[%s11857_s1 + $0x4] ss:$0 sm:$0xff] }
0x3fa7   : > { %v5520_v54 = vmul.f32 %v8630_v50, %v5513_v52  ;;  %v8660_v52 = vld [vmem:[%s11858_s2 + $0x4] ss:$0 sm:$0xff] }
0x3fa9   : > { %v5527_v55 = vadd.f32 %v8631_v53, %v5520_v54 }
0x3fab   : > { %9524 = vmatmul.mubr.msk.f32.vlgmr.msra.gmra.mrb[78].mxu0 %vm499_vm0, %v5527_v55  ;;  %v8666_v55 = vld [vmem:[%s11860_s4 + $0x4] ss:$0 sm:$0xff] }
0x3fac   : > { %9569 = vmatprep.mubr.msk.f32.mxu0 %vm10264_vm1, %v10265_v13 }
0x407e   : > { %v5610_v17 = vpop.f32.mrb[78].mxu0 }
0x407f   : > { %v5611_v18 = vadd.f32 %v8637_v16, %v5610_v17  ;;  %v9525_v19 = vpop.f32.mrb[79].mxu0 }
0x4081   : > { %v5615_v20 = vmul.f32 0.044715, %v5611_v18  ;;  %v5614_v27 = vmul.f32 0.5, %v5611_v18 }
0x4083   : > { %v5616_v22 = vmul.f32 %v5615_v20, %v5611_v18 }
0x4085   : > { %v5617_v23 = vmul.f32 %v5616_v22, %v5611_v18 }
0x4087   : > { %v5618_v24 = vadd.f32 %v5617_v23, %v5611_v18 }
0x4089   : > { %v5619_v2 = vmul.f32 0.7978846, %v5618_v24 }
0x408b   : > { %10151 = vtanh.f32 %v5619_v2 }
0x4095   : > { %v10152_v25 = vpop.eup %10151 }
0x4096   : > { %v5621_v11 = vadd.f32 1.0, %v10152_v25 }
0x4098   : > { %v5622_v28 = vmul.f32 %v5621_v11, %v5614_v27 }
0x409a   : > { %9559 = vmatmul.mubr.f32.vlgmr.msra.gmra.mrb[38].mxu1 %v5622_v28 }
0x409b   : > { %9599 = vmatprep.mubr.msk.f32.mxu1 %vm10264_vm1, %v10265_v13  ;;  %9598 = vmatpush3.msra.mxu1 %v8668_v14 }
0x409c   : > { %9607 = vmatprep.subr.mxu1 %v10265_v13 }
0x416d   : > { %v5706_v29 = vpop.f32.mrb[38].mxu1 }
0x416e   : > { %v5710_v32 = vadd.f32 %v5706_v29, %v11250_v31  ;;  %v9560_v33 = vpop.f32.mrb[39].mxu1  ;;  %v8662_v31 = vld [vmem:[%s11859_s3 + $0x88] sm:$0xff] }
0x416f   : > { %v9940_v21 = vpack.c.bf16 %v8662_v31, %v8661_v42  ;;  %v8669_v33 = vld [vmem:[%s11861_s5 + $0x88] sm:$0xff] }
0x4170   : > { %v11344_v35 = vadd.f32 %v8656_v30, %v5710_v32 }
0x4171   : > { %9941 = vmatpush3.bf16.msra.mxu0 %v9940_v21 }
0x4172   : > { %v5724_v36 = vsel %vm499_vm0, %v11344_v35, 0.0  ;;  %9942 = vmatprep.subr.bf16.mxu0 %v10263_v10 }
0x4173   : > { %5725 = vadd.xlane.f32.xlu1 %v5724_v36 }
0x4175   : > { %9944 = vmatpush3.bf16.msra.mxu0 %v9943_v45 }
0x4176   : > { %9572 = vmatprep.subr.mxu0 %v10265_v13 }
0x4200   : > { %v5726_v37 = vpop.xlane.xlu1 %5725 }
0x4201   : > { %v5727_v38 = vmul.f32 0.03125, %v5726_v37 }
0x4203   : > { %v5728_v39 = vsub.f32 %v11344_v35, %v5727_v38 }
0x4205   : > { %v5729_v43 = vmul.f32 %v5728_v39, %v5728_v39 }
0x4207   : > { %v5730_v40 = vsel %vm499_vm0, %v5729_v43, 0.0 }
0x4208   : > { %5731 = vadd.xlane.f32.xlu1 %v5730_v40 }
0x4295   : > { %v5732_v46 = vpop.xlane.xlu1 %5731 }
0x4296   : > { %v5733_v51 = vmul.f32 0.03125, %v5732_v46 }
0x4298   : > { %v5734_v47 = vadd.f32 1e-05, %v5733_v51 }
0x429a   : > { %10153 = vrsqrt.f32 %v5734_v47 }
0x42a4   : > { %v10154_v49 = vpop.eup %10153 }
0x42a5   : > { %v5736_v50 = vmul.f32 %v10154_v49, %v5728_v39 }
0x42a7   : > { %v5743_v53 = vmul.f32 %v8659_v41, %v5736_v50 }
0x42a9   : > { %v5750_v54 = vadd.f32 %v8660_v52, %v5743_v53 }
0x42ab   : > { %9570 = vmatmul.mubr.msk.f32.vlgmr.msra.gmra.mrb[80].mxu0 %vm499_vm0, %v5750_v54 }
0x42ac   : > { %9574 = vmatprep.mubr.msk.f32.mxu0 %vm10264_vm1, %v10265_v13 }
0x437e   : > { %v5833_v60 = vpop.f32.mrb[80].mxu0 }
0x437f   : > { %v11376_v56 = vadd.f32 %v8666_v55, %v5833_v60  ;;  %v9571_v58 = vpop.f32.mrb[81].mxu0  ;;  %v8670_v60 = vld [vmem:[%s11861_s5 + $0x90] sm:$0xff] }
0x4381   : > { %5843 = vrot.lane.b32.xlu1 %v11376_v56, %s11924_s16 }
0x4385   : > { %5930 = vrot.lane.b32.xlu1 %v11376_v56, %s11927_s23 }
0x4389   : > { %6006 = vrot.lane.b32.xlu1 %v11376_v56, %s11926_s26 }
0x43f3   : > { %v5844_v48 = vpop.permute.xlu1 %5843 }
0x43f4   : > { %9573 = vmatpush3.xpose.msk.msra.mxu0 %vm619_vm2, %v5844_v48 }
0x43f5   : > { %9577 = vmatprep.subr.mxu0 %v10265_v13 }
0x43f7   : > { %9575 = vmatmul.mubr.msk.f32.vlgmr.msra.gmra.mrb[82].mxu0 %vm619_vm2, %v11376_v56  ;;  %v5931_v59 = vpop.permute.xlu1 %5930 }
0x43f8   : > { %9578 = vmatpush3.msra.mxu0 %v5931_v59  ;;  %9579 = vmatprep.mubr.msk.f32.mxu0 %vm10264_vm1, %v10265_v13 }
0x43f9   : > { %9582 = vmatprep.subr.mxu0 %v10265_v13 }
0x43fb   : > { %v6007_v12 = vpop.permute.xlu1 %6006 }
0x44ca   : > { %v5915_v61 = vpop.f32.mrb[82].mxu0 }
0x44cb   : > { %v5916_v62 = vadd.f32 %v5915_v61, %v10465_v34  ;;  %v9576_v63 = vpop.f32.mrb[83].mxu0 }
0x44cd   : > { %v5919_v1 = vsel %vm619_vm2, %v5916_v62, -inf }
0x44ce   : > { %5920 = vmax.xlane.f32.xlu0 %v5919_v1 }
0x455b   : > { %v5921_v0 = vpop.xlane.xlu0 %5920 }
0x455c   : > { %v5922_v3 = vsub.f32 %v5916_v62, %v5921_v0 }
0x455e   : > { %v5923_v57 = vmul.f32 1.442695, %v5922_v3 }
0x4560   : > { %10155 = vpow2.f32 %v5923_v57 }
0x456a   : > { %v10156_v4 = vpop.eup %10155 }
0x456b   : > { %v5925_v5 = vsel %vm619_vm2, %v10156_v4, 0.0 }
0x456c   : > { %5926 = vadd.xlane.f32.xlu0 %v5925_v5 }
0x4582   : > { %6008 = vrot.lane.b32.xlu0 %v11376_v56, %s11925_s20 }
0x45f9   : > { %v5927_v6 = vpop.xlane.xlu0 %5926 }
0x45fa   : > { %10157 = vrcp.f32 %v5927_v6  ;;  %v8671_v6 = vld [vmem:[%s11861_s5 + $0x98] sm:$0xff] }
0x45fd   : > { %v6009_v9 = vpop.permute.xlu0 %6008 }
0x4604   : > { %v10158_v7 = vpop.eup %10157 }
0x4605   : > { %v5929_v8 = vmul.f32 %v10158_v7, %v10156_v4 }
0x4607   : > { %9580 = vmatmul.mubr.msk.f32.vlgmr.msra.gmra.mrb[84].mxu0 %vm619_vm2, %v5929_v8 }
0x4608   : > { %9583 = vmatpush3.xpose.msk.msra.mxu0 %vm619_vm2, %v6009_v9  ;;  %9584 = vmatprep.mubr.msk.f32.mxu0 %vm10264_vm1, %v10265_v13 }
0x4609   : > { %9587 = vmatprep.subr.mxu0 %v10265_v13 }
0x460b   : > { %9585 = vmatmul.mubr.msk.f32.vlgmr.msra.gmra.mrb[86].mxu0 %vm619_vm2, %v6007_v12 }
0x460c   : > { %9589 = vmatprep.mubr.msk.f32.mxu0 %vm10264_vm1, %v10265_v13 }
0x46da   : > { %v6002_v15 = vpop.f32.mrb[84].mxu0 }
0x46db   : > { %v9581_v16 = vpop.f32.mrb[85].mxu0  ;;  %9600 = vmatmul.mubr.msk.f32.vlgmr.msra.gmra.mrb[40].mxu1 %vm619_vm2, %v6002_v15 }
0x46dc   : > { %9609 = vmatprep.mubr.msk.f32.mxu1 %vm10264_vm1, %v10265_v13 }
0x46de   : > { %v6080_v17 = vpop.f32.mrb[86].mxu0 }
0x46df   : > { %v6081_v18 = vadd.f32 %v6080_v17, %v10465_v34  ;;  %v9586_v19 = vpop.f32.mrb[87].mxu0 }
0x46e1   : > { %v6084_v20 = vsel %vm619_vm2, %v6081_v18, -inf }
0x46e2   : > { %6085 = vmax.xlane.f32.xlu1 %v6084_v20  ;;  %v8689_v20 = vld [vmem:[%s11862_s6 + $0x4] ss:$0 sm:$0xff] }
0x46f3   : > { %6095 = vrot.lane.b32.xlu1 %v11376_v56, %s11928_s27 }
0x46f7   : > { %6317 = vrot.lane.b32.xlu1 %v11376_v56, %s11929_s30 }
0x476f   : > { %v6086_v22 = vpop.xlane.xlu1 %6085 }
0x4770   : > { %v6087_v23 = vsub.f32 %v6081_v18, %v6086_v22 }
0x4772   : > { %v6088_v24 = vmul.f32 1.442695, %v6087_v23 }
0x4773   : > { %v6096_v2 = vpop.permute.xlu1 %6095 }
0x4774   : > { %10159 = vpow2.f32 %v6088_v24  ;;  %9588 = vmatpush3.msra.mxu0 %v6096_v2 }
0x4775   : > { %9592 = vmatprep.subr.mxu0 %v10265_v13 }
0x4777   : > { %v6318_v39 = vpop.permute.xlu1 %6317 }
0x477e   : > { %v10160_v25 = vpop.eup %10159 }
0x477f   : > { %v6090_v27 = vsel %vm619_vm2, %v10160_v25, 0.0 }
0x4780   : > { %6091 = vadd.xlane.f32.xlu0 %v6090_v27 }
0x4796   : > { %6319 = vrot.lane.b32.xlu0 %v11376_v56, %s11930_s17 }
0x47ae   : > { %v6313_v11 = vpop.f32.mrb[40].mxu1 }
0x47af   : > { %v9601_v28 = vpop.f32.mrb[41].mxu1 }
0x480d   : > { %v6092_v29 = vpop.xlane.xlu0 %6091 }
0x480e   : > { %10161 = vrcp.f32 %v6092_v29  ;;  %v8694_v29 = vld [vmem:[%s11865_s9 + $0x80] sm:$0xff] }
0x4811   : > { %v6320_v37 = vpop.permute.xlu0 %6319 }
0x4818   : > { %v10162_v30 = vpop.eup %10161 }
0x4819   : > { %v6094_v32 = vmul.f32 %v10162_v30, %v10160_v25 }
0x481b   : > { %9590 = vmatmul.mubr.msk.f32.vlgmr.msra.gmra.mrb[88].mxu0 %vm619_vm2, %v6094_v32  ;;  %v8696_v32 = vld [vmem:[%s11865_s9 + $0x90] sm:$0xff] }
0x481c   : > { %9593 = vmatpush3.msra.mxu0 %v8669_v33  ;;  %9594 = vmatprep.mubr.msk.f32.mxu0 %vm10264_vm1, %v10265_v13  ;;  %v8697_v33 = vld [vmem:[%s11865_s9 + $0x98] sm:$0xff] }
0x481d   : > { %9602 = vmatprep.subr.mxu0 %v10265_v13 }
0x48ee   : > { %v6167_v36 = vpop.f32.mrb[88].mxu0 }
0x48ef   : > { %v9591_v38 = vpop.f32.mrb[89].mxu0  ;;  %9595 = vmatmul.mubr.msk.f32.vlgmr.msra.gmra.mrb[90].mxu0 %vm619_vm2, %v6167_v36  ;;  %v9949_v36 = vpack.c.bf16 %v8697_v33, %v8696_v32  ;;  %v8723_v32 = vld [vmem:[%s11859_s3 + $0xa0] sm:$0xff] }
0x48f0   : > { %9603 = vmatpush3.xpose.msk.msra.mxu0 %vm619_vm2, %v6320_v37  ;;  %9604 = vmatprep.mubr.msk.f32.mxu0 %vm10264_vm1, %v10265_v13  ;;  %v8701_v37 = vld [vmem:[%s11867_s11 + $0x200] sm:$0xff]  ;;  %v8702_v38 = vld [vmem:[%s11867_s11 + $0x208] sm:$0xff] }
0x48f1   : > { %9612 = vmatprep.subr.mxu0 %v10265_v13 }
0x48f3   : > { %9605 = vmatmul.mubr.msk.f32.vlgmr.msra.gmra.mrb[92].mxu0 %vm619_vm2, %v6318_v39  ;;  %v9952_v39 = vpack.c.bf16 %v8702_v38, %v8701_v37  ;;  %v8726_v37 = vld [vmem:[%s11859_s3 + $0xb8] sm:$0xff] }
0x48f4   : > { %9614 = vmatprep.mubr.msk.f32.mxu0 %vm10264_vm1, %v10265_v13  ;;  %9613 = vmatpush3.msra.mxu0 %v8670_v60  ;;  %v8709_v60 = vld [vmem:[%s11867_s11 + $0x240] sm:$0xff] }
0x48f5   : > { %9622 = vmatprep.subr.mxu0 %v10265_v13 }
0x49c2   : > { %v6240_v43 = vpop.f32.mrb[90].mxu0 }
0x49c3   : > { %v6314_v40 = vadd.f32 %v6313_v11, %v6240_v43  ;;  %v9596_v42 = vpop.f32.mrb[91].mxu0 }
0x49c6   : > { %v6391_v31 = vpop.f32.mrb[92].mxu0 }
0x49c7   : > { %v6392_v21 = vadd.f32 %v6391_v31, %v10465_v34  ;;  %v9606_v44 = vpop.f32.mrb[93].mxu0 }
0x49c9   : > { %v6395_v26 = vsel %vm619_vm2, %v6392_v21, -inf }
0x49ca   : > { %6396 = vmax.xlane.f32.xlu1 %v6395_v26  ;;  %v8693_v26 = vld [vmem:[%s11937_s15 + $0x4] ss:$0 sm:$0xff] }
0x49db   : > { %6406 = vrot.lane.b32.xlu1 %v11376_v56, %s11931_s25 }
0x49df   : > { %6556 = vrot.lane.b32.xlu1 %v11376_v56, %s11932_s0 }
0x4a57   : > { %v6397_v45 = vpop.xlane.xlu1 %6396 }
0x4a58   : > { %v6398_v46 = vsub.f32 %v6392_v21, %v6397_v45  ;;  %v8692_v21 = vld [vmem:[%s11863_s7 + $0x4] ss:$0 sm:$0xff] }
0x4a5a   : > { %v6399_v51 = vmul.f32 1.442695, %v6398_v46 }
0x4a5b   : > { %v6407_v47 = vpop.permute.xlu1 %6406 }
0x4a5c   : > { %10163 = vpow2.f32 %v6399_v51  ;;  %9608 = vmatpush3.msra.mxu1 %v6407_v47  ;;  %v8703_v51 = vld [vmem:[%s11867_s11 + $0x210] sm:$0xff]  ;;  %v8704_v47 = vld [vmem:[%s11867_s11 + $0x218] sm:$0xff] }
0x4a5d   : > { %9617 = vmatprep.subr.mxu1 %v10265_v13 }
0x4a5f   : > { %v6557_v55 = vpop.permute.xlu1 %6556 }
0x4a66   : > { %v10164_v49 = vpop.eup %10163 }
0x4a67   : > { %v6401_v41 = vsel %vm619_vm2, %v10164_v49, 0.0 }
0x4a68   : > { %6402 = vadd.xlane.f32.xlu0 %v6401_v41  ;;  %v8705_v41 = vld [vmem:[%s11867_s11 + $0x220] sm:$0xff] }
0x4a7e   : > { %6558 = vrot.lane.b32.xlu0 %v11376_v56, %s11933_s24 }
0x4af5   : > { %v6403_v50 = vpop.xlane.xlu0 %6402 }
0x4af6   : > { %10165 = vrcp.f32 %v6403_v50  ;;  %v8706_v50 = vld [vmem:[%s11867_s11 + $0x228] sm:$0xff] }
0x4af9   : > { %v6559_v54 = vpop.permute.xlu0 %6558 }
0x4b00   : > { %v10166_v52 = vpop.eup %10165 }
0x4b01   : > { %v6405_v53 = vmul.f32 %v10166_v52, %v10164_v49  ;;  %v9955_v49 = vpack.c.bf16 %v8704_v47, %v8703_v51  ;;  %v9958_v52 = vpack.c.bf16 %v8706_v50, %v8705_v41 }
0x4b03   : > { %9610 = vmatmul.mubr.msk.f32.vlgmr.msra.gmra.mrb[42].mxu1 %vm619_vm2, %v6405_v53  ;;  %v8707_v53 = vld [vmem:[%s11867_s11 + $0x230] sm:$0xff] }
0x4b04   : > { %9618 = vmatpush3.xpose.msk.msra.mxu1 %vm619_vm2, %v6559_v54  ;;  %9619 = vmatprep.mubr.msk.f32.mxu1 %vm10264_vm1, %v10265_v13  ;;  %v8708_v54 = vld [vmem:[%s11867_s11 + $0x238] sm:$0xff] }
0x4b05   : > { %9627 = vmatprep.subr.mxu1 %v10265_v13 }
0x4b07   : > { %9620 = vmatmul.mubr.msk.f32.vlgmr.msra.gmra.mrb[44].mxu1 %vm619_vm2, %v6557_v55  ;;  %v9961_v55 = vpack.c.bf16 %v8708_v54, %v8707_v53 }
0x4b08   : > { %9629 = vmatprep.mubr.msk.f32.mxu1 %vm10264_vm1, %v10265_v13  ;;  %9628 = vmatpush3.msra.mxu1 %v8671_v6 }
0x4b09   : > { %9951 = vmatprep.subr.bf16.mxu1 %v10263_v10 }
0x4bd6   : > { %v6478_v58 = vpop.f32.mrb[42].mxu1 }
0x4bd7   : > { %v9611_v48 = vpop.f32.mrb[43].mxu1  ;;  %9615 = vmatmul.mubr.msk.f32.vlgmr.msra.gmra.mrb[94].mxu0 %vm619_vm2, %v6478_v58  ;;  %v8710_v58 = vld [vmem:[%s11867_s11 + $0x248] sm:$0xff] }
0x4bd8   : > { %9624 = vmatprep.mubr.msk.f32.mxu0 %vm10264_vm1, %v10265_v13  ;;  %v9964_v48 = vpack.c.bf16 %v8710_v58, %v8709_v60 }
0x4bda   : > { %v6630_v59 = vpop.f32.mrb[44].mxu1 }
0x4bdb   : > { %v6631_v61 = vadd.f32 %v6630_v59, %v10465_v34  ;;  %v9621_v62 = vpop.f32.mrb[45].mxu1  ;;  %v8711_v59 = vld [vmem:[%s11867_s11 + $0x250] sm:$0xff] }
0x4bdd   : > { %v6634_v63 = vsel %vm619_vm2, %v6631_v61, -inf }
0x4bde   : > { %6635 = vmax.xlane.f32.xlu1 %v6634_v63  ;;  %v8713_v63 = vld [vmem:[%s11867_s11 + $0x260] sm:$0xff] }
0x4bef   : > { %6645 = vrot.lane.b32.xlu1 %v11376_v56, %s11934_s18 }
0x4c6b   : > { %v6636_v1 = vpop.xlane.xlu1 %6635 }
0x4c6c   : > { %v6637_v0 = vsub.f32 %v6631_v61, %v6636_v1  ;;  %v8712_v61 = vld [vmem:[%s11867_s11 + $0x258] sm:$0xff]  ;;  %v8714_v1 = vld [vmem:[%s11867_s11 + $0x268] sm:$0xff] }
0x4c6d   : > { %v9967_v62 = vpack.c.bf16 %v8712_v61, %v8711_v59 }
0x4c6e   : > { %v6638_v3 = vmul.f32 1.442695, %v6637_v0  ;;  %v9970_v0 = vpack.c.bf16 %v8714_v1, %v8713_v63 }
0x4c6f   : > { %v6646_v57 = vpop.permute.xlu1 %6645 }
0x4c70   : > { %10167 = vpow2.f32 %v6638_v3  ;;  %9623 = vmatpush3.msra.mxu0 %v6646_v57  ;;  %v8715_v3 = vld [vmem:[%s11867_s11 + $0x270] sm:$0xff]  ;;  %v8716_v57 = vld [vmem:[%s11867_s11 + $0x278] sm:$0xff] }
0x4c71   : > { %9945 = vmatprep.subr.bf16.mxu0 %v10263_v10 }
0x4c7a   : > { %v10168_v4 = vpop.eup %10167 }
0x4c7b   : > { %v6640_v5 = vsel %vm619_vm2, %v10168_v4, 0.0 }
0x4c7c   : > { %6641 = vadd.xlane.f32.xlu0 %v6640_v5  ;;  %v8699_v5 = vld [vmem:[%s11866_s10 + $0x4] ss:$0 sm:$0xff] }
0x4caa   : > { %v6551_v56 = vpop.f32.mrb[94].mxu0 }
0x4cab   : > { %v6555_v7 = vadd.f32 %v6551_v56, %v6314_v40  ;;  %v9616_v8 = vpop.f32.mrb[95].mxu0 }
0x4d09   : > { %v6642_v9 = vpop.xlane.xlu0 %6641 }
0x4d0a   : > { %10169 = vrcp.f32 %v6642_v9 }
0x4d14   : > { %v10170_v12 = vpop.eup %10169 }
0x4d15   : > { %v6644_v14 = vmul.f32 %v10170_v12, %v10168_v4  ;;  %v9973_v4 = vpack.c.bf16 %v8716_v57, %v8715_v3  ;;  %v8730_v57 = vld [vmem:[%s11861_s5 + $0xa0] sm:$0xff] }
0x4d17   : > { %9625 = vmatmul.mubr.msk.f32.vlgmr.msra.gmra.mrb[96].mxu0 %vm619_vm2, %v6644_v14 }
0x4d18   : > { %9640 = vmatprep.mubr.msk.f32.mxu0 %vm10264_vm1, %v10265_v13 }
0x4dea   : > { %v6717_v15 = vpop.f32.mrb[96].mxu0 }
0x4deb   : > { %v9626_v16 = vpop.f32.mrb[97].mxu0  ;;  %9630 = vmatmul.mubr.msk.f32.vlgmr.msra.gmra.mrb[46].mxu1 %vm619_vm2, %v6717_v15 }
0x4dec   : > { %9675 = vmatprep.mubr.msk.f32.mxu1 %vm10264_vm1, %v10265_v13  ;;  %9953 = vmatpush3.bf16.msra.mxu1 %v9952_v39 }
0x4ded   : > { %9954 = vmatprep.subr.bf16.mxu1 %v10263_v10 }
0x4df0   : > { %9956 = vmatpush3.bf16.msra.mxu1 %v9955_v49 }
0x4df1   : > { %9957 = vmatprep.subr.bf16.mxu1 %v10263_v10 }
0x4df4   : > { %9959 = vmatpush3.bf16.msra.mxu1 %v9958_v52 }
0x4df5   : > { %9960 = vmatprep.subr.bf16.mxu1 %v10263_v10 }
0x4df8   : > { %9962 = vmatpush3.bf16.msra.mxu1 %v9961_v55 }
0x4df9   : > { %9963 = vmatprep.subr.bf16.mxu1 %v10263_v10 }
0x4dfc   : > { %9965 = vmatpush3.bf16.msra.mxu1 %v9964_v48 }
0x4dfd   : > { %9966 = vmatprep.subr.bf16.mxu1 %v10263_v10 }
0x4e00   : > { %9968 = vmatpush3.bf16.msra.mxu1 %v9967_v62 }
0x4e01   : > { %9969 = vmatprep.subr.bf16.mxu1 %v10263_v10 }
0x4e04   : > { %9971 = vmatpush3.bf16.msra.mxu1 %v9970_v0 }
0x4e05   : > { %9972 = vmatprep.subr.bf16.mxu1 %v10263_v10 }
0x4e08   : > { %9974 = vmatpush3.bf16.msra.mxu1 %v9973_v4 }
0x4e09   : > { %9714 = vmatprep.subr.mxu1 %v10265_v13 }
0x4ebe   : > { %v6790_v17 = vpop.f32.mrb[46].mxu1 }
0x4ebf   : > { %v6794_v18 = vadd.f32 %v6790_v17, %v6555_v7  ;;  %v9631_v19 = vpop.f32.mrb[47].mxu1 }
0x4ec1   : > { %v6795_v22 = vadd.f32 %v6794_v18, %v11344_v35  ;;  %v8695_v35 = vld [vmem:[%s11865_s9 + $0x88] sm:$0xff] }
0x4ec2   : > { %v9946_v30 = vpack.c.bf16 %v8695_v35, %v8694_v29 }
0x4ec3   : > { %v11481_v23 = vadd.f32 %v8689_v20, %v6795_v22  ;;  %v8718_v22 = vld [vmem:[%s11868_s12 + $0x4] ss:$0 sm:$0xff] }
0x4ec4   : > { %9947 = vmatpush3.bf16.msra.mxu0 %v9946_v30 }
0x4ec5   : > { %v6809_v24 = vsel %vm499_vm0, %v11481_v23, 0.0  ;;  %9948 = vmatprep.subr.bf16.mxu0 %v10263_v10 }
0x4ec6   : > { %6810 = vadd.xlane.f32.xlu0 %v6809_v24 }
0x4ec8   : > { %9950 = vmatpush3.bf16.msra.mxu0 %v9949_v36  ;;  %v8725_v36 = vld [vmem:[%s11859_s3 + $0xb0] sm:$0xff] }
0x4ec9   : > { %9975 = vmatprep.subr.bf16.mxu0 %v10263_v10  ;;  %v9979_v38 = vpack.c.bf16 %v8726_v37, %v8725_v36 }
0x4f53   : > { %v6811_v2 = vpop.xlane.xlu0 %6810 }
0x4f54   : > { %v6812_v25 = vmul.f32 0.03125, %v6811_v2 }
0x4f56   : > { %v6813_v27 = vsub.f32 %v11481_v23, %v6812_v25 }
0x4f58   : > { %v6814_v11 = vmul.f32 %v6813_v27, %v6813_v27 }
0x4f5a   : > { %v6815_v28 = vsel %vm499_vm0, %v6814_v11, 0.0 }
0x4f5b   : > { %6816 = vadd.xlane.f32.xlu0 %v6815_v28 }
0x4fe8   : > { %v6817_v43 = vpop.xlane.xlu0 %6816 }
0x4fe9   : > { %v6818_v40 = vmul.f32 0.03125, %v6817_v43 }
0x4feb   : > { %v6819_v42 = vadd.f32 1e-05, %v6818_v40 }
0x4fed   : > { %10171 = vrsqrt.f32 %v6819_v42 }
0x4ff7   : > { %v10172_v31 = vpop.eup %10171 }
0x4ff8   : > { %v6821_v44 = vmul.f32 %v10172_v31, %v6813_v27  ;;  %v8721_v31 = vld [vmem:[%s11857_s1 + $0x5] ss:$0 sm:$0xff] }
0x4ffa   : > { %v6828_v45 = vmul.f32 %v8692_v21, %v6821_v44  ;;  %v8722_v44 = vld [vmem:[%s11858_s2 + $0x5] ss:$0 sm:$0xff] }
0x4ffc   : > { %v6835_v46 = vadd.f32 %v8693_v26, %v6828_v45 }
0x4ffe   : > { %9641 = vmatmul.mubr.msk.f32.vlgmr.msra.gmra.mrb[98].mxu0 %vm499_vm0, %v6835_v46  ;;  %v8728_v46 = vld [vmem:[%s11860_s4 + $0x5] ss:$0 sm:$0xff] }
0x4fff   : > { %9686 = vmatprep.mubr.msk.f32.mxu0 %vm10264_vm1, %v10265_v13 }
0x50d1   : > { %v6918_v6 = vpop.f32.mrb[98].mxu0 }
0x50d2   : > { %v6919_v56 = vadd.f32 %v8699_v5, %v6918_v6  ;;  %v9642_v7 = vpop.f32.mrb[99].mxu0 }
0x50d4   : > { %v6923_v8 = vmul.f32 0.044715, %v6919_v56  ;;  %v6922_v17 = vmul.f32 0.5, %v6919_v56 }
0x50d6   : > { %v6924_v9 = vmul.f32 %v6923_v8, %v6919_v56 }
0x50d8   : > { %v6925_v12 = vmul.f32 %v6924_v9, %v6919_v56 }
0x50da   : > { %v6926_v14 = vadd.f32 %v6925_v12, %v6919_v56 }
0x50dc   : > { %v6927_v15 = vmul.f32 0.7978846, %v6926_v14 }
0x50de   : > { %10173 = vtanh.f32 %v6927_v15 }
0x50e8   : > { %v10174_v16 = vpop.eup %10173 }
0x50e9   : > { %v6929_v18 = vadd.f32 1.0, %v10174_v16 }
0x50eb   : > { %v6930_v19 = vmul.f32 %v6929_v18, %v6922_v17 }
0x50ed   : > { %9676 = vmatmul.mubr.f32.vlgmr.msra.gmra.mrb[48].mxu1 %v6930_v19 }
0x50ee   : > { %9716 = vmatprep.mubr.msk.f32.mxu1 %vm10264_vm1, %v10265_v13  ;;  %9715 = vmatpush3.msra.mxu1 %v8730_v57 }
0x50ef   : > { %9724 = vmatprep.subr.mxu1 %v10265_v13 }
0x51c0   : > { %v7014_v20 = vpop.f32.mrb[48].mxu1 }
0x51c1   : > { %v7018_v24 = vadd.f32 %v7014_v20, %v11481_v23  ;;  %v9677_v2 = vpop.f32.mrb[49].mxu1  ;;  %v8724_v23 = vld [vmem:[%s11859_s3 + $0xa8] sm:$0xff] }
0x51c2   : > { %v9976_v33 = vpack.c.bf16 %v8724_v23, %v8723_v32  ;;  %v8731_v2 = vld [vmem:[%s11861_s5 + $0xa8] sm:$0xff] }
0x51c3   : > { %v11575_v25 = vadd.f32 %v8718_v22, %v7018_v24 }
0x51c4   : > { %9977 = vmatpush3.bf16.msra.mxu0 %v9976_v33 }
0x51c5   : > { %v7032_v27 = vsel %vm499_vm0, %v11575_v25, 0.0  ;;  %9978 = vmatprep.subr.bf16.mxu0 %v10263_v10 }
0x51c6   : > { %7033 = vadd.xlane.f32.xlu0 %v7032_v27 }
0x51c8   : > { %9980 = vmatpush3.bf16.msra.mxu0 %v9979_v38 }
0x51c9   : > { %9689 = vmatprep.subr.mxu0 %v10265_v13 }
0x5253   : > { %v7034_v11 = vpop.xlane.xlu0 %7033 }
0x5254   : > { %v7035_v28 = vmul.f32 0.03125, %v7034_v11 }
0x5256   : > { %v7036_v29 = vsub.f32 %v11575_v25, %v7035_v28 }
0x5258   : > { %v7037_v35 = vmul.f32 %v7036_v29, %v7036_v29 }
0x525a   : > { %v7038_v30 = vsel %vm499_vm0, %v7037_v35, 0.0 }
0x525b   : > { %7039 = vadd.xlane.f32.xlu0 %v7038_v30 }
0x52e8   : > { %v7040_v39 = vpop.xlane.xlu0 %7039 }
0x52e9   : > { %v7041_v43 = vmul.f32 0.03125, %v7040_v39 }
0x52eb   : > { %v7042_v40 = vadd.f32 1e-05, %v7041_v43 }
0x52ed   : > { %10175 = vrsqrt.f32 %v7042_v40 }
0x52f7   : > { %v10176_v42 = vpop.eup %10175 }
0x52f8   : > { %v7044_v21 = vmul.f32 %v10176_v42, %v7036_v29 }
0x52fa   : > { %v7051_v26 = vmul.f32 %v8721_v31, %v7044_v21 }
0x52fc   : > { %v7058_v45 = vadd.f32 %v8722_v44, %v7051_v26 }
0x52fe   : > { %9687 = vmatmul.mubr.msk.f32.vlgmr.msra.gmra.mrb[100].mxu0 %vm499_vm0, %v7058_v45 }
0x52ff   : > { %9691 = vmatprep.mubr.msk.f32.mxu0 %vm10264_vm1, %v10265_v13 }
0x53d1   : > { %v7141_v51 = vpop.f32.mrb[100].mxu0 }
0x53d2   : > { %v11607_v47 = vadd.f32 %v8728_v46, %v7141_v51  ;;  %v9688_v49 = vpop.f32.mrb[101].mxu0  ;;  %v8732_v51 = vld [vmem:[%s11861_s5 + $0xb0] sm:$0xff] }
0x53d4   : > { %7151 = vrot.lane.b32.xlu1 %v11607_v47, %s11924_s16  ;;  %s11940_s16 = sld [smem:[#allocation9_spill]] }
0x5446   : > { %v7152_v41 = vpop.permute.xlu1 %7151 }
0x5447   : > { %9690 = vmatpush3.xpose.msk.msra.mxu0 %vm619_vm2, %v7152_v41 }
0x5448   : > { %9694 = vmatprep.subr.mxu0 %v10265_v13 }
0x544a   : > { %9692 = vmatmul.mubr.msk.f32.vlgmr.msra.gmra.mrb[102].mxu0 %vm619_vm2, %v11607_v47 }
0x544b   : > { %9696 = vmatprep.mubr.msk.f32.mxu0 %vm10264_vm1, %v10265_v13 }
0x551d   : > { %v7223_v50 = vpop.f32.mrb[102].mxu0 }
0x551e   : > { %v7224_v52 = vadd.f32 %v7223_v50, %v10465_v34  ;;  %v9693_v53 = vpop.f32.mrb[103].mxu0 }
0x5520   : > { %v7227_v54 = vsel %vm619_vm2, %v7224_v52, -inf }
0x5521   : > { %7228 = vmax.xlane.f32.xlu0 %v7227_v54 }
0x5537   : > { %7238 = vrot.lane.b32.xlu0 %v11607_v47, %s11927_s23 }
0x553b   : > { %7316 = vrot.lane.b32.xlu0 %v11607_v47, %s11925_s20  ;;  %s483_s20 = sand.u32 1, %s11939_s8   ;;  %s10278_s8 = smov [#allocation2]  }
0x553c   : > { %s8367_s29 = scalar_lea.sflag [#allocation3], %s483_s20 }
0x553f   : > { %7314 = vrot.lane.b32.xlu0 %v11607_v47, %s11926_s26  ;;  %s8443_s26 = sshll.u32 %s483_s20, 3 }
0x5540   : > { %s485_s19 = scalar_lea.vmem [#allocation2], %s8443_s26 }
0x5541   : > { %s8380_s15 = sshll.u32 %s485_s19, 4  ;;  %s11815_s15 = int_to_ptr.vmem [resolvable:$true] %s8380_s15 }
0x5542   : > { %s10199_s13 = scalar_lea.vmem %s11815_s15, 128 }
0x5543   : > { %p10200_p11 = scmp.ne.s32.totalorder %s11815_s15, %s10199_s13 }
0x5545   : > { %p10201_p12 = pnand %p10200_p11, %p10397_p5 }
0x5547   : > { %p10202_p13 = pneg %p10201_p12 }
0x55ae   : > { %v7229_v55 = vpop.xlane.xlu0 %7228 }
0x55af   : > { %v7230_v60 = vsub.f32 %v7224_v52, %v7229_v55 }
0x55b1   : > { %v7231_v58 = vmul.f32 1.442695, %v7230_v60 }
0x55b2   : > { %v7239_v48 = vpop.permute.xlu0 %7238 }
0x55b3   : > { %10177 = vpow2.f32 %v7231_v58  ;;  %9695 = vmatpush3.msra.mxu0 %v7239_v48 }
0x55b4   : > { %9699 = vmatprep.subr.mxu0 %v10265_v13 }
0x55b6   : > { %v7317_v1 = vpop.permute.xlu0 %7316 }
0x55ba   : > { %v7315_v3 = vpop.permute.xlu0 %7314 }
0x55bd   : > { %v10178_v59 = vpop.eup %10177 }
0x55be   : > { %v7233_v61 = vsel %vm619_vm2, %v10178_v59, 0.0 }
0x55bf   : > { %7234 = vadd.xlane.f32.xlu1 %v7233_v61  ;;  %v8733_v61 = vld [vmem:[%s11861_s5 + $0xb8] sm:$0xff] }
0x564c   : > { %v7235_v62 = vpop.xlane.xlu1 %7234 }
0x564d   : > { %10179 = vrcp.f32 %v7235_v62 }
0x5657   : > { %v10180_v63 = vpop.eup %10179 }
0x5658   : > { %v7237_v0 = vmul.f32 %v10180_v63, %v10178_v59 }
0x565a   : > { %9697 = vmatmul.mubr.msk.f32.vlgmr.msra.gmra.mrb[104].mxu0 %vm619_vm2, %v7237_v0 }
0x565b   : > { %9700 = vmatpush3.xpose.msk.msra.mxu0 %vm619_vm2, %v7317_v1  ;;  %9701 = vmatprep.mubr.msk.f32.mxu0 %vm10264_vm1, %v10265_v13 }
0x565c   : > { %9704 = vmatprep.subr.mxu0 %v10265_v13 }
0x565e   : > { %9702 = vmatmul.mubr.msk.f32.vlgmr.msra.gmra.mrb[106].mxu0 %vm619_vm2, %v7315_v3 }
0x565f   : > { %9706 = vmatprep.mubr.msk.f32.mxu0 %vm10264_vm1, %v10265_v13 }
0x572d   : > { %v7310_v4 = vpop.f32.mrb[104].mxu0 }
0x572e   : > { %v9698_v5 = vpop.f32.mrb[105].mxu0  ;;  %9717 = vmatmul.mubr.msk.f32.vlgmr.msra.gmra.mrb[50].mxu1 %vm619_vm2, %v7310_v4 }
0x572f   : > { %9726 = vmatprep.mubr.msk.f32.mxu1 %vm10264_vm1, %v10265_v13 }
0x5731   : > { %v7388_v6 = vpop.f32.mrb[106].mxu0 }
0x5732   : > { %v7389_v56 = vadd.f32 %v7388_v6, %v10465_v34  ;;  %v9703_v7 = vpop.f32.mrb[107].mxu0 }
0x5733   : > { %v8751_v7 = vld [vmem:[%s11862_s6 + $0x5] ss:$0 sm:$0xff] }
0x5734   : > { %v7392_v8 = vsel %vm619_vm2, %v7389_v56, -inf }
0x5735   : > { %7393 = vmax.xlane.f32.xlu0 %v7392_v8 }
0x57c2   : > { %v7394_v9 = vpop.xlane.xlu0 %7393 }
0x57c3   : > { %v7395_v12 = vsub.f32 %v7389_v56, %v7394_v9 }
0x57c5   : > { %v7396_v14 = vmul.f32 1.442695, %v7395_v12 }
0x57c7   : > { %10181 = vpow2.f32 %v7396_v14 }
0x57d1   : > { %v10182_v15 = vpop.eup %10181 }
0x57d2   : > { %v7398_v16 = vsel %vm619_vm2, %v10182_v15, 0.0 }
0x57d3   : > { %7399 = vadd.xlane.f32.xlu1 %v7398_v16 }
0x57e4   : > { %7403 = vrot.lane.b32.xlu1 %v11607_v47, %s11928_s27 }
0x57e8   : > { %7627 = vrot.lane.b32.xlu1 %v11607_v47, %s11930_s17 }
0x57ec   : > { %7625 = vrot.lane.b32.xlu1 %v11607_v47, %s11929_s30  ;;  %s11938_s30 = sld [smem:[#allocation15_spill]] }
0x5801   : > { %v7621_v17 = vpop.f32.mrb[50].mxu1 }
0x5802   : > { %v9718_v18 = vpop.f32.mrb[51].mxu1 }
0x5803   : > { %v8756_v18 = vld [vmem:[%s11865_s9 + $0xa0] sm:$0xff] }
0x5860   : > { %v7400_v19 = vpop.xlane.xlu1 %7399 }
0x5861   : > { %10183 = vrcp.f32 %v7400_v19 }
0x5864   : > { %v7404_v20 = vpop.permute.xlu1 %7403 }
0x5865   : > { %9705 = vmatpush3.msra.mxu0 %v7404_v20  ;;  %v8758_v20 = vld [vmem:[%s11865_s9 + $0xb0] sm:$0xff] }
0x5866   : > { %9709 = vmatprep.subr.mxu0 %v10265_v13 }
0x5868   : > { %v7628_v27 = vpop.permute.xlu1 %7627 }
0x586b   : > { %v10184_v22 = vpop.eup %10183 }
0x586c   : > { %v7402_v24 = vmul.f32 %v10184_v22, %v10182_v15  ;;  %v7626_v29 = vpop.permute.xlu1 %7625  ;;  %v8759_v22 = vld [vmem:[%s11865_s9 + $0xb8] sm:$0xff] }
0x586e   : > { %9707 = vmatmul.mubr.msk.f32.vlgmr.msra.gmra.mrb[108].mxu0 %vm619_vm2, %v7402_v24  ;;  %v9985_v24 = vpack.c.bf16 %v8759_v22, %v8758_v20 }
0x586f   : > { %9710 = vmatpush3.msra.mxu0 %v8731_v2  ;;  %9711 = vmatprep.mubr.msk.f32.mxu0 %vm10264_vm1, %v10265_v13  ;;  %v8763_v2 = vld [vmem:[%s11867_s11 + $0x280] sm:$0xff] }
0x5870   : > { %9719 = vmatprep.subr.mxu0 %v10265_v13 }
0x5941   : > { %v7475_v11 = vpop.f32.mrb[108].mxu0 }
0x5942   : > { %v9708_v28 = vpop.f32.mrb[109].mxu0  ;;  %9712 = vmatmul.mubr.msk.f32.vlgmr.msra.gmra.mrb[110].mxu0 %vm619_vm2, %v7475_v11 }
0x5943   : > { %9720 = vmatpush3.xpose.msk.msra.mxu0 %vm619_vm2, %v7628_v27  ;;  %9721 = vmatprep.mubr.msk.f32.mxu0 %vm10264_vm1, %v10265_v13  ;;  %v8764_v27 = vld [vmem:[%s11867_s11 + $0x288] sm:$0xff] }
0x5944   : > { %9729 = vmatprep.subr.mxu0 %v10265_v13  ;;  %v9988_v11 = vpack.c.bf16 %v8764_v27, %v8763_v2 }
0x5946   : > { %9722 = vmatmul.mubr.msk.f32.vlgmr.msra.gmra.mrb[112].mxu0 %vm619_vm2, %v7626_v29 }
0x5947   : > { %9731 = vmatprep.mubr.msk.f32.mxu0 %vm10264_vm1, %v10265_v13  ;;  %9730 = vmatpush3.msra.mxu0 %v8732_v51 }
0x5948   : > { %9739 = vmatprep.subr.mxu0 %v10265_v13 }
0x5a15   : > { %v7548_v35 = vpop.f32.mrb[110].mxu0 }
0x5a16   : > { %v7622_v30 = vadd.f32 %v7621_v17, %v7548_v35  ;;  %v9713_v32 = vpop.f32.mrb[111].mxu0 }
0x5a17   : > { %v8754_v32 = vld [vmem:[%s11863_s7 + $0x5] ss:$0 sm:$0xff] }
0x5a19   : > { %v7699_v23 = vpop.f32.mrb[112].mxu0 }
0x5a1a   : > { %v7700_v33 = vadd.f32 %v7699_v23, %v10465_v34  ;;  %v9723_v36 = vpop.f32.mrb[113].mxu0 }
0x5a1c   : > { %v7703_v37 = vsel %vm619_vm2, %v7700_v33, -inf }
0x5a1d   : > { %7704 = vmax.xlane.f32.xlu0 %v7703_v37 }
0x5a33   : > { %7714 = vrot.lane.b32.xlu0 %v11607_v47, %s11931_s25 }
0x5a37   : > { %7866 = vrot.lane.b32.xlu0 %v11607_v47, %s11933_s24 }
0x5a3b   : > { %7864 = vrot.lane.b32.xlu0 %v11607_v47, %s11932_s0  ;;  %s11943_s0 = sld [smem:[#allocation17_spill]] }
0x5aaa   : > { %v7705_v38 = vpop.xlane.xlu0 %7704 }
0x5aab   : > { %v7706_v39 = vsub.f32 %v7700_v33, %v7705_v38  ;;  %v8755_v33 = vld [vmem:[%s11938_s30 + $0x5] ss:$0 sm:$0xff]  ;;  %v8765_v38 = vld [vmem:[%s11867_s11 + $0x290] sm:$0xff]  ;;  %s11942_s30 = sld [smem:[#allocation16_spill]] }
0x5aad   : > { %v7707_v43 = vmul.f32 1.442695, %v7706_v39  ;;  %v8766_v39 = vld [vmem:[%s11867_s11 + $0x298] sm:$0xff] }
0x5aae   : > { %v7715_v40 = vpop.permute.xlu0 %7714 }
0x5aaf   : > { %10185 = vpow2.f32 %v7707_v43  ;;  %9725 = vmatpush3.msra.mxu1 %v7715_v40  ;;  %v9991_v43 = vpack.c.bf16 %v8766_v39, %v8765_v38  ;;  %v8767_v40 = vld [vmem:[%s11867_s11 + $0x2a0] sm:$0xff] }
0x5ab0   : > { %9734 = vmatprep.subr.mxu1 %v10265_v13 }
0x5ab1   : > { %v8781_v20 = vld [vmem:[%s11942_s30] ss:$0 sm:$0xff] }
0x5ab2   : > { %v7867_v26 = vpop.permute.xlu0 %7866 }
0x5ab6   : > { %v7865_v46 = vpop.permute.xlu0 %7864 }
0x5ab9   : > { %v10186_v42 = vpop.eup %10185 }
0x5aba   : > { %v7709_v31 = vsel %vm619_vm2, %v10186_v42, 0.0 }
0x5abb   : > { %7710 = vadd.xlane.f32.xlu1 %v7709_v31 }
0x5b48   : > { %v7711_v21 = vpop.xlane.xlu1 %7710 }
0x5b49   : > { %10187 = vrcp.f32 %v7711_v21  ;;  %v8769_v21 = vld [vmem:[%s11867_s11 + $0x2b0] sm:$0xff] }
0x5b53   : > { %v10188_v44 = vpop.eup %10187 }
0x5b54   : > { %v7713_v45 = vmul.f32 %v10188_v44, %v10186_v42  ;;  %v8768_v42 = vld [vmem:[%s11867_s11 + $0x2a8] sm:$0xff]  ;;  %v8770_v44 = vld [vmem:[%s11867_s11 + $0x2b8] sm:$0xff] }
0x5b55   : > { %v9994_v31 = vpack.c.bf16 %v8768_v42, %v8767_v40 }
0x5b56   : > { %9727 = vmatmul.mubr.msk.f32.vlgmr.msra.gmra.mrb[52].mxu1 %vm619_vm2, %v7713_v45  ;;  %v8771_v45 = vld [vmem:[%s11867_s11 + $0x2c0] sm:$0xff] }
0x5b57   : > { %9735 = vmatpush3.xpose.msk.msra.mxu1 %vm619_vm2, %v7867_v26  ;;  %9736 = vmatprep.mubr.msk.f32.mxu1 %vm10264_vm1, %v10265_v13  ;;  %v9997_v26 = vpack.c.bf16 %v8770_v44, %v8769_v21 }
0x5b58   : > { %9744 = vmatprep.subr.mxu1 %v10265_v13 }
0x5b5a   : > { %9737 = vmatmul.mubr.msk.f32.vlgmr.msra.gmra.mrb[54].mxu1 %vm619_vm2, %v7865_v46  ;;  %v8772_v46 = vld [vmem:[%s11867_s11 + $0x2c8] sm:$0xff] }
0x5b5b   : > { %9746 = vmatprep.mubr.msk.f32.mxu1 %vm10264_vm1, %v10265_v13  ;;  %9745 = vmatpush3.msra.mxu1 %v8733_v61  ;;  %v10000_v51 = vpack.c.bf16 %v8772_v46, %v8771_v45 }
0x5b5c   : > { %9987 = vmatprep.subr.bf16.mxu1 %v10263_v10 }
0x5c29   : > { %v7786_v49 = vpop.f32.mrb[52].mxu1 }
0x5c2a   : > { %v9728_v41 = vpop.f32.mrb[53].mxu1  ;;  %9732 = vmatmul.mubr.msk.f32.vlgmr.msra.gmra.mrb[114].mxu0 %vm619_vm2, %v7786_v49  ;;  %v8773_v49 = vld [vmem:[%s11867_s11 + $0x2d0] sm:$0xff] }
0x5c2b   : > { %9741 = vmatprep.mubr.msk.f32.mxu0 %vm10264_vm1, %v10265_v13  ;;  %v8774_v41 = vld [vmem:[%s11867_s11 + $0x2d8] sm:$0xff] }
0x5c2d   : > { %v7938_v50 = vpop.f32.mrb[54].mxu1 }
0x5c2e   : > { %v7939_v52 = vadd.f32 %v7938_v50, %v10465_v34  ;;  %v9738_v53 = vpop.f32.mrb[55].mxu1  ;;  %v10003_v50 = vpack.c.bf16 %v8774_v41, %v8773_v49 }
0x5c2f   : > { %v8776_v53 = vld [vmem:[%s11867_s11 + $0x2e8] sm:$0xff] }
0x5c30   : > { %v7942_v54 = vsel %vm619_vm2, %v7939_v52, -inf }
0x5c31   : > { %7943 = vmax.xlane.f32.xlu0 %v7942_v54 }
0x5cbe   : > { %v7944_v55 = vpop.xlane.xlu0 %7943 }
0x5cbf   : > { %v7945_v60 = vsub.f32 %v7939_v52, %v7944_v55  ;;  %v8775_v52 = vld [vmem:[%s11867_s11 + $0x2e0] sm:$0xff]  ;;  %v8777_v55 = vld [vmem:[%s11867_s11 + $0x2f0] sm:$0xff] }
0x5cc0   : > { %v10006_v54 = vpack.c.bf16 %v8776_v53, %v8775_v52 }
0x5cc1   : > { %v7946_v58 = vmul.f32 1.442695, %v7945_v60  ;;  %v8778_v60 = vld [vmem:[%s11867_s11 + $0x2f8] sm:$0xff] }
0x5cc3   : > { %10189 = vpow2.f32 %v7946_v58  ;;  %v10009_v58 = vpack.c.bf16 %v8778_v60, %v8777_v55 }
0x5ccd   : > { %v10190_v48 = vpop.eup %10189 }
0x5cce   : > { %v7948_v59 = vsel %vm619_vm2, %v10190_v48, 0.0 }
0x5ccf   : > { %7949 = vadd.xlane.f32.xlu1 %v7948_v59 }
0x5ce0   : > { %7953 = vrot.lane.b32.xlu1 %v11607_v47, %s11934_s18  ;;  %s8784_s18 = sshll.u32 %s11940_s16, 7  ;;  %s10203_s16 = sshll.u32 %s10278_s8, 4  ;;  %s10204_s16 = int_to_ptr.vmem [resolvable:$false] %s10203_s16 }
0x5ce1   : > { %s11813_s21 = scalar_lea.hbm %s11944_s14, %s8784_s18  ;;  %s10205_s26 = scalar_lea.vmem %s10204_s16, 256 }
0x5ce2   : > { %p10206_p0 = scmp.lt.s32.totalorder %s11815_s15, %s10204_s16  ;;  %p10207_p1 = scmp.lt.s32.totalorder %s10205_s26, %s10199_s13 }
0x5ce4   : > { %p10208_p2 = por %p10207_p1, %p10206_p0 }
0x5ce6   : > { %p10209_p3 = pnand %p10208_p2, %p10202_p13 }
0x5cfd   : > { %v7859_v34 = vpop.f32.mrb[114].mxu0 }
0x5cfe   : > { %v7863_v62 = vadd.f32 %v7859_v34, %v7622_v30  ;;  %v9733_v63 = vpop.f32.mrb[115].mxu0 }
0x5d5c   : > { %v7950_v1 = vpop.xlane.xlu1 %7949 }
0x5d5d   : > { %10191 = vrcp.f32 %v7950_v1 }
0x5d60   : > { %v7954_v0 = vpop.permute.xlu1 %7953 }
0x5d61   : > { %9740 = vmatpush3.msra.mxu0 %v7954_v0 }
0x5d62   : > { %9981 = vmatprep.subr.bf16.mxu0 %v10263_v10 }
0x5d67   : > { %v10192_v3 = vpop.eup %10191 }
0x5d68   : > { %v7952_v57 = vmul.f32 %v10192_v3, %v10190_v48  ;;  %v8761_v48 = vld [vmem:[%s11866_s10 + $0x5] ss:$0 sm:$0xff] }
0x5d6a   : > { %9742 = vmatmul.mubr.msk.f32.vlgmr.msra.gmra.mrb[116].mxu0 %vm619_vm2, %v7952_v57 }
0x5d6b   : > { %9757 = vmatprep.mubr.msk.f32.mxu0 %vm10264_vm1, %v10265_v13 }
0x5e3d   : > { %v8025_v47 = vpop.f32.mrb[116].mxu0 }
0x5e3e   : > { %v9743_v4 = vpop.f32.mrb[117].mxu0  ;;  %9747 = vmatmul.mubr.msk.f32.vlgmr.msra.gmra.mrb[56].mxu1 %vm619_vm2, %v8025_v47 }
0x5e3f   : > { %9792 = vmatprep.mubr.msk.f32.mxu1 %vm10264_vm1, %v10265_v13  ;;  %9989 = vmatpush3.bf16.msra.mxu1 %v9988_v11 }
0x5e40   : > { %9990 = vmatprep.subr.bf16.mxu1 %v10263_v10 }
0x5e43   : > { %9992 = vmatpush3.bf16.msra.mxu1 %v9991_v43 }
0x5e44   : > { %9993 = vmatprep.subr.bf16.mxu1 %v10263_v10 }
0x5e47   : > { %9995 = vmatpush3.bf16.msra.mxu1 %v9994_v31 }
0x5e48   : > { %9996 = vmatprep.subr.bf16.mxu1 %v10263_v10 }
0x5e4b   : > { %9998 = vmatpush3.bf16.msra.mxu1 %v9997_v26 }
0x5e4c   : > { %9999 = vmatprep.subr.bf16.mxu1 %v10263_v10 }
0x5e4f   : > { %10001 = vmatpush3.bf16.msra.mxu1 %v10000_v51 }
0x5e50   : > { %10002 = vmatprep.subr.bf16.mxu1 %v10263_v10 }
0x5e53   : > { %10004 = vmatpush3.bf16.msra.mxu1 %v10003_v50 }
0x5e54   : > { %10005 = vmatprep.subr.bf16.mxu1 %v10263_v10 }
0x5e57   : > { %10007 = vmatpush3.bf16.msra.mxu1 %v10006_v54 }
0x5e58   : > { %10008 = vmatprep.subr.bf16.mxu1 %v10263_v10 }
0x5e5b   : > { %10010 = vmatpush3.bf16.msra.mxu1 %v10009_v58 }
0x5f11   : > { %v8098_v5 = vpop.f32.mrb[56].mxu1 }
0x5f12   : > { %v8102_v6 = vadd.f32 %v8098_v5, %v7863_v62  ;;  %v9748_v56 = vpop.f32.mrb[57].mxu1 }
0x5f14   : > { %v8103_v8 = vadd.f32 %v8102_v6, %v11575_v25  ;;  %v8757_v25 = vld [vmem:[%s11865_s9 + $0xa8] sm:$0xff]  ;;  %v8780_v6 = vld [vmem:[%s11868_s12 + $0x5] ss:$0 sm:$0xff] }
0x5f15   : > { %v9982_v19 = vpack.c.bf16 %v8757_v25, %v8756_v18 }
0x5f16   : > { %v11712_v9 = vadd.f32 %v8751_v7, %v8103_v8 }
0x5f17   : > { %9983 = vmatpush3.bf16.msra.mxu0 %v9982_v19 }
0x5f18   : > { %v8117_v12 = vsel %vm499_vm0, %v11712_v9, 0.0  ;;  %9984 = vmatprep.subr.bf16.mxu0 %v10263_v10 }
0x5f19   : > { %8118 = vadd.xlane.f32.xlu1 %v8117_v12 }
0x5f1b   : > { %9986 = vmatpush3.bf16.msra.mxu0 %v9985_v24  ;;  %v8782_v24 = vld [vmem:[%s11943_s0] ss:$0 sm:$0xff] }
0x5fa6   : > { %v8119_v14 = vpop.xlane.xlu1 %8118 }
0x5fa7   : > { %v8120_v15 = vmul.f32 0.03125, %v8119_v14 }
0x5fa9   : > { %v8121_v16 = vsub.f32 %v11712_v9, %v8120_v15 }
0x5fab   : > { %v8122_v13 = vmul.f32 %v8121_v16, %v8121_v16 }
0x5fad   : > { %v8123_v17 = vsel %vm499_vm0, %v8122_v13, 0.0 }
0x5fae   : > { %8124 = vadd.xlane.f32.xlu0 %v8123_v17 }
0x603b   : > { %v8125_v28 = vpop.xlane.xlu0 %8124 }
0x603c   : > { %v8126_v29 = vmul.f32 0.03125, %v8125_v28 }
0x603e   : > { %v8127_v35 = vadd.f32 1e-05, %v8126_v29 }
0x6040   : > { %10193 = vrsqrt.f32 %v8127_v35 }
0x604a   : > { %v10194_v30 = vpop.eup %10193 }
0x604b   : > { %v8129_v23 = vmul.f32 %v10194_v30, %v8121_v16 }
0x604d   : > { %v8136_v36 = vmul.f32 %v8754_v32, %v8129_v23 }
0x604f   : > { %v8143_v37 = vadd.f32 %v8755_v33, %v8136_v36 }
0x6051   : > { %9758 = vmatmul.mubr.msk.f32.vlgmr.msra.gmra.mrb[118].mxu0 %vm499_vm0, %v8143_v37 }
0x6124   : > { %v8226_v59 = vpop.f32.mrb[118].mxu0 }
0x6125   : > { %v8227_v61 = vadd.f32 %v8761_v48, %v8226_v59  ;;  %v9759_v34 = vpop.f32.mrb[119].mxu0 }
0x6127   : > { %v8231_v62 = vmul.f32 0.044715, %v8227_v61  ;;  %v8230_v47 = vmul.f32 0.5, %v8227_v61 }
0x6129   : > { %v8232_v63 = vmul.f32 %v8231_v62, %v8227_v61 }
0x612b   : > { %v8233_v1 = vmul.f32 %v8232_v63, %v8227_v61 }
0x612d   : > { %v8234_v0 = vadd.f32 %v8233_v1, %v8227_v61 }
0x612f   : > { %v8235_v3 = vmul.f32 0.7978846, %v8234_v0 }
0x6131   : > { %10195 = vtanh.f32 %v8235_v3 }
0x613b   : > { %v10196_v57 = vpop.eup %10195 }
0x613c   : > { %v8237_v4 = vadd.f32 1.0, %v10196_v57 }
0x613e   : > { %v8238_v5 = vmul.f32 %v8237_v4, %v8230_v47 }
0x6140   : > { %9793 = vmatmul.mubr.f32.vlgmr.msra.gmra.mrb[58].mxu1 %v8238_v5 }
0x6213   : > { %v8322_v10 = vpop.f32.mrb[58].mxu1 }
0x6214   : > { %v8326_v56 = vadd.f32 %v8322_v10, %v11712_v9  ;;  %v9794_v7 = vpop.f32.mrb[59].mxu1 }
0x6216   : > { %v8335_v8 = vadd.f32 %v8780_v6, %v8326_v56 }
0x6218   : > { %v8338_v12 = vsel %vm499_vm0, %v8335_v8, 0.0 }
0x6219   : > { %8339 = vadd.xlane.f32.xlu0 %v8338_v12 }
0x62a6   : > { %v8340_v14 = vpop.xlane.xlu0 %8339 }
0x62a7   : > { %v8341_v15 = vmul.f32 0.03125, %v8340_v14 }
0x62a9   : > { %v8342_v16 = vsub.f32 %v8335_v8, %v8341_v15 }
0x62ab   : > { %v8343_v13 = vmul.f32 %v8342_v16, %v8342_v16 }
0x62ad   : > { %v8344_v17 = vsel %vm499_vm0, %v8343_v13, 0.0 }
0x62ae   : > { %8345 = vadd.xlane.f32.xlu0 %v8344_v17 }
0x633b   : > { %v8346_v18 = vpop.xlane.xlu0 %8345 }
0x633c   : > { %v8347_v25 = vmul.f32 0.03125, %v8346_v18 }
0x633e   : > { %v8348_v19 = vadd.f32 1e-05, %v8347_v25 }
0x6340   : > { %10197 = vrsqrt.f32 %v8348_v19 }
0x634a   : > { %v10198_v9 = vpop.eup %10197 }
0x634b   : > { %v8350_v22 = vmul.f32 %v10198_v9, %v8342_v16 }
0x634d   : > { %v8357_v2 = vmul.f32 %v8781_v20, %v8350_v22 }
0x634f   : > { %v8364_v27 = vadd.f32 %v8782_v24, %v8357_v2 }
0x6351   : > { %8365 = vst.msk [vmem:[%s485_s19] sm:$0xff] %vm499_vm0, %v8364_v27 }
0x6352   : > { %10212 = shalt.err (!%p10209_p3)
}
0x6353   : > { %s10213_s20 = scalar_lea.hbm %s11813_s21, 128  ;;  %s10217_s30 = scalar_lea.hbm %s11944_s14, 256 }
0x6354   : > { %p10214_p4 = scmp.ne.s32.totalorder %s11813_s21, %s10213_s20  ;;  %p10218_p9 = scmp.lt.u32.totalorder %s11813_s21, %s11944_s14 }
0x6355   : > { %p10219_p10 = scmp.lt.u32.totalorder %s10217_s30, %s10213_s20  ;;  %p10221_p12 = scmp.lt.u32.totalorder %s10213_s20, %s11813_s21 }
0x6356   : > { %p10215_p7 = pnand %p10214_p4, %p10397_p5 }
0x6357   : > { %p10220_p11 = por %p10219_p10, %p10218_p9 }
0x6358   : > { %p10216_p8 = pneg %p10215_p7 }
0x6359   : > { %p10222_p13 = por %p10221_p12, %p10220_p11 }
0x635b   : > { %p10223_p0 = pnand %p10222_p13, %p10216_p8 }
0x635d   : > { %10226 = shalt.err (!%p10223_p0)
}
0x635e   : > { %10011 = dma.vmem_to_hbm [thread:$0]  (%p10397_p5), %s11815_s15, 128, %s11813_s21, %s8367_s29  }
0x635f PF: > { %s11945_s0 = sld [smem:[#allocation8_spill]]  ;;  %s11946_s18 = sld [smem:[#allocation5_spill]] }
0x6365   : > { %p10017_p1 = scmp.ge.s32.totalorder %s11945_s0, 2  ;;  %s8392_s22 = sand.u32 1, %s11946_s18  }
0x6366   : > { %s8393_s28 = scalar_lea.sflag [#allocation3], %s8392_s22 }
0x6367   : > { %p10014_p2 = pnand %p10017_p1, %p10401_p6 }
0x6369   : > { %10244 = dma.done.wait (!%p10014_p2), %s8393_s28, 128  }
0x636a   : > { %10246 = vsyncadd (!%p10014_p2), %s8393_s28, 4294967168  ;;  %s11948_s21 = sld [smem:[#allocation10_spill]]  ;;  %s11949_s18 = sld [smem:[#allocation6_spill]] }
0x636b   : > { %s11950_s19 = sld [smem:[#allocation7_spill]]  ;;  %s11951_s20 = sld [smem:[#allocation11_spill]] }
0x6370   : > { %p25_p3 = scmp.ge.s32.totalorder %s11948_s21, 4  }
0x6372   :  { %27 = sbr.rel (!%p25_p3) target bundleno = 9 (0x9), region = 175 }
0x6379   :  { %8398 = vsyncpa [#allocation3], 1 }
0x637a   :  { %8400 = vsyncpa [#allocation3 + $0x1], 1 }

</bundles_post_ra>
